<compile_context>
chip_gen: v6e
topology: v6e:2x2x1
jax: 0.10.0
libtpu: 0.0.40
codegen_flags: <defaults>
</compile_context>

<pallas_src>
import functools

import jax
import jax.numpy as jnp
from jax.experimental import pallas as pl
from jax.experimental.pallas import tpu as pltpu

_LANE = 128

# VMEM budget (v7x: 64 MiB physical / 32 MiB scoped default; v5e/v6e: 128 MiB).
# Per conv-matmul grid step we hold double-buffered A(tm,Kp)+W(Kp,N)+res(tm,N)+out(tm,N)
# in bf16 plus shift(1,N) f32; with tm=256, Kp<=640, N<=64 this is < 1 MiB, so a 32 MiB
# explicit limit is safe on every generation.
_VMEM_LIMIT = 32 * 1024 * 1024


def _round_up(x, m):
    return ((x + m - 1) // m) * m


# ----------------------------------------------------------------------------
# Pallas kernels
# ----------------------------------------------------------------------------

def _conv_matmul_kernel(relu, has_res, *refs):
    """One M-tile of: relu((A @ W) + shift [+ res]).  BN scale pre-folded into W.

    A/W/res are bf16; accumulation and epilogue math are f32; store is bf16.
    """
    if has_res:
        a_ref, w_ref, shift_ref, res_ref, o_ref = refs
    else:
        a_ref, w_ref, shift_ref, o_ref = refs
    acc = jnp.dot(a_ref[...], w_ref[...], preferred_element_type=jnp.float32)
    y = acc + shift_ref[...]
    if has_res:
        y = y + res_ref[...].astype(jnp.float32)
    if relu:
        y = jnp.maximum(y, 0.0)
    o_ref[...] = y.astype(o_ref.dtype)


def _max_reduce_kernel(x_ref, o_ref):
    # x: [9 windows, TR, 128] (lane-dense rows) -> elementwise max over window axis.
    o_ref[...] = jnp.max(x_ref[...], axis=0)


def _avgpool_kernel(inv_hw, x_ref, o_ref):
    # x: [N, H*W, C] bf16 -> mean over spatial axis, accumulated in f32.
    o_ref[...] = jnp.sum(x_ref[...].astype(jnp.float32), axis=1) * inv_hw


# ----------------------------------------------------------------------------
# Pallas wrappers
# ----------------------------------------------------------------------------

def fused_conv_matmul(a, w, shift, res=None, relu=True, tm=256):
    """a:[M,Kp] bf16 @ w:[Kp,N] bf16, +shift (f32), optional fused residual, opt. ReLU.

    The residual (if given) shares the output tile's index_map, so the BasicBlock
    merge relu(conv2+bn2 + identity) happens in the epilogue: no extra HBM pass.
    """
    M, Kp = a.shape
    _, N = w.shape
    tm = min(tm, M)
    Mp = _round_up(M, tm)
    if Mp != M:  # never hit at the shapes used here; kept for generality
        a = jnp.pad(a, ((0, Mp - M), (0, 0)))
        if res is not None:
            res = jnp.pad(res, ((0, Mp - M), (0, 0)))
    shift = shift.reshape(1, N).astype(jnp.float32)

    in_arrays = [a, w, shift]
    in_specs = [
        pl.BlockSpec((tm, Kp), lambda i: (i, 0)),
        pl.BlockSpec((Kp, N), lambda i: (0, 0)),
        pl.BlockSpec((1, N), lambda i: (0, 0)),
    ]
    if res is not None:
        in_arrays.append(res)
        in_specs.append(pl.BlockSpec((tm, N), lambda i: (i, 0)))

    out = pl.pallas_call(
        functools.partial(_conv_matmul_kernel, relu, res is not None),
        out_shape=jax.ShapeDtypeStruct((Mp, N), jnp.bfloat16),
        grid=(Mp // tm,),
        in_specs=in_specs,
        out_specs=pl.BlockSpec((tm, N), lambda i: (i, 0)),
        compiler_params=pltpu.CompilerParams(
            dimension_semantics=("parallel",),
            vmem_limit_bytes=_VMEM_LIMIT),
    )(*in_arrays)
    if Mp != M:
        out = out[:M]
    return out


def maxpool_3x3_s2(x):
    """3x3 / stride-2 / pad-1 max pool. x: [N,H,W,C] bf16 (NHWC)."""
    N, H, W, C = x.shape
    k, s, pad = 3, 2, 1
    xp = jnp.pad(x, ((0, 0), (pad, pad), (pad, pad), (0, 0)),
                 constant_values=-jnp.inf)
    OH = (H + 2 * pad - k) // s + 1
    OW = (W + 2 * pad - k) // s + 1
    wins = [xp[:, i:i + s * OH:s, j:j + s * OW:s, :]
            for i in range(k) for j in range(k)]
    total = N * OH * OW * C
    # Lane-dense layout: fold (rows, channels) into rows of 128 lanes so stores are
    # full-width vst instead of C(<=64)-lane masked stores; grid >= 2 row tiles.
    stacked = jnp.stack(wins, axis=0).reshape(k * k, total)
    tot_p = _round_up(total, _LANE)
    if tot_p != total:
        stacked = jnp.pad(stacked, ((0, 0), (0, tot_p - total)),
                          constant_values=-jnp.inf)
    rows = tot_p // _LANE
    stacked = stacked.reshape(k * k, rows, _LANE)
    tr = 16 if rows % 16 == 0 else (8 if rows % 8 == 0 else rows)
    out = pl.pallas_call(
        _max_reduce_kernel,
        out_shape=jax.ShapeDtypeStruct((rows, _LANE), x.dtype),
        grid=(rows // tr,),
        in_specs=[pl.BlockSpec((k * k, tr, _LANE), lambda i: (0, i, 0))],
        out_specs=pl.BlockSpec((tr, _LANE), lambda i: (i, 0)),
        compiler_params=pltpu.CompilerParams(
            dimension_semantics=("parallel",),
            vmem_limit_bytes=_VMEM_LIMIT),
    )(stacked)
    return out.reshape(tot_p)[:total].reshape(N, OH, OW, C)


def global_avgpool(x):
    """Adaptive avg pool to 1x1 + flatten. x: [N,H,W,C] bf16 -> [N,C] f32."""
    N, H, W, C = x.shape
    xr = x.reshape(N, H * W, C)
    return pl.pallas_call(
        functools.partial(_avgpool_kernel, 1.0 / float(H * W)),
        out_shape=jax.ShapeDtypeStruct((N, C), jnp.float32),
        in_specs=[pl.BlockSpec((N, H * W, C), lambda: (0, 0, 0))],
        out_specs=pl.BlockSpec((N, C), lambda: (0, 0)),
        compiler_params=pltpu.CompilerParams(vmem_limit_bytes=_VMEM_LIMIT),
    )(xr)


# ----------------------------------------------------------------------------
# Conv / BN glue (patch extraction in JAX, matmul+BN+res+ReLU in the Pallas kernel)
# ----------------------------------------------------------------------------

def _im2col(x, kh, kw, stride, pad, k_pad):
    """x: [N,H,W,C] -> patches [N*OH*OW, Kp] (tap-major, channel-minor), zero-padded
    along K to a multiple of 128 so the A tile's lane dim is aligned / unmasked."""
    if pad > 0:
        x = jnp.pad(x, ((0, 0), (pad, pad), (pad, pad), (0, 0)))
    N, Hp, Wp, C = x.shape
    OH = (Hp - kh) // stride + 1
    OW = (Wp - kw) // stride + 1
    cols = [x[:, i:i + stride * OH:stride, j:j + stride * OW:stride, :]
            for i in range(kh) for j in range(kw)]
    if k_pad > 0:
        cols.append(jnp.zeros((N, OH, OW, k_pad), x.dtype))
    patches = jnp.concatenate(cols, axis=-1)          # single materialization
    return patches.reshape(N * OH * OW, kh * kw * C + k_pad), (N, OH, OW)


def conv_bn(x, p, stride, pad, relu, res=None):
    """conv2d (no conv bias) + eval-mode BN (+ optional fused residual) (+ ReLU).

    BN scale gamma/sqrt(var+eps) is folded into the weight columns; only the
    per-channel shift goes to the kernel epilogue.
    """
    kh, kw, cin, cout = p["w"].shape
    K = kh * kw * cin
    Kp = _round_up(K, _LANE)
    cols, (N, OH, OW) = _im2col(x, kh, kw, stride, pad, Kp - K)
    eps = 1e-5
    scale = p["gamma"] / jnp.sqrt(p["var"] + eps)
    shift = p["beta"] - p["mean"] * scale
    wmat = (p["w"] * scale).reshape(K, cout)
    wmat = jnp.pad(wmat, ((0, Kp - K), (0, 0))).astype(jnp.bfloat16)
    if res is not None:
        res = res.reshape(N * OH * OW, cout)
    out = fused_conv_matmul(cols, wmat, shift, res=res, relu=relu)
    return out.reshape(N, OH, OW, cout)


def basic_block(x, p, stride):
    # Identity / downsample path first; then relu(conv2+bn2 + identity) is fused into
    # the second conv's matmul epilogue (no standalone add+ReLU kernel).
    if "down" in p:
        idn = conv_bn(x, p["down"], stride, 0, relu=False)
    else:
        idn = x
    h = conv_bn(x, p["conv1"], stride, 1, relu=True)
    return conv_bn(h, p["conv2"], 1, 1, relu=True, res=idn)


def net_forward(params, x_nchw):
    """Mirrors Net.forward: returns (logits, feat)."""
    x = jnp.transpose(x_nchw, (0, 2, 3, 1)).astype(jnp.bfloat16)   # NCHW -> NHWC
    x = conv_bn(x, params["conv1"], stride=2, pad=3, relu=True)     # conv1+bn1+relu
    x = maxpool_3x3_s2(x)                                           # maxpool
    for name, first_stride in (("layer1", 1), ("layer2", 2),
                               ("layer3", 2), ("layer4", 2)):
        b0, b1 = params[name]
        x = basic_block(x, b0, first_stride)
        x = basic_block(x, b1, 1)
    feat = global_avgpool(x)                                        # avgpool + view, f32
    # fc: 2x64x10 — plain XLA; a pallas_call here is ~100% padding / fixed overhead.
    logits = feat @ params["fc_w"] + params["fc_b"]
    return logits, feat


# ----------------------------------------------------------------------------
# Deterministic synthetic parameters (checkpoint is not available)
# ----------------------------------------------------------------------------

def _init_conv_bn(key, kh, kw, cin, cout):
    k0, k1, k2, k3 = jax.random.split(key, 4)
    fan_in = kh * kw * cin
    return {
        "w": jax.random.normal(k0, (kh, kw, cin, cout), jnp.float32)
             * (2.0 / fan_in) ** 0.5,
        "gamma": 1.0 + 0.05 * jax.random.normal(k1, (cout,), jnp.float32),
        "beta": 0.05 * jax.random.normal(k2, (cout,), jnp.float32),
        "mean": 0.05 * jax.random.normal(k3, (cout,), jnp.float32),
        "var": jnp.ones((cout,), jnp.float32),
    }


def _init_block(key, cin, cout, stride):
    k1, k2, k3 = jax.random.split(key, 3)
    p = {"conv1": _init_conv_bn(k1, 3, 3, cin, cout),
         "conv2": _init_conv_bn(k2, 3, 3, cout, cout)}
    if stride != 1 or cin != cout:
        p["down"] = _init_conv_bn(k3, 1, 1, cin, cout)
    return p


def init_params(key, c0=8, in_ch=3, num_classes=10):
    keys = jax.random.split(key, 12)
    params = {"conv1": _init_conv_bn(keys[0], 7, 7, in_ch, c0)}
    cin, ki = c0, 1
    for li, (cout, stride) in enumerate(
            [(c0, 1), (2 * c0, 2), (4 * c0, 2), (8 * c0, 2)], start=1):
        params[f"layer{li}"] = [
            _init_block(keys[ki], cin, cout, stride),
            _init_block(keys[ki + 1], cout, cout, 1),
        ]
        cin = cout
        ki += 2
    params["fc_w"] = jax.random.normal(keys[ki], (8 * c0, num_classes),
                                       jnp.float32) * (1.0 / (8 * c0)) ** 0.5
    params["fc_b"] = 0.01 * jax.random.normal(keys[ki + 1], (num_classes,),
                                              jnp.float32)
    return params


if __name__ == "__main__":
    key = jax.random.PRNGKey(0)
    pkey, xkey = jax.random.split(key)
    params = init_params(pkey, c0=8, in_ch=3, num_classes=10)
    # input in PyTorch NCHW convention
    x = jax.random.normal(xkey, (2, 3, 64, 64), jnp.float32)

    fwd = jax.jit(net_forward)
    logits, feat = fwd(params, x)
    jax.block_until_ready((logits, feat))

    assert logits.shape == (2, 10), logits.shape
    assert feat.shape == (2, 64), feat.shape
    assert bool(jnp.all(jnp.isfinite(logits))) and bool(jnp.all(jnp.isfinite(feat)))
    print("KERNEL_OK")
</pallas_src>

<mosaic_0001>
module attributes {stable_mosaic.version = 11 : i64} {
  func.func @_conv_matmul_kernel(%arg0: i32, %arg1: memref<256x256xbf16, #tpu.memory_space<vmem>>, %arg2: memref<256x8xbf16, #tpu.memory_space<vmem>>, %arg3: memref<1x8xf32, #tpu.memory_space<vmem>>, %arg4: memref<256x8xbf16, #tpu.memory_space<vmem>>) attributes {dimension_semantics = [#tpu.dimension_semantics<parallel>], iteration_bounds = array<i64: 8>, scalar_prefetch = 0 : i64, scratch_operands = 0 : i64, tpu.core_type = #tpu.core_type<tc>, window_params = [{transform_indices = @transform_0, window_bounds = array<i64: 256, 256>}, {pipeline_mode = #tpu.pipeline_mode<synchronous>, transform_indices = @transform_1, window_bounds = array<i64: 256, 8>}, {pipeline_mode = #tpu.pipeline_mode<synchronous>, transform_indices = @transform_2, window_bounds = array<i64: 1, 8>}, {transform_indices = @transform_3, window_bounds = array<i64: 256, 8>}]} {
    %c0 = arith.constant 0 : index
    %c0_0 = arith.constant 0 : index
    %0 = vector.load %arg1[%c0, %c0_0] : memref<256x256xbf16, #tpu.memory_space<vmem>>, vector<256x256xbf16>
    %c0_1 = arith.constant 0 : index
    %c0_2 = arith.constant 0 : index
    %1 = vector.load %arg2[%c0_1, %c0_2] : memref<256x8xbf16, #tpu.memory_space<vmem>>, vector<256x8xbf16>
    %cst = arith.constant dense<0.000000e+00> : vector<256x8xf32>
    %2 = tpu.matmul %0, %1, %cst {dimension_numbers = #tpu.dot_dimension_numbers<[1], [0], [0], [1], [0, 0, 1, 1], [], []>} : vector<256x256xbf16>, vector<256x8xbf16>, vector<256x8xf32> -> vector<256x8xf32>
    %c0_3 = arith.constant 0 : index
    %c0_4 = arith.constant 0 : index
    %3 = vector.load %arg3[%c0_3, %c0_4] : memref<1x8xf32, #tpu.memory_space<vmem>>, vector<1x8xf32>
    %4 = vector.broadcast %3 : vector<1x8xf32> to vector<256x8xf32>
    %5 = arith.addf %2, %4 : vector<256x8xf32>
    %cst_5 = arith.constant 0.000000e+00 : f32
    %6 = vector.broadcast %cst_5 : f32 to vector<256x8xf32>
    %7 = arith.maximumf %5, %6 : vector<256x8xf32>
    %8 = arith.truncf %7 : vector<256x8xf32> to vector<256x8xbf16>
    %c0_6 = arith.constant 0 : index
    %c0_7 = arith.constant 0 : index
    %9 = vector.load %arg4[%c0_6, %c0_7] : memref<256x8xbf16, #tpu.memory_space<vmem>>, vector<256x8xbf16>
    tpu.vector_store %arg4[%c0_6, %c0_7], %8 {strides = array<i32>} : memref<256x8xbf16, #tpu.memory_space<vmem>>, vector<256x8xbf16>,
    return
  }
  func.func @transform_0(%arg0: i32) -> (i32, i32) {
    %c0_i32 = arith.constant 0 : i32
    %c0_i32_0 = arith.constant 0 : i32
    return %arg0, %c0_i32 : i32, i32
  }
  func.func @transform_1(%arg0: i32) -> (i32, i32) {
    %c0_i32 = arith.constant 0 : i32
    %c0_i32_0 = arith.constant 0 : i32
    %c0_i32_1 = arith.constant 0 : i32
    return %c0_i32, %c0_i32_0 : i32, i32
  }
  func.func @transform_2(%arg0: i32) -> (i32, i32) {
    %c0_i32 = arith.constant 0 : i32
    %c0_i32_0 = arith.constant 0 : i32
    %c0_i32_1 = arith.constant 0 : i32
    return %c0_i32, %c0_i32_0 : i32, i32
  }
  func.func @transform_3(%arg0: i32) -> (i32, i32) {
    %c0_i32 = arith.constant 0 : i32
    %c0_i32_0 = arith.constant 0 : i32
    return %arg0, %c0_i32 : i32, i32
  }
}

module attributes {stable_mosaic.version = 11 : i64} {
  func.func @_max_reduce_kernel(%arg0: i32, %arg1: memref<9x16x128xbf16, #tpu.memory_space<vmem>>, %arg2: memref<16x128xbf16, #tpu.memory_space<vmem>>) attributes {dimension_semantics = [#tpu.dimension_semantics<parallel>], iteration_bounds = array<i64: 2>, scalar_prefetch = 0 : i64, scratch_operands = 0 : i64, tpu.core_type = #tpu.core_type<tc>, window_params = [{transform_indices = @transform_0, window_bounds = array<i64: 9, 16, 128>}, {transform_indices = @transform_1, window_bounds = array<i64: 16, 128>}]} {
    %c0 = arith.constant 0 : index
    %c0_0 = arith.constant 0 : index
    %c0_1 = arith.constant 0 : index
    %0 = vector.load %arg1[%c0, %c0_0, %c0_1] : memref<9x16x128xbf16, #tpu.memory_space<vmem>>, vector<9x16x128xbf16>
    %cst = arith.constant dense<0xFF80> : vector<16x128xbf16>
    %1 = vector.multi_reduction <maximumf>, %0, %cst [0] : vector<9x16x128xbf16> to vector<16x128xbf16>
    %c0_2 = arith.constant 0 : index
    %c0_3 = arith.constant 0 : index
    %2 = vector.load %arg2[%c0_2, %c0_3] : memref<16x128xbf16, #tpu.memory_space<vmem>>, vector<16x128xbf16>
    tpu.vector_store %arg2[%c0_2, %c0_3], %1 {strides = array<i32>} : memref<16x128xbf16, #tpu.memory_space<vmem>>, vector<16x128xbf16>,
    return
  }
  func.func @transform_0(%arg0: i32) -> (i32, i32, i32) {
    %c0_i32 = arith.constant 0 : i32
    %c0_i32_0 = arith.constant 0 : i32
    %c0_i32_1 = arith.constant 0 : i32
    return %c0_i32, %arg0, %c0_i32_0 : i32, i32, i32
  }
  func.func @transform_1(%arg0: i32) -> (i32, i32) {
    %c0_i32 = arith.constant 0 : i32
    %c0_i32_0 = arith.constant 0 : i32
    return %arg0, %c0_i32 : i32, i32
  }
}

module attributes {stable_mosaic.version = 11 : i64} {
  func.func @_conv_matmul_kernel(%arg0: i32, %arg1: memref<256x128xbf16, #tpu.memory_space<vmem>>, %arg2: memref<128x8xbf16, #tpu.memory_space<vmem>>, %arg3: memref<1x8xf32, #tpu.memory_space<vmem>>, %arg4: memref<256x8xbf16, #tpu.memory_space<vmem>>) attributes {dimension_semantics = [#tpu.dimension_semantics<parallel>], iteration_bounds = array<i64: 2>, scalar_prefetch = 0 : i64, scratch_operands = 0 : i64, tpu.core_type = #tpu.core_type<tc>, window_params = [{transform_indices = @transform_0, window_bounds = array<i64: 256, 128>}, {pipeline_mode = #tpu.pipeline_mode<synchronous>, transform_indices = @transform_1, window_bounds = array<i64: 128, 8>}, {pipeline_mode = #tpu.pipeline_mode<synchronous>, transform_indices = @transform_2, window_bounds = array<i64: 1, 8>}, {transform_indices = @transform_3, window_bounds = array<i64: 256, 8>}]} {
    %c0 = arith.constant 0 : index
    %c0_0 = arith.constant 0 : index
    %0 = vector.load %arg1[%c0, %c0_0] : memref<256x128xbf16, #tpu.memory_space<vmem>>, vector<256x128xbf16>
    %c0_1 = arith.constant 0 : index
    %c0_2 = arith.constant 0 : index
    %1 = vector.load %arg2[%c0_1, %c0_2] : memref<128x8xbf16, #tpu.memory_space<vmem>>, vector<128x8xbf16>
    %cst = arith.constant dense<0.000000e+00> : vector<256x8xf32>
    %2 = tpu.matmul %0, %1, %cst {dimension_numbers = #tpu.dot_dimension_numbers<[1], [0], [0], [1], [0, 0, 1, 1], [], []>} : vector<256x128xbf16>, vector<128x8xbf16>, vector<256x8xf32> -> vector<256x8xf32>
    %c0_3 = arith.constant 0 : index
    %c0_4 = arith.constant 0 : index
    %3 = vector.load %arg3[%c0_3, %c0_4] : memref<1x8xf32, #tpu.memory_space<vmem>>, vector<1x8xf32>
    %4 = vector.broadcast %3 : vector<1x8xf32> to vector<256x8xf32>
    %5 = arith.addf %2, %4 : vector<256x8xf32>
    %cst_5 = arith.constant 0.000000e+00 : f32
    %6 = vector.broadcast %cst_5 : f32 to vector<256x8xf32>
    %7 = arith.maximumf %5, %6 : vector<256x8xf32>
    %8 = arith.truncf %7 : vector<256x8xf32> to vector<256x8xbf16>
    %c0_6 = arith.constant 0 : index
    %c0_7 = arith.constant 0 : index
    %9 = vector.load %arg4[%c0_6, %c0_7] : memref<256x8xbf16, #tpu.memory_space<vmem>>, vector<256x8xbf16>
    tpu.vector_store %arg4[%c0_6, %c0_7], %8 {strides = array<i32>} : memref<256x8xbf16, #tpu.memory_space<vmem>>, vector<256x8xbf16>,
    return
  }
  func.func @transform_0(%arg0: i32) -> (i32, i32) {
    %c0_i32 = arith.constant 0 : i32
    %c0_i32_0 = arith.constant 0 : i32
    return %arg0, %c0_i32 : i32, i32
  }
  func.func @transform_1(%arg0: i32) -> (i32, i32) {
    %c0_i32 = arith.constant 0 : i32
    %c0_i32_0 = arith.constant 0 : i32
    %c0_i32_1 = arith.constant 0 : i32
    return %c0_i32, %c0_i32_0 : i32, i32
  }
  func.func @transform_2(%arg0: i32) -> (i32, i32) {
    %c0_i32 = arith.constant 0 : i32
    %c0_i32_0 = arith.constant 0 : i32
    %c0_i32_1 = arith.constant 0 : i32
    return %c0_i32, %c0_i32_0 : i32, i32
  }
  func.func @transform_3(%arg0: i32) -> (i32, i32) {
    %c0_i32 = arith.constant 0 : i32
    %c0_i32_0 = arith.constant 0 : i32
    return %arg0, %c0_i32 : i32, i32
  }
}

module attributes {stable_mosaic.version = 11 : i64} {
  func.func @_conv_matmul_kernel(%arg0: i32, %arg1: memref<256x128xbf16, #tpu.memory_space<vmem>>, %arg2: memref<128x8xbf16, #tpu.memory_space<vmem>>, %arg3: memref<1x8xf32, #tpu.memory_space<vmem>>, %arg4: memref<256x8xbf16, #tpu.memory_space<vmem>>, %arg5: memref<256x8xbf16, #tpu.memory_space<vmem>>) attributes {dimension_semantics = [#tpu.dimension_semantics<parallel>], iteration_bounds = array<i64: 2>, scalar_prefetch = 0 : i64, scratch_operands = 0 : i64, tpu.core_type = #tpu.core_type<tc>, window_params = [{transform_indices = @transform_0, window_bounds = array<i64: 256, 128>}, {pipeline_mode = #tpu.pipeline_mode<synchronous>, transform_indices = @transform_1, window_bounds = array<i64: 128, 8>}, {pipeline_mode = #tpu.pipeline_mode<synchronous>, transform_indices = @transform_2, window_bounds = array<i64: 1, 8>}, {transform_indices = @transform_3, window_bounds = array<i64: 256, 8>}, {transform_indices = @transform_4, window_bounds = array<i64: 256, 8>}]} {
    %c0 = arith.constant 0 : index
    %c0_0 = arith.constant 0 : index
    %0 = vector.load %arg1[%c0, %c0_0] : memref<256x128xbf16, #tpu.memory_space<vmem>>, vector<256x128xbf16>
    %c0_1 = arith.constant 0 : index
    %c0_2 = arith.constant 0 : index
    %1 = vector.load %arg2[%c0_1, %c0_2] : memref<128x8xbf16, #tpu.memory_space<vmem>>, vector<128x8xbf16>
    %cst = arith.constant dense<0.000000e+00> : vector<256x8xf32>
    %2 = tpu.matmul %0, %1, %cst {dimension_numbers = #tpu.dot_dimension_numbers<[1], [0], [0], [1], [0, 0, 1, 1], [], []>} : vector<256x128xbf16>, vector<128x8xbf16>, vector<256x8xf32> -> vector<256x8xf32>
    %c0_3 = arith.constant 0 : index
    %c0_4 = arith.constant 0 : index
    %3 = vector.load %arg3[%c0_3, %c0_4] : memref<1x8xf32, #tpu.memory_space<vmem>>, vector<1x8xf32>
    %4 = vector.broadcast %3 : vector<1x8xf32> to vector<256x8xf32>
    %5 = arith.addf %2, %4 : vector<256x8xf32>
    %c0_5 = arith.constant 0 : index
    %c0_6 = arith.constant 0 : index
    %6 = vector.load %arg4[%c0_5, %c0_6] : memref<256x8xbf16, #tpu.memory_space<vmem>>, vector<256x8xbf16>
    %7 = arith.extf %6 : vector<256x8xbf16> to vector<256x8xf32>
    %8 = arith.addf %5, %7 : vector<256x8xf32>
    %cst_7 = arith.constant 0.000000e+00 : f32
    %9 = vector.broadcast %cst_7 : f32 to vector<256x8xf32>
    %10 = arith.maximumf %8, %9 : vector<256x8xf32>
    %11 = arith.truncf %10 : vector<256x8xf32> to vector<256x8xbf16>
    %c0_8 = arith.constant 0 : index
    %c0_9 = arith.constant 0 : index
    %12 = vector.load %arg5[%c0_8, %c0_9] : memref<256x8xbf16, #tpu.memory_space<vmem>>, vector<256x8xbf16>
    tpu.vector_store %arg5[%c0_8, %c0_9], %11 {strides = array<i32>} : memref<256x8xbf16, #tpu.memory_space<vmem>>, vector<256x8xbf16>,
    return
  }
  func.func @transform_0(%arg0: i32) -> (i32, i32) {
    %c0_i32 = arith.constant 0 : i32
    %c0_i32_0 = arith.constant 0 : i32
    return %arg0, %c0_i32 : i32, i32
  }
  func.func @transform_1(%arg0: i32) -> (i32, i32) {
    %c0_i32 = arith.constant 0 : i32
    %c0_i32_0 = arith.constant 0 : i32
    %c0_i32_1 = arith.constant 0 : i32
    return %c0_i32, %c0_i32_0 : i32, i32
  }
  func.func @transform_2(%arg0: i32) -> (i32, i32) {
    %c0_i32 = arith.constant 0 : i32
    %c0_i32_0 = arith.constant 0 : i32
    %c0_i32_1 = arith.constant 0 : i32
    return %c0_i32, %c0_i32_0 : i32, i32
  }
  func.func @transform_3(%arg0: i32) -> (i32, i32) {
    %c0_i32 = arith.constant 0 : i32
    %c0_i32_0 = arith.constant 0 : i32
    return %arg0, %c0_i32 : i32, i32
  }
  func.func @transform_4(%arg0: i32) -> (i32, i32) {
    %c0_i32 = arith.constant 0 : i32
    %c0_i32_0 = arith.constant 0 : i32
    return %arg0, %c0_i32 : i32, i32
  }
}

module attributes {stable_mosaic.version = 11 : i64} {
  func.func @_conv_matmul_kernel(%arg0: i32, %arg1: memref<128x128xbf16, #tpu.memory_space<vmem>>, %arg2: memref<128x16xbf16, #tpu.memory_space<vmem>>, %arg3: memref<1x16xf32, #tpu.memory_space<vmem>>, %arg4: memref<128x16xbf16, #tpu.memory_space<vmem>>) attributes {dimension_semantics = [#tpu.dimension_semantics<parallel>], iteration_bounds = array<i64: 1>, scalar_prefetch = 0 : i64, scratch_operands = 0 : i64, tpu.core_type = #tpu.core_type<tc>, window_params = [{transform_indices = @transform_0, window_bounds = array<i64: 128, 128>}, {pipeline_mode = #tpu.pipeline_mode<synchronous>, transform_indices = @transform_1, window_bounds = array<i64: 128, 16>}, {pipeline_mode = #tpu.pipeline_mode<synchronous>, transform_indices = @transform_2, window_bounds = array<i64: 1, 16>}, {transform_indices = @transform_3, window_bounds = array<i64: 128, 16>}]} {
    %c0 = arith.constant 0 : index
    %c0_0 = arith.constant 0 : index
    %0 = vector.load %arg1[%c0, %c0_0] : memref<128x128xbf16, #tpu.memory_space<vmem>>, vector<128x128xbf16>
    %c0_1 = arith.constant 0 : index
    %c0_2 = arith.constant 0 : index
    %1 = vector.load %arg2[%c0_1, %c0_2] : memref<128x16xbf16, #tpu.memory_space<vmem>>, vector<128x16xbf16>
    %cst = arith.constant dense<0.000000e+00> : vector<128x16xf32>
    %2 = tpu.matmul %0, %1, %cst {dimension_numbers = #tpu.dot_dimension_numbers<[1], [0], [0], [1], [0, 0, 1, 1], [], []>} : vector<128x128xbf16>, vector<128x16xbf16>, vector<128x16xf32> -> vector<128x16xf32>
    %c0_3 = arith.constant 0 : index
    %c0_4 = arith.constant 0 : index
    %3 = vector.load %arg3[%c0_3, %c0_4] : memref<1x16xf32, #tpu.memory_space<vmem>>, vector<1x16xf32>
    %4 = vector.broadcast %3 : vector<1x16xf32> to vector<128x16xf32>
    %5 = arith.addf %2, %4 : vector<128x16xf32>
    %cst_5 = arith.constant 0.000000e+00 : f32
    %6 = vector.broadcast %cst_5 : f32 to vector<128x16xf32>
    %7 = arith.maximumf %5, %6 : vector<128x16xf32>
    %8 = arith.truncf %7 : vector<128x16xf32> to vector<128x16xbf16>
    %c0_6 = arith.constant 0 : index
    %c0_7 = arith.constant 0 : index
    %9 = vector.load %arg4[%c0_6, %c0_7] : memref<128x16xbf16, #tpu.memory_space<vmem>>, vector<128x16xbf16>
    tpu.vector_store %arg4[%c0_6, %c0_7], %8 {strides = array<i32>} : memref<128x16xbf16, #tpu.memory_space<vmem>>, vector<128x16xbf16>,
    return
  }
  func.func @transform_0(%arg0: i32) -> (i32, i32) {
    %c0_i32 = arith.constant 0 : i32
    %c0_i32_0 = arith.constant 0 : i32
    return %arg0, %c0_i32 : i32, i32
  }
  func.func @transform_1(%arg0: i32) -> (i32, i32) {
    %c0_i32 = arith.constant 0 : i32
    %c0_i32_0 = arith.constant 0 : i32
    %c0_i32_1 = arith.constant 0 : i32
    return %c0_i32, %c0_i32_0 : i32, i32
  }
  func.func @transform_2(%arg0: i32) -> (i32, i32) {
    %c0_i32 = arith.constant 0 : i32
    %c0_i32_0 = arith.constant 0 : i32
    %c0_i32_1 = arith.constant 0 : i32
    return %c0_i32, %c0_i32_0 : i32, i32
  }
  func.func @transform_3(%arg0: i32) -> (i32, i32) {
    %c0_i32 = arith.constant 0 : i32
    %c0_i32_0 = arith.constant 0 : i32
    return %arg0, %c0_i32 : i32, i32
  }
}

module attributes {stable_mosaic.version = 11 : i64} {
  func.func @_conv_matmul_kernel(%arg0: i32, %arg1: memref<128x128xbf16, #tpu.memory_space<vmem>>, %arg2: memref<128x16xbf16, #tpu.memory_space<vmem>>, %arg3: memref<1x16xf32, #tpu.memory_space<vmem>>, %arg4: memref<128x16xbf16, #tpu.memory_space<vmem>>) attributes {dimension_semantics = [#tpu.dimension_semantics<parallel>], iteration_bounds = array<i64: 1>, scalar_prefetch = 0 : i64, scratch_operands = 0 : i64, tpu.core_type = #tpu.core_type<tc>, window_params = [{transform_indices = @transform_0, window_bounds = array<i64: 128, 128>}, {pipeline_mode = #tpu.pipeline_mode<synchronous>, transform_indices = @transform_1, window_bounds = array<i64: 128, 16>}, {pipeline_mode = #tpu.pipeline_mode<synchronous>, transform_indices = @transform_2, window_bounds = array<i64: 1, 16>}, {transform_indices = @transform_3, window_bounds = array<i64: 128, 16>}]} {
    %c0 = arith.constant 0 : index
    %c0_0 = arith.constant 0 : index
    %0 = vector.load %arg1[%c0, %c0_0] : memref<128x128xbf16, #tpu.memory_space<vmem>>, vector<128x128xbf16>
    %c0_1 = arith.constant 0 : index
    %c0_2 = arith.constant 0 : index
    %1 = vector.load %arg2[%c0_1, %c0_2] : memref<128x16xbf16, #tpu.memory_space<vmem>>, vector<128x16xbf16>
    %cst = arith.constant dense<0.000000e+00> : vector<128x16xf32>
    %2 = tpu.matmul %0, %1, %cst {dimension_numbers = #tpu.dot_dimension_numbers<[1], [0], [0], [1], [0, 0, 1, 1], [], []>} : vector<128x128xbf16>, vector<128x16xbf16>, vector<128x16xf32> -> vector<128x16xf32>
    %c0_3 = arith.constant 0 : index
    %c0_4 = arith.constant 0 : index
    %3 = vector.load %arg3[%c0_3, %c0_4] : memref<1x16xf32, #tpu.memory_space<vmem>>, vector<1x16xf32>
    %4 = vector.broadcast %3 : vector<1x16xf32> to vector<128x16xf32>
    %5 = arith.addf %2, %4 : vector<128x16xf32>
    %6 = arith.truncf %5 : vector<128x16xf32> to vector<128x16xbf16>
    %c0_5 = arith.constant 0 : index
    %c0_6 = arith.constant 0 : index
    %7 = vector.load %arg4[%c0_5, %c0_6] : memref<128x16xbf16, #tpu.memory_space<vmem>>, vector<128x16xbf16>
    tpu.vector_store %arg4[%c0_5, %c0_6], %6 {strides = array<i32>} : memref<128x16xbf16, #tpu.memory_space<vmem>>, vector<128x16xbf16>,
    return
  }
  func.func @transform_0(%arg0: i32) -> (i32, i32) {
    %c0_i32 = arith.constant 0 : i32
    %c0_i32_0 = arith.constant 0 : i32
    return %arg0, %c0_i32 : i32, i32
  }
  func.func @transform_1(%arg0: i32) -> (i32, i32) {
    %c0_i32 = arith.constant 0 : i32
    %c0_i32_0 = arith.constant 0 : i32
    %c0_i32_1 = arith.constant 0 : i32
    return %c0_i32, %c0_i32_0 : i32, i32
  }
  func.func @transform_2(%arg0: i32) -> (i32, i32) {
    %c0_i32 = arith.constant 0 : i32
    %c0_i32_0 = arith.constant 0 : i32
    %c0_i32_1 = arith.constant 0 : i32
    return %c0_i32, %c0_i32_0 : i32, i32
  }
  func.func @transform_3(%arg0: i32) -> (i32, i32) {
    %c0_i32 = arith.constant 0 : i32
    %c0_i32_0 = arith.constant 0 : i32
    return %arg0, %c0_i32 : i32, i32
  }
}

module attributes {stable_mosaic.version = 11 : i64} {
  func.func @_conv_matmul_kernel(%arg0: i32, %arg1: memref<128x256xbf16, #tpu.memory_space<vmem>>, %arg2: memref<256x16xbf16, #tpu.memory_space<vmem>>, %arg3: memref<1x16xf32, #tpu.memory_space<vmem>>, %arg4: memref<128x16xbf16, #tpu.memory_space<vmem>>) attributes {dimension_semantics = [#tpu.dimension_semantics<parallel>], iteration_bounds = array<i64: 1>, scalar_prefetch = 0 : i64, scratch_operands = 0 : i64, tpu.core_type = #tpu.core_type<tc>, window_params = [{transform_indices = @transform_0, window_bounds = array<i64: 128, 256>}, {pipeline_mode = #tpu.pipeline_mode<synchronous>, transform_indices = @transform_1, window_bounds = array<i64: 256, 16>}, {pipeline_mode = #tpu.pipeline_mode<synchronous>, transform_indices = @transform_2, window_bounds = array<i64: 1, 16>}, {transform_indices = @transform_3, window_bounds = array<i64: 128, 16>}]} {
    %c0 = arith.constant 0 : index
    %c0_0 = arith.constant 0 : index
    %0 = vector.load %arg1[%c0, %c0_0] : memref<128x256xbf16, #tpu.memory_space<vmem>>, vector<128x256xbf16>
    %c0_1 = arith.constant 0 : index
    %c0_2 = arith.constant 0 : index
    %1 = vector.load %arg2[%c0_1, %c0_2] : memref<256x16xbf16, #tpu.memory_space<vmem>>, vector<256x16xbf16>
    %cst = arith.constant dense<0.000000e+00> : vector<128x16xf32>
    %2 = tpu.matmul %0, %1, %cst {dimension_numbers = #tpu.dot_dimension_numbers<[1], [0], [0], [1], [0, 0, 1, 1], [], []>} : vector<128x256xbf16>, vector<256x16xbf16>, vector<128x16xf32> -> vector<128x16xf32>
    %c0_3 = arith.constant 0 : index
    %c0_4 = arith.constant 0 : index
    %3 = vector.load %arg3[%c0_3, %c0_4] : memref<1x16xf32, #tpu.memory_space<vmem>>, vector<1x16xf32>
    %4 = vector.broadcast %3 : vector<1x16xf32> to vector<128x16xf32>
    %5 = arith.addf %2, %4 : vector<128x16xf32>
    %cst_5 = arith.constant 0.000000e+00 : f32
    %6 = vector.broadcast %cst_5 : f32 to vector<128x16xf32>
    %7 = arith.maximumf %5, %6 : vector<128x16xf32>
    %8 = arith.truncf %7 : vector<128x16xf32> to vector<128x16xbf16>
    %c0_6 = arith.constant 0 : index
    %c0_7 = arith.constant 0 : index
    %9 = vector.load %arg4[%c0_6, %c0_7] : memref<128x16xbf16, #tpu.memory_space<vmem>>, vector<128x16xbf16>
    tpu.vector_store %arg4[%c0_6, %c0_7], %8 {strides = array<i32>} : memref<128x16xbf16, #tpu.memory_space<vmem>>, vector<128x16xbf16>,
    return
  }
  func.func @transform_0(%arg0: i32) -> (i32, i32) {
    %c0_i32 = arith.constant 0 : i32
    %c0_i32_0 = arith.constant 0 : i32
    return %arg0, %c0_i32 : i32, i32
  }
  func.func @transform_1(%arg0: i32) -> (i32, i32) {
    %c0_i32 = arith.constant 0 : i32
    %c0_i32_0 = arith.constant 0 : i32
    %c0_i32_1 = arith.constant 0 : i32
    return %c0_i32, %c0_i32_0 : i32, i32
  }
  func.func @transform_2(%arg0: i32) -> (i32, i32) {
    %c0_i32 = arith.constant 0 : i32
    %c0_i32_0 = arith.constant 0 : i32
    %c0_i32_1 = arith.constant 0 : i32
    return %c0_i32, %c0_i32_0 : i32, i32
  }
  func.func @transform_3(%arg0: i32) -> (i32, i32) {
    %c0_i32 = arith.constant 0 : i32
    %c0_i32_0 = arith.constant 0 : i32
    return %arg0, %c0_i32 : i32, i32
  }
}

module attributes {stable_mosaic.version = 11 : i64} {
  func.func @_conv_matmul_kernel(%arg0: i32, %arg1: memref<128x256xbf16, #tpu.memory_space<vmem>>, %arg2: memref<256x16xbf16, #tpu.memory_space<vmem>>, %arg3: memref<1x16xf32, #tpu.memory_space<vmem>>, %arg4: memref<128x16xbf16, #tpu.memory_space<vmem>>, %arg5: memref<128x16xbf16, #tpu.memory_space<vmem>>) attributes {dimension_semantics = [#tpu.dimension_semantics<parallel>], iteration_bounds = array<i64: 1>, scalar_prefetch = 0 : i64, scratch_operands = 0 : i64, tpu.core_type = #tpu.core_type<tc>, window_params = [{transform_indices = @transform_0, window_bounds = array<i64: 128, 256>}, {pipeline_mode = #tpu.pipeline_mode<synchronous>, transform_indices = @transform_1, window_bounds = array<i64: 256, 16>}, {pipeline_mode = #tpu.pipeline_mode<synchronous>, transform_indices = @transform_2, window_bounds = array<i64: 1, 16>}, {transform_indices = @transform_3, window_bounds = array<i64: 128, 16>}, {transform_indices = @transform_4, window_bounds = array<i64: 128, 16>}]} {
    %c0 = arith.constant 0 : index
    %c0_0 = arith.constant 0 : index
    %0 = vector.load %arg1[%c0, %c0_0] : memref<128x256xbf16, #tpu.memory_space<vmem>>, vector<128x256xbf16>
    %c0_1 = arith.constant 0 : index
    %c0_2 = arith.constant 0 : index
    %1 = vector.load %arg2[%c0_1, %c0_2] : memref<256x16xbf16, #tpu.memory_space<vmem>>, vector<256x16xbf16>
    %cst = arith.constant dense<0.000000e+00> : vector<128x16xf32>
    %2 = tpu.matmul %0, %1, %cst {dimension_numbers = #tpu.dot_dimension_numbers<[1], [0], [0], [1], [0, 0, 1, 1], [], []>} : vector<128x256xbf16>, vector<256x16xbf16>, vector<128x16xf32> -> vector<128x16xf32>
    %c0_3 = arith.constant 0 : index
    %c0_4 = arith.constant 0 : index
    %3 = vector.load %arg3[%c0_3, %c0_4] : memref<1x16xf32, #tpu.memory_space<vmem>>, vector<1x16xf32>
    %4 = vector.broadcast %3 : vector<1x16xf32> to vector<128x16xf32>
    %5 = arith.addf %2, %4 : vector<128x16xf32>
    %c0_5 = arith.constant 0 : index
    %c0_6 = arith.constant 0 : index
    %6 = vector.load %arg4[%c0_5, %c0_6] : memref<128x16xbf16, #tpu.memory_space<vmem>>, vector<128x16xbf16>
    %7 = arith.extf %6 : vector<128x16xbf16> to vector<128x16xf32>
    %8 = arith.addf %5, %7 : vector<128x16xf32>
    %cst_7 = arith.constant 0.000000e+00 : f32
    %9 = vector.broadcast %cst_7 : f32 to vector<128x16xf32>
    %10 = arith.maximumf %8, %9 : vector<128x16xf32>
    %11 = arith.truncf %10 : vector<128x16xf32> to vector<128x16xbf16>
    %c0_8 = arith.constant 0 : index
    %c0_9 = arith.constant 0 : index
    %12 = vector.load %arg5[%c0_8, %c0_9] : memref<128x16xbf16, #tpu.memory_space<vmem>>, vector<128x16xbf16>
    tpu.vector_store %arg5[%c0_8, %c0_9], %11 {strides = array<i32>} : memref<128x16xbf16, #tpu.memory_space<vmem>>, vector<128x16xbf16>,
    return
  }
  func.func @transform_0(%arg0: i32) -> (i32, i32) {
    %c0_i32 = arith.constant 0 : i32
    %c0_i32_0 = arith.constant 0 : i32
    return %arg0, %c0_i32 : i32, i32
  }
  func.func @transform_1(%arg0: i32) -> (i32, i32) {
    %c0_i32 = arith.constant 0 : i32
    %c0_i32_0 = arith.constant 0 : i32
    %c0_i32_1 = arith.constant 0 : i32
    return %c0_i32, %c0_i32_0 : i32, i32
  }
  func.func @transform_2(%arg0: i32) -> (i32, i32) {
    %c0_i32 = arith.constant 0 : i32
    %c0_i32_0 = arith.constant 0 : i32
    %c0_i32_1 = arith.constant 0 : i32
    return %c0_i32, %c0_i32_0 : i32, i32
  }
  func.func @transform_3(%arg0: i32) -> (i32, i32) {
    %c0_i32 = arith.constant 0 : i32
    %c0_i32_0 = arith.constant 0 : i32
    return %arg0, %c0_i32 : i32, i32
  }
  func.func @transform_4(%arg0: i32) -> (i32, i32) {
    %c0_i32 = arith.constant 0 : i32
    %c0_i32_0 = arith.constant 0 : i32
    return %arg0, %c0_i32 : i32, i32
  }
}

module attributes {stable_mosaic.version = 11 : i64} {
  func.func @_conv_matmul_kernel(%arg0: i32, %arg1: memref<32x256xbf16, #tpu.memory_space<vmem>>, %arg2: memref<256x32xbf16, #tpu.memory_space<vmem>>, %arg3: memref<1x32xf32, #tpu.memory_space<vmem>>, %arg4: memref<32x32xbf16, #tpu.memory_space<vmem>>) attributes {dimension_semantics = [#tpu.dimension_semantics<parallel>], iteration_bounds = array<i64: 1>, scalar_prefetch = 0 : i64, scratch_operands = 0 : i64, tpu.core_type = #tpu.core_type<tc>, window_params = [{transform_indices = @transform_0, window_bounds = array<i64: 32, 256>}, {pipeline_mode = #tpu.pipeline_mode<synchronous>, transform_indices = @transform_1, window_bounds = array<i64: 256, 32>}, {pipeline_mode = #tpu.pipeline_mode<synchronous>, transform_indices = @transform_2, window_bounds = array<i64: 1, 32>}, {transform_indices = @transform_3, window_bounds = array<i64: 32, 32>}]} {
    %c0 = arith.constant 0 : index
    %c0_0 = arith.constant 0 : index
    %0 = vector.load %arg1[%c0, %c0_0] : memref<32x256xbf16, #tpu.memory_space<vmem>>, vector<32x256xbf16>
    %c0_1 = arith.constant 0 : index
    %c0_2 = arith.constant 0 : index
    %1 = vector.load %arg2[%c0_1, %c0_2] : memref<256x32xbf16, #tpu.memory_space<vmem>>, vector<256x32xbf16>
    %cst = arith.constant dense<0.000000e+00> : vector<32x32xf32>
    %2 = tpu.matmul %0, %1, %cst {dimension_numbers = #tpu.dot_dimension_numbers<[1], [0], [0], [1], [0, 0, 1, 1], [], []>} : vector<32x256xbf16>, vector<256x32xbf16>, vector<32x32xf32> -> vector<32x32xf32>
    %c0_3 = arith.constant 0 : index
    %c0_4 = arith.constant 0 : index
    %3 = vector.load %arg3[%c0_3, %c0_4] : memref<1x32xf32, #tpu.memory_space<vmem>>, vector<1x32xf32>
    %4 = vector.broadcast %3 : vector<1x32xf32> to vector<32x32xf32>
    %5 = arith.addf %2, %4 : vector<32x32xf32>
    %cst_5 = arith.constant 0.000000e+00 : f32
    %6 = vector.broadcast %cst_5 : f32 to vector<32x32xf32>
    %7 = arith.maximumf %5, %6 : vector<32x32xf32>
    %8 = arith.truncf %7 : vector<32x32xf32> to vector<32x32xbf16>
    %c0_6 = arith.constant 0 : index
    %c0_7 = arith.constant 0 : index
    %9 = vector.load %arg4[%c0_6, %c0_7] : memref<32x32xbf16, #tpu.memory_space<vmem>>, vector<32x32xbf16>
    tpu.vector_store %arg4[%c0_6, %c0_7], %8 {strides = array<i32>} : memref<32x32xbf16, #tpu.memory_space<vmem>>, vector<32x32xbf16>,
    return
  }
  func.func @transform_0(%arg0: i32) -> (i32, i32) {
    %c0_i32 = arith.constant 0 : i32
    %c0_i32_0 = arith.constant 0 : i32
    return %arg0, %c0_i32 : i32, i32
  }
  func.func @transform_1(%arg0: i32) -> (i32, i32) {
    %c0_i32 = arith.constant 0 : i32
    %c0_i32_0 = arith.constant 0 : i32
    %c0_i32_1 = arith.constant 0 : i32
    return %c0_i32, %c0_i32_0 : i32, i32
  }
  func.func @transform_2(%arg0: i32) -> (i32, i32) {
    %c0_i32 = arith.constant 0 : i32
    %c0_i32_0 = arith.constant 0 : i32
    %c0_i32_1 = arith.constant 0 : i32
    return %c0_i32, %c0_i32_0 : i32, i32
  }
  func.func @transform_3(%arg0: i32) -> (i32, i32) {
    %c0_i32 = arith.constant 0 : i32
    %c0_i32_0 = arith.constant 0 : i32
    return %arg0, %c0_i32 : i32, i32
  }
}

module attributes {stable_mosaic.version = 11 : i64} {
  func.func @_conv_matmul_kernel(%arg0: i32, %arg1: memref<32x128xbf16, #tpu.memory_space<vmem>>, %arg2: memref<128x32xbf16, #tpu.memory_space<vmem>>, %arg3: memref<1x32xf32, #tpu.memory_space<vmem>>, %arg4: memref<32x32xbf16, #tpu.memory_space<vmem>>) attributes {dimension_semantics = [#tpu.dimension_semantics<parallel>], iteration_bounds = array<i64: 1>, scalar_prefetch = 0 : i64, scratch_operands = 0 : i64, tpu.core_type = #tpu.core_type<tc>, window_params = [{transform_indices = @transform_0, window_bounds = array<i64: 32, 128>}, {pipeline_mode = #tpu.pipeline_mode<synchronous>, transform_indices = @transform_1, window_bounds = array<i64: 128, 32>}, {pipeline_mode = #tpu.pipeline_mode<synchronous>, transform_indices = @transform_2, window_bounds = array<i64: 1, 32>}, {transform_indices = @transform_3, window_bounds = array<i64: 32, 32>}]} {
    %c0 = arith.constant 0 : index
    %c0_0 = arith.constant 0 : index
    %0 = vector.load %arg1[%c0, %c0_0] : memref<32x128xbf16, #tpu.memory_space<vmem>>, vector<32x128xbf16>
    %c0_1 = arith.constant 0 : index
    %c0_2 = arith.constant 0 : index
    %1 = vector.load %arg2[%c0_1, %c0_2] : memref<128x32xbf16, #tpu.memory_space<vmem>>, vector<128x32xbf16>
    %cst = arith.constant dense<0.000000e+00> : vector<32x32xf32>
    %2 = tpu.matmul %0, %1, %cst {dimension_numbers = #tpu.dot_dimension_numbers<[1], [0], [0], [1], [0, 0, 1, 1], [], []>} : vector<32x128xbf16>, vector<128x32xbf16>, vector<32x32xf32> -> vector<32x32xf32>
    %c0_3 = arith.constant 0 : index
    %c0_4 = arith.constant 0 : index
    %3 = vector.load %arg3[%c0_3, %c0_4] : memref<1x32xf32, #tpu.memory_space<vmem>>, vector<1x32xf32>
    %4 = vector.broadcast %3 : vector<1x32xf32> to vector<32x32xf32>
    %5 = arith.addf %2, %4 : vector<32x32xf32>
    %6 = arith.truncf %5 : vector<32x32xf32> to vector<32x32xbf16>
    %c0_5 = arith.constant 0 : index
    %c0_6 = arith.constant 0 : index
    %7 = vector.load %arg4[%c0_5, %c0_6] : memref<32x32xbf16, #tpu.memory_space<vmem>>, vector<32x32xbf16>
    tpu.vector_store %arg4[%c0_5, %c0_6], %6 {strides = array<i32>} : memref<32x32xbf16, #tpu.memory_space<vmem>>, vector<32x32xbf16>,
    return
  }
  func.func @transform_0(%arg0: i32) -> (i32, i32) {
    %c0_i32 = arith.constant 0 : i32
    %c0_i32_0 = arith.constant 0 : i32
    return %arg0, %c0_i32 : i32, i32
  }
  func.func @transform_1(%arg0: i32) -> (i32, i32) {
    %c0_i32 = arith.constant 0 : i32
    %c0_i32_0 = arith.constant 0 : i32
    %c0_i32_1 = arith.constant 0 : i32
    return %c0_i32, %c0_i32_0 : i32, i32
  }
  func.func @transform_2(%arg0: i32) -> (i32, i32) {
    %c0_i32 = arith.constant 0 : i32
    %c0_i32_0 = arith.constant 0 : i32
    %c0_i32_1 = arith.constant 0 : i32
    return %c0_i32, %c0_i32_0 : i32, i32
  }
  func.func @transform_3(%arg0: i32) -> (i32, i32) {
    %c0_i32 = arith.constant 0 : i32
    %c0_i32_0 = arith.constant 0 : i32
    return %arg0, %c0_i32 : i32, i32
  }
}

module attributes {stable_mosaic.version = 11 : i64} {
  func.func @_conv_matmul_kernel(%arg0: i32, %arg1: memref<32x384xbf16, #tpu.memory_space<vmem>>, %arg2: memref<384x32xbf16, #tpu.memory_space<vmem>>, %arg3: memref<1x32xf32, #tpu.memory_space<vmem>>, %arg4: memref<32x32xbf16, #tpu.memory_space<vmem>>) attributes {dimension_semantics = [#tpu.dimension_semantics<parallel>], iteration_bounds = array<i64: 1>, scalar_prefetch = 0 : i64, scratch_operands = 0 : i64, tpu.core_type = #tpu.core_type<tc>, window_params = [{transform_indices = @transform_0, window_bounds = array<i64: 32, 384>}, {pipeline_mode = #tpu.pipeline_mode<synchronous>, transform_indices = @transform_1, window_bounds = array<i64: 384, 32>}, {pipeline_mode = #tpu.pipeline_mode<synchronous>, transform_indices = @transform_2, window_bounds = array<i64: 1, 32>}, {transform_indices = @transform_3, window_bounds = array<i64: 32, 32>}]} {
    %c0 = arith.constant 0 : index
    %c0_0 = arith.constant 0 : index
    %0 = vector.load %arg1[%c0, %c0_0] : memref<32x384xbf16, #tpu.memory_space<vmem>>, vector<32x384xbf16>
    %c0_1 = arith.constant 0 : index
    %c0_2 = arith.constant 0 : index
    %1 = vector.load %arg2[%c0_1, %c0_2] : memref<384x32xbf16, #tpu.memory_space<vmem>>, vector<384x32xbf16>
    %cst = arith.constant dense<0.000000e+00> : vector<32x32xf32>
    %2 = tpu.matmul %0, %1, %cst {dimension_numbers = #tpu.dot_dimension_numbers<[1], [0], [0], [1], [0, 0, 1, 1], [], []>} : vector<32x384xbf16>, vector<384x32xbf16>, vector<32x32xf32> -> vector<32x32xf32>
    %c0_3 = arith.constant 0 : index
    %c0_4 = arith.constant 0 : index
    %3 = vector.load %arg3[%c0_3, %c0_4] : memref<1x32xf32, #tpu.memory_space<vmem>>, vector<1x32xf32>
    %4 = vector.broadcast %3 : vector<1x32xf32> to vector<32x32xf32>
    %5 = arith.addf %2, %4 : vector<32x32xf32>
    %cst_5 = arith.constant 0.000000e+00 : f32
    %6 = vector.broadcast %cst_5 : f32 to vector<32x32xf32>
    %7 = arith.maximumf %5, %6 : vector<32x32xf32>
    %8 = arith.truncf %7 : vector<32x32xf32> to vector<32x32xbf16>
    %c0_6 = arith.constant 0 : index
    %c0_7 = arith.constant 0 : index
    %9 = vector.load %arg4[%c0_6, %c0_7] : memref<32x32xbf16, #tpu.memory_space<vmem>>, vector<32x32xbf16>
    tpu.vector_store %arg4[%c0_6, %c0_7], %8 {strides = array<i32>} : memref<32x32xbf16, #tpu.memory_space<vmem>>, vector<32x32xbf16>,
    return
  }
  func.func @transform_0(%arg0: i32) -> (i32, i32) {
    %c0_i32 = arith.constant 0 : i32
    %c0_i32_0 = arith.constant 0 : i32
    return %arg0, %c0_i32 : i32, i32
  }
  func.func @transform_1(%arg0: i32) -> (i32, i32) {
    %c0_i32 = arith.constant 0 : i32
    %c0_i32_0 = arith.constant 0 : i32
    %c0_i32_1 = arith.constant 0 : i32
    return %c0_i32, %c0_i32_0 : i32, i32
  }
  func.func @transform_2(%arg0: i32) -> (i32, i32) {
    %c0_i32 = arith.constant 0 : i32
    %c0_i32_0 = arith.constant 0 : i32
    %c0_i32_1 = arith.constant 0 : i32
    return %c0_i32, %c0_i32_0 : i32, i32
  }
  func.func @transform_3(%arg0: i32) -> (i32, i32) {
    %c0_i32 = arith.constant 0 : i32
    %c0_i32_0 = arith.constant 0 : i32
    return %arg0, %c0_i32 : i32, i32
  }
}

module attributes {stable_mosaic.version = 11 : i64} {
  func.func @_conv_matmul_kernel(%arg0: i32, %arg1: memref<32x384xbf16, #tpu.memory_space<vmem>>, %arg2: memref<384x32xbf16, #tpu.memory_space<vmem>>, %arg3: memref<1x32xf32, #tpu.memory_space<vmem>>, %arg4: memref<32x32xbf16, #tpu.memory_space<vmem>>, %arg5: memref<32x32xbf16, #tpu.memory_space<vmem>>) attributes {dimension_semantics = [#tpu.dimension_semantics<parallel>], iteration_bounds = array<i64: 1>, scalar_prefetch = 0 : i64, scratch_operands = 0 : i64, tpu.core_type = #tpu.core_type<tc>, window_params = [{transform_indices = @transform_0, window_bounds = array<i64: 32, 384>}, {pipeline_mode = #tpu.pipeline_mode<synchronous>, transform_indices = @transform_1, window_bounds = array<i64: 384, 32>}, {pipeline_mode = #tpu.pipeline_mode<synchronous>, transform_indices = @transform_2, window_bounds = array<i64: 1, 32>}, {transform_indices = @transform_3, window_bounds = array<i64: 32, 32>}, {transform_indices = @transform_4, window_bounds = array<i64: 32, 32>}]} {
    %c0 = arith.constant 0 : index
    %c0_0 = arith.constant 0 : index
    %0 = vector.load %arg1[%c0, %c0_0] : memref<32x384xbf16, #tpu.memory_space<vmem>>, vector<32x384xbf16>
    %c0_1 = arith.constant 0 : index
    %c0_2 = arith.constant 0 : index
    %1 = vector.load %arg2[%c0_1, %c0_2] : memref<384x32xbf16, #tpu.memory_space<vmem>>, vector<384x32xbf16>
    %cst = arith.constant dense<0.000000e+00> : vector<32x32xf32>
    %2 = tpu.matmul %0, %1, %cst {dimension_numbers = #tpu.dot_dimension_numbers<[1], [0], [0], [1], [0, 0, 1, 1], [], []>} : vector<32x384xbf16>, vector<384x32xbf16>, vector<32x32xf32> -> vector<32x32xf32>
    %c0_3 = arith.constant 0 : index
    %c0_4 = arith.constant 0 : index
    %3 = vector.load %arg3[%c0_3, %c0_4] : memref<1x32xf32, #tpu.memory_space<vmem>>, vector<1x32xf32>
    %4 = vector.broadcast %3 : vector<1x32xf32> to vector<32x32xf32>
    %5 = arith.addf %2, %4 : vector<32x32xf32>
    %c0_5 = arith.constant 0 : index
    %c0_6 = arith.constant 0 : index
    %6 = vector.load %arg4[%c0_5, %c0_6] : memref<32x32xbf16, #tpu.memory_space<vmem>>, vector<32x32xbf16>
    %7 = arith.extf %6 : vector<32x32xbf16> to vector<32x32xf32>
    %8 = arith.addf %5, %7 : vector<32x32xf32>
    %cst_7 = arith.constant 0.000000e+00 : f32
    %9 = vector.broadcast %cst_7 : f32 to vector<32x32xf32>
    %10 = arith.maximumf %8, %9 : vector<32x32xf32>
    %11 = arith.truncf %10 : vector<32x32xf32> to vector<32x32xbf16>
    %c0_8 = arith.constant 0 : index
    %c0_9 = arith.constant 0 : index
    %12 = vector.load %arg5[%c0_8, %c0_9] : memref<32x32xbf16, #tpu.memory_space<vmem>>, vector<32x32xbf16>
    tpu.vector_store %arg5[%c0_8, %c0_9], %11 {strides = array<i32>} : memref<32x32xbf16, #tpu.memory_space<vmem>>, vector<32x32xbf16>,
    return
  }
  func.func @transform_0(%arg0: i32) -> (i32, i32) {
    %c0_i32 = arith.constant 0 : i32
    %c0_i32_0 = arith.constant 0 : i32
    return %arg0, %c0_i32 : i32, i32
  }
  func.func @transform_1(%arg0: i32) -> (i32, i32) {
    %c0_i32 = arith.constant 0 : i32
    %c0_i32_0 = arith.constant 0 : i32
    %c0_i32_1 = arith.constant 0 : i32
    return %c0_i32, %c0_i32_0 : i32, i32
  }
  func.func @transform_2(%arg0: i32) -> (i32, i32) {
    %c0_i32 = arith.constant 0 : i32
    %c0_i32_0 = arith.constant 0 : i32
    %c0_i32_1 = arith.constant 0 : i32
    return %c0_i32, %c0_i32_0 : i32, i32
  }
  func.func @transform_3(%arg0: i32) -> (i32, i32) {
    %c0_i32 = arith.constant 0 : i32
    %c0_i32_0 = arith.constant 0 : i32
    return %arg0, %c0_i32 : i32, i32
  }
  func.func @transform_4(%arg0: i32) -> (i32, i32) {
    %c0_i32 = arith.constant 0 : i32
    %c0_i32_0 = arith.constant 0 : i32
    return %arg0, %c0_i32 : i32, i32
  }
}

module attributes {stable_mosaic.version = 11 : i64} {
  func.func @_conv_matmul_kernel(%arg0: i32, %arg1: memref<8x384xbf16, #tpu.memory_space<vmem>>, %arg2: memref<384x64xbf16, #tpu.memory_space<vmem>>, %arg3: memref<1x64xf32, #tpu.memory_space<vmem>>, %arg4: memref<8x64xbf16, #tpu.memory_space<vmem>>) attributes {dimension_semantics = [#tpu.dimension_semantics<parallel>], iteration_bounds = array<i64: 1>, scalar_prefetch = 0 : i64, scratch_operands = 0 : i64, tpu.core_type = #tpu.core_type<tc>, window_params = [{transform_indices = @transform_0, window_bounds = array<i64: 8, 384>}, {pipeline_mode = #tpu.pipeline_mode<synchronous>, transform_indices = @transform_1, window_bounds = array<i64: 384, 64>}, {pipeline_mode = #tpu.pipeline_mode<synchronous>, transform_indices = @transform_2, window_bounds = array<i64: 1, 64>}, {transform_indices = @transform_3, window_bounds = array<i64: 8, 64>}]} {
    %c0 = arith.constant 0 : index
    %c0_0 = arith.constant 0 : index
    %0 = vector.load %arg1[%c0, %c0_0] : memref<8x384xbf16, #tpu.memory_space<vmem>>, vector<8x384xbf16>
    %c0_1 = arith.constant 0 : index
    %c0_2 = arith.constant 0 : index
    %1 = vector.load %arg2[%c0_1, %c0_2] : memref<384x64xbf16, #tpu.memory_space<vmem>>, vector<384x64xbf16>
    %cst = arith.constant dense<0.000000e+00> : vector<8x64xf32>
    %2 = tpu.matmul %0, %1, %cst {dimension_numbers = #tpu.dot_dimension_numbers<[1], [0], [0], [1], [0, 0, 1, 1], [], []>} : vector<8x384xbf16>, vector<384x64xbf16>, vector<8x64xf32> -> vector<8x64xf32>
    %c0_3 = arith.constant 0 : index
    %c0_4 = arith.constant 0 : index
    %3 = vector.load %arg3[%c0_3, %c0_4] : memref<1x64xf32, #tpu.memory_space<vmem>>, vector<1x64xf32>
    %4 = vector.broadcast %3 : vector<1x64xf32> to vector<8x64xf32>
    %5 = arith.addf %2, %4 : vector<8x64xf32>
    %cst_5 = arith.constant 0.000000e+00 : f32
    %6 = vector.broadcast %cst_5 : f32 to vector<8x64xf32>
    %7 = arith.maximumf %5, %6 : vector<8x64xf32>
    %8 = arith.truncf %7 : vector<8x64xf32> to vector<8x64xbf16>
    %c0_6 = arith.constant 0 : index
    %c0_7 = arith.constant 0 : index
    %9 = vector.load %arg4[%c0_6, %c0_7] : memref<8x64xbf16, #tpu.memory_space<vmem>>, vector<8x64xbf16>
    tpu.vector_store %arg4[%c0_6, %c0_7], %8 {strides = array<i32>} : memref<8x64xbf16, #tpu.memory_space<vmem>>, vector<8x64xbf16>,
    return
  }
  func.func @transform_0(%arg0: i32) -> (i32, i32) {
    %c0_i32 = arith.constant 0 : i32
    %c0_i32_0 = arith.constant 0 : i32
    return %arg0, %c0_i32 : i32, i32
  }
  func.func @transform_1(%arg0: i32) -> (i32, i32) {
    %c0_i32 = arith.constant 0 : i32
    %c0_i32_0 = arith.constant 0 : i32
    %c0_i32_1 = arith.constant 0 : i32
    return %c0_i32, %c0_i32_0 : i32, i32
  }
  func.func @transform_2(%arg0: i32) -> (i32, i32) {
    %c0_i32 = arith.constant 0 : i32
    %c0_i32_0 = arith.constant 0 : i32
    %c0_i32_1 = arith.constant 0 : i32
    return %c0_i32, %c0_i32_0 : i32, i32
  }
  func.func @transform_3(%arg0: i32) -> (i32, i32) {
    %c0_i32 = arith.constant 0 : i32
    %c0_i32_0 = arith.constant 0 : i32
    return %arg0, %c0_i32 : i32, i32
  }
}

module attributes {stable_mosaic.version = 11 : i64} {
  func.func @_conv_matmul_kernel(%arg0: i32, %arg1: memref<8x128xbf16, #tpu.memory_space<vmem>>, %arg2: memref<128x64xbf16, #tpu.memory_space<vmem>>, %arg3: memref<1x64xf32, #tpu.memory_space<vmem>>, %arg4: memref<8x64xbf16, #tpu.memory_space<vmem>>) attributes {dimension_semantics = [#tpu.dimension_semantics<parallel>], iteration_bounds = array<i64: 1>, scalar_prefetch = 0 : i64, scratch_operands = 0 : i64, tpu.core_type = #tpu.core_type<tc>, window_params = [{transform_indices = @transform_0, window_bounds = array<i64: 8, 128>}, {pipeline_mode = #tpu.pipeline_mode<synchronous>, transform_indices = @transform_1, window_bounds = array<i64: 128, 64>}, {pipeline_mode = #tpu.pipeline_mode<synchronous>, transform_indices = @transform_2, window_bounds = array<i64: 1, 64>}, {transform_indices = @transform_3, window_bounds = array<i64: 8, 64>}]} {
    %c0 = arith.constant 0 : index
    %c0_0 = arith.constant 0 : index
    %0 = vector.load %arg1[%c0, %c0_0] : memref<8x128xbf16, #tpu.memory_space<vmem>>, vector<8x128xbf16>
    %c0_1 = arith.constant 0 : index
    %c0_2 = arith.constant 0 : index
    %1 = vector.load %arg2[%c0_1, %c0_2] : memref<128x64xbf16, #tpu.memory_space<vmem>>, vector<128x64xbf16>
    %cst = arith.constant dense<0.000000e+00> : vector<8x64xf32>
    %2 = tpu.matmul %0, %1, %cst {dimension_numbers = #tpu.dot_dimension_numbers<[1], [0], [0], [1], [0, 0, 1, 1], [], []>} : vector<8x128xbf16>, vector<128x64xbf16>, vector<8x64xf32> -> vector<8x64xf32>
    %c0_3 = arith.constant 0 : index
    %c0_4 = arith.constant 0 : index
    %3 = vector.load %arg3[%c0_3, %c0_4] : memref<1x64xf32, #tpu.memory_space<vmem>>, vector<1x64xf32>
    %4 = vector.broadcast %3 : vector<1x64xf32> to vector<8x64xf32>
    %5 = arith.addf %2, %4 : vector<8x64xf32>
    %6 = arith.truncf %5 : vector<8x64xf32> to vector<8x64xbf16>
    %c0_5 = arith.constant 0 : index
    %c0_6 = arith.constant 0 : index
    %7 = vector.load %arg4[%c0_5, %c0_6] : memref<8x64xbf16, #tpu.memory_space<vmem>>, vector<8x64xbf16>
    tpu.vector_store %arg4[%c0_5, %c0_6], %6 {strides = array<i32>} : memref<8x64xbf16, #tpu.memory_space<vmem>>, vector<8x64xbf16>,
    return
  }
  func.func @transform_0(%arg0: i32) -> (i32, i32) {
    %c0_i32 = arith.constant 0 : i32
    %c0_i32_0 = arith.constant 0 : i32
    return %arg0, %c0_i32 : i32, i32
  }
  func.func @transform_1(%arg0: i32) -> (i32, i32) {
    %c0_i32 = arith.constant 0 : i32
    %c0_i32_0 = arith.constant 0 : i32
    %c0_i32_1 = arith.constant 0 : i32
    return %c0_i32, %c0_i32_0 : i32, i32
  }
  func.func @transform_2(%arg0: i32) -> (i32, i32) {
    %c0_i32 = arith.constant 0 : i32
    %c0_i32_0 = arith.constant 0 : i32
    %c0_i32_1 = arith.constant 0 : i32
    return %c0_i32, %c0_i32_0 : i32, i32
  }
  func.func @transform_3(%arg0: i32) -> (i32, i32) {
    %c0_i32 = arith.constant 0 : i32
    %c0_i32_0 = arith.constant 0 : i32
    return %arg0, %c0_i32 : i32, i32
  }
}

module attributes {stable_mosaic.version = 11 : i64} {
  func.func @_conv_matmul_kernel(%arg0: i32, %arg1: memref<8x640xbf16, #tpu.memory_space<vmem>>, %arg2: memref<640x64xbf16, #tpu.memory_space<vmem>>, %arg3: memref<1x64xf32, #tpu.memory_space<vmem>>, %arg4: memref<8x64xbf16, #tpu.memory_space<vmem>>) attributes {dimension_semantics = [#tpu.dimension_semantics<parallel>], iteration_bounds = array<i64: 1>, scalar_prefetch = 0 : i64, scratch_operands = 0 : i64, tpu.core_type = #tpu.core_type<tc>, window_params = [{transform_indices = @transform_0, window_bounds = array<i64: 8, 640>}, {pipeline_mode = #tpu.pipeline_mode<synchronous>, transform_indices = @transform_1, window_bounds = array<i64: 640, 64>}, {pipeline_mode = #tpu.pipeline_mode<synchronous>, transform_indices = @transform_2, window_bounds = array<i64: 1, 64>}, {transform_indices = @transform_3, window_bounds = array<i64: 8, 64>}]} {
    %c0 = arith.constant 0 : index
    %c0_0 = arith.constant 0 : index
    %0 = vector.load %arg1[%c0, %c0_0] : memref<8x640xbf16, #tpu.memory_space<vmem>>, vector<8x640xbf16>
    %c0_1 = arith.constant 0 : index
    %c0_2 = arith.constant 0 : index
    %1 = vector.load %arg2[%c0_1, %c0_2] : memref<640x64xbf16, #tpu.memory_space<vmem>>, vector<640x64xbf16>
    %cst = arith.constant dense<0.000000e+00> : vector<8x64xf32>
    %2 = tpu.matmul %0, %1, %cst {dimension_numbers = #tpu.dot_dimension_numbers<[1], [0], [0], [1], [0, 0, 1, 1], [], []>} : vector<8x640xbf16>, vector<640x64xbf16>, vector<8x64xf32> -> vector<8x64xf32>
    %c0_3 = arith.constant 0 : index
    %c0_4 = arith.constant 0 : index
    %3 = vector.load %arg3[%c0_3, %c0_4] : memref<1x64xf32, #tpu.memory_space<vmem>>, vector<1x64xf32>
    %4 = vector.broadcast %3 : vector<1x64xf32> to vector<8x64xf32>
    %5 = arith.addf %2, %4 : vector<8x64xf32>
    %cst_5 = arith.constant 0.000000e+00 : f32
    %6 = vector.broadcast %cst_5 : f32 to vector<8x64xf32>
    %7 = arith.maximumf %5, %6 : vector<8x64xf32>
    %8 = arith.truncf %7 : vector<8x64xf32> to vector<8x64xbf16>
    %c0_6 = arith.constant 0 : index
    %c0_7 = arith.constant 0 : index
    %9 = vector.load %arg4[%c0_6, %c0_7] : memref<8x64xbf16, #tpu.memory_space<vmem>>, vector<8x64xbf16>
    tpu.vector_store %arg4[%c0_6, %c0_7], %8 {strides = array<i32>} : memref<8x64xbf16, #tpu.memory_space<vmem>>, vector<8x64xbf16>,
    return
  }
  func.func @transform_0(%arg0: i32) -> (i32, i32) {
    %c0_i32 = arith.constant 0 : i32
    %c0_i32_0 = arith.constant 0 : i32
    return %arg0, %c0_i32 : i32, i32
  }
  func.func @transform_1(%arg0: i32) -> (i32, i32) {
    %c0_i32 = arith.constant 0 : i32
    %c0_i32_0 = arith.constant 0 : i32
    %c0_i32_1 = arith.constant 0 : i32
    return %c0_i32, %c0_i32_0 : i32, i32
  }
  func.func @transform_2(%arg0: i32) -> (i32, i32) {
    %c0_i32 = arith.constant 0 : i32
    %c0_i32_0 = arith.constant 0 : i32
    %c0_i32_1 = arith.constant 0 : i32
    return %c0_i32, %c0_i32_0 : i32, i32
  }
  func.func @transform_3(%arg0: i32) -> (i32, i32) {
    %c0_i32 = arith.constant 0 : i32
    %c0_i32_0 = arith.constant 0 : i32
    return %arg0, %c0_i32 : i32, i32
  }
}

module attributes {stable_mosaic.version = 11 : i64} {
  func.func @_avgpool_kernel(%arg0: memref<2x4x64xbf16, #tpu.memory_space<vmem>>, %arg1: memref<2x64xf32, #tpu.memory_space<vmem>>) attributes {dimension_semantics = [], scalar_prefetch = 0 : i64, scratch_operands = 0 : i64, tpu.core_type = #tpu.core_type<tc>} {
    %c0 = arith.constant 0 : index
    %c0_0 = arith.constant 0 : index
    %c0_1 = arith.constant 0 : index
    %0 = vector.load %arg0[%c0, %c0_0, %c0_1] : memref<2x4x64xbf16, #tpu.memory_space<vmem>>, vector<2x4x64xbf16>
    %1 = arith.extf %0 : vector<2x4x64xbf16> to vector<2x4x64xf32>
    %cst = arith.constant dense<0.000000e+00> : vector<2x64xf32>
    %2 = vector.multi_reduction <add>, %1, %cst [1] : vector<2x4x64xf32> to vector<2x64xf32>
    %cst_2 = arith.constant 2.500000e-01 : f32
    %3 = vector.broadcast %cst_2 : f32 to vector<2x64xf32>
    %4 = arith.mulf %2, %3 : vector<2x64xf32>
    %c0_3 = arith.constant 0 : index
    %c0_4 = arith.constant 0 : index
    %5 = vector.load %arg1[%c0_3, %c0_4] : memref<2x64xf32, #tpu.memory_space<vmem>>, vector<2x64xf32>
    tpu.vector_store %arg1[%c0_3, %c0_4], %4 {strides = array<i32>} : memref<2x64xf32, #tpu.memory_space<vmem>>, vector<2x64xf32>,
    return
  }
}

module attributes {stable_mosaic.version = 11 : i64} {
  func.func @_conv_matmul_kernel(%arg0: i32, %arg1: memref<8x640xbf16, #tpu.memory_space<vmem>>, %arg2: memref<640x64xbf16, #tpu.memory_space<vmem>>, %arg3: memref<1x64xf32, #tpu.memory_space<vmem>>, %arg4: memref<8x64xbf16, #tpu.memory_space<vmem>>, %arg5: memref<8x64xbf16, #tpu.memory_space<vmem>>) attributes {dimension_semantics = [#tpu.dimension_semantics<parallel>], iteration_bounds = array<i64: 1>, scalar_prefetch = 0 : i64, scratch_operands = 0 : i64, tpu.core_type = #tpu.core_type<tc>, window_params = [{transform_indices = @transform_0, window_bounds = array<i64: 8, 640>}, {pipeline_mode = #tpu.pipeline_mode<synchronous>, transform_indices = @transform_1, window_bounds = array<i64: 640, 64>}, {pipeline_mode = #tpu.pipeline_mode<synchronous>, transform_indices = @transform_2, window_bounds = array<i64: 1, 64>}, {transform_indices = @transform_3, window_bounds = array<i64: 8, 64>}, {transform_indices = @transform_4, window_bounds = array<i64: 8, 64>}]} {
    %c0 = arith.constant 0 : index
    %c0_0 = arith.constant 0 : index
    %0 = vector.load %arg1[%c0, %c0_0] : memref<8x640xbf16, #tpu.memory_space<vmem>>, vector<8x640xbf16>
    %c0_1 = arith.constant 0 : index
    %c0_2 = arith.constant 0 : index
    %1 = vector.load %arg2[%c0_1, %c0_2] : memref<640x64xbf16, #tpu.memory_space<vmem>>, vector<640x64xbf16>
    %cst = arith.constant dense<0.000000e+00> : vector<8x64xf32>
    %2 = tpu.matmul %0, %1, %cst {dimension_numbers = #tpu.dot_dimension_numbers<[1], [0], [0], [1], [0, 0, 1, 1], [], []>} : vector<8x640xbf16>, vector<640x64xbf16>, vector<8x64xf32> -> vector<8x64xf32>
    %c0_3 = arith.constant 0 : index
    %c0_4 = arith.constant 0 : index
    %3 = vector.load %arg3[%c0_3, %c0_4] : memref<1x64xf32, #tpu.memory_space<vmem>>, vector<1x64xf32>
    %4 = vector.broadcast %3 : vector<1x64xf32> to vector<8x64xf32>
    %5 = arith.addf %2, %4 : vector<8x64xf32>
    %c0_5 = arith.constant 0 : index
    %c0_6 = arith.constant 0 : index
    %6 = vector.load %arg4[%c0_5, %c0_6] : memref<8x64xbf16, #tpu.memory_space<vmem>>, vector<8x64xbf16>
    %7 = arith.extf %6 : vector<8x64xbf16> to vector<8x64xf32>
    %8 = arith.addf %5, %7 : vector<8x64xf32>
    %cst_7 = arith.constant 0.000000e+00 : f32
    %9 = vector.broadcast %cst_7 : f32 to vector<8x64xf32>
    %10 = arith.maximumf %8, %9 : vector<8x64xf32>
    %11 = arith.truncf %10 : vector<8x64xf32> to vector<8x64xbf16>
    %c0_8 = arith.constant 0 : index
    %c0_9 = arith.constant 0 : index
    %12 = vector.load %arg5[%c0_8, %c0_9] : memref<8x64xbf16, #tpu.memory_space<vmem>>, vector<8x64xbf16>
    tpu.vector_store %arg5[%c0_8, %c0_9], %11 {strides = array<i32>} : memref<8x64xbf16, #tpu.memory_space<vmem>>, vector<8x64xbf16>,
    return
  }
  func.func @transform_0(%arg0: i32) -> (i32, i32) {
    %c0_i32 = arith.constant 0 : i32
    %c0_i32_0 = arith.constant 0 : i32
    return %arg0, %c0_i32 : i32, i32
  }
  func.func @transform_1(%arg0: i32) -> (i32, i32) {
    %c0_i32 = arith.constant 0 : i32
    %c0_i32_0 = arith.constant 0 : i32
    %c0_i32_1 = arith.constant 0 : i32
    return %c0_i32, %c0_i32_0 : i32, i32
  }
  func.func @transform_2(%arg0: i32) -> (i32, i32) {
    %c0_i32 = arith.constant 0 : i32
    %c0_i32_0 = arith.constant 0 : i32
    %c0_i32_1 = arith.constant 0 : i32
    return %c0_i32, %c0_i32_0 : i32, i32
  }
  func.func @transform_3(%arg0: i32) -> (i32, i32) {
    %c0_i32 = arith.constant 0 : i32
    %c0_i32_0 = arith.constant 0 : i32
    return %arg0, %c0_i32 : i32, i32
  }
  func.func @transform_4(%arg0: i32) -> (i32, i32) {
    %c0_i32 = arith.constant 0 : i32
    %c0_i32_0 = arith.constant 0 : i32
    return %arg0, %c0_i32 : i32, i32
  }
}

</mosaic_0001>

<bundles_post_ra>
// kernel: net_forward.22
= control target key start
LH: loop header
LB: loop body
LE: loop exit
PB: predicated region body
PF: predicated region fallthrough
CT: control target
= control target key end

     0   :  { %s1269_s12 = smov 0   ;;  %s1475_s0 = inlined_call_operand.vmem [shape: bf16[2048,256], index: 0, kind: input, shape index: {}]   ;;  %s1476_s1 = inlined_call_operand.vmem [shape: bf16[256,8], index: 1, kind: input, shape index: {}]   ;;  %s1477_s2 = inlined_call_operand.vmem [shape: f32[1,8], index: 2, kind: input, shape index: {}]   ;;  %s1478_s3 = inlined_call_operand.vmem [shape: bf16[2048,8], index: 3, kind: output, shape index: {}]  }
   0x1 LB: > { %s915_s13 = sadd.s32 4294967295, %s1247_s12   ;;  %p919_p0 = scmp.ge.s32.totalorder %s1247_s12, 1  ;;  %s1247_s12 = sphi %s1269_s12, %s13_s12  }
   0x2   : > { %p139_p1 = scmp.lt.s32.totalorder %s1247_s12, 9 }
   0x4   : > { %p140_p2 = pnand %p919_p0, %p139_p1 }
   0x5   : > { %s920_s16 = sshll.u32 (!%p140_p2), %s915_s13, 5 }
   0x6   : > { %143 = sbr.rel (%p140_p2) target bundleno = 308 (0x134), region = 32  ;;  %p165_p3 = scmp.lt.s32.totalorder (!%p140_p2), %s920_s16, 255 }
   0xb   : > { %v1177_v0 = vld [vmem:[%s1476_s1 + $0x78] sm:$0xff]   ;;  %v1179_v2 = vld [vmem:[%s1476_s1 + $0x70] sm:$0xff]   ;;  %v1181_v4 = vld [vmem:[%s1476_s1 + $0x68] sm:$0xff]   ;;  %s1480_s16 = smov (!%p165_p3, %s920_s16), 255  ;;  %vm826_vm0 = vcmask 60416  }
   0xc   : > { %v1178_v1 = vld [vmem:[%s1476_s1 + $0x38] sm:$0xff]   ;;  %1041 = vmatprep.subr.bf16.mxu0 %v1177_v0  ;;  %1153 = vmatprep.subr.bf16.mxu1 %v1177_v0  ;;  %v1180_v3 = vld [vmem:[%s1476_s1 + $0x30] sm:$0xff]   ;;  %v1182_v5 = vld [vmem:[%s1476_s1 + $0x28] sm:$0xff]   ;;  %s1008_s4 = sshll.u32 %s1480_s16, 3  ;;  %s924_s28 = sshll.u32 %s1480_s16, 2 }
   0xd   : > { %1042 = vmatpush3.bf16.msra.mxu0 %v1178_v1  ;;  %1161 = vmatpush3.bf16.msra.mxu1 %v1178_v1  ;;  %v1183_v6 = vld [vmem:[%s1476_s1 + $0x60] sm:$0xff]   ;;  %v1185_v8 = vld [vmem:[%s1476_s1 + $0x58] sm:$0xff]   ;;  %s1310_s9 = scalar_lea.vmem %s1475_s0, %s1008_s4  ;;  %v1187_v10 = vld [vmem:[%s1476_s1 + $0x50] sm:$0xff]   ;;  %s1376_s4 = scalar_lea.vmem %s1478_s3, %s924_s28 }
   0xe   : > { %1043 = vmatprep.subr.bf16.mxu0 %v1179_v2  ;;  %1154 = vmatprep.subr.bf16.mxu1 %v1179_v2  ;;  %v1184_v7 = vld [vmem:[%s1476_s1 + $0x20] sm:$0xff]   ;;  %v1186_v9 = vld [vmem:[%s1476_s1 + $0x18] sm:$0xff]   ;;  %v1188_v13 = vld [vmem:[%s1476_s1 + $0x10] sm:$0xff]  }
   0xf   : > { %v1195_v11 = vld [vmem:[%s1310_s9 + $0x4] ss:$8 sps:$4 sm:$0xff]   ;;  %v1193_v18 = vld [vmem:[%s1310_s9] ss:$8 sps:$4 sm:$0xff]   ;;  %v1199_v20 = vld [vmem:[%s1310_s9 + $0x14] ss:$8 sps:$4 sm:$0xff]  }
  0x10   : > { %v1198_v12 = vld [vmem:[%s1310_s9 + $0x84] ss:$8 sps:$4 sm:$0xff]   ;;  %537 = vmatprep.mubr.bf16.mxu0 %v1195_v11  ;;  %v1196_v19 = vld [vmem:[%s1310_s9 + $0x80] ss:$8 sps:$4 sm:$0xff]   ;;  %v1201_v21 = vld [vmem:[%s1310_s9 + $0x94] ss:$8 sps:$4 sm:$0xff]  }
  0x11   : > { %1044 = vmatpush3.bf16.msra.mxu0 %v1180_v3  ;;  %1162 = vmatpush3.bf16.msra.mxu1 %v1180_v3  ;;  %v1189_v14 = vld [vmem:[%s1476_s1 + $0x48] sm:$0xff]   ;;  %v1191_v16 = vld [vmem:[%s1476_s1 + $0x40] sm:$0xff]   ;;  %v1203_v22 = vld [vmem:[%s1310_s9 + $0x10] ss:$8 sps:$4 sm:$0xff]  }
  0x12   : > { %1045 = vmatprep.subr.bf16.mxu0 %v1181_v4  ;;  %1155 = vmatprep.subr.bf16.mxu1 %v1181_v4  ;;  %v1190_v15 = vld [vmem:[%s1476_s1 + $0x8] sm:$0xff]   ;;  %v1192_v17 = vld [vmem:[%s1476_s1] sm:$0xff]   ;;  %v1204_v23 = vld [vmem:[%s1310_s9 + $0x90] ss:$8 sps:$4 sm:$0xff]  }
  0x13   : > { %601 = vmatprep.mubr.bf16.mxu1 %v1198_v12  ;;  %v1205_v24 = vld [vmem:[%s1310_s9 + $0x24] ss:$8 sps:$4 sm:$0xff]   ;;  %v1209_v26 = vld [vmem:[%s1310_s9 + $0x20] ss:$8 sps:$4 sm:$0xff]   ;;  %v1211_v28 = vld [vmem:[%s1310_s9 + $0x34] ss:$8 sps:$4 sm:$0xff]  }
  0x14   : > { %v1207_v25 = vld [vmem:[%s1310_s9 + $0xa4] ss:$8 sps:$4 sm:$0xff]   ;;  %v1210_v27 = vld [vmem:[%s1310_s9 + $0xa0] ss:$8 sps:$4 sm:$0xff]   ;;  %v1213_v29 = vld [vmem:[%s1310_s9 + $0xb4] ss:$8 sps:$4 sm:$0xff]  }
  0x15   : > { %1046 = vmatpush3.bf16.msra.mxu0 %v1182_v5  ;;  %1163 = vmatpush3.bf16.msra.mxu1 %v1182_v5  ;;  %v1215_v30 = vld [vmem:[%s1310_s9 + $0x30] ss:$8 sps:$4 sm:$0xff]   ;;  %v1217_v32 = vld [vmem:[%s1310_s9 + $0x44] ss:$8 sps:$4 sm:$0xff]   ;;  %v1221_v34 = vld [vmem:[%s1310_s9 + $0x40] ss:$8 sps:$4 sm:$0xff]  }
  0x16   : > { %1047 = vmatprep.subr.bf16.mxu0 %v1183_v6  ;;  %1156 = vmatprep.subr.bf16.mxu1 %v1183_v6  ;;  %v1216_v31 = vld [vmem:[%s1310_s9 + $0xb0] ss:$8 sps:$4 sm:$0xff]   ;;  %v1219_v33 = vld [vmem:[%s1310_s9 + $0xc4] ss:$8 sps:$4 sm:$0xff]   ;;  %v1222_v35 = vld [vmem:[%s1310_s9 + $0xc0] ss:$8 sps:$4 sm:$0xff]  }
  0x17   : > { %v1223_v36 = vld [vmem:[%s1310_s9 + $0x54] ss:$8 sps:$4 sm:$0xff]   ;;  %v1227_v38 = vld [vmem:[%s1310_s9 + $0x50] ss:$8 sps:$4 sm:$0xff]   ;;  %v1229_v40 = vld [vmem:[%s1310_s9 + $0x64] ss:$8 sps:$4 sm:$0xff]  }
  0x18   : > { %v1225_v37 = vld [vmem:[%s1310_s9 + $0xd4] ss:$8 sps:$4 sm:$0xff]   ;;  %v1228_v39 = vld [vmem:[%s1310_s9 + $0xd0] ss:$8 sps:$4 sm:$0xff]   ;;  %v1231_v41 = vld [vmem:[%s1310_s9 + $0xe4] ss:$8 sps:$4 sm:$0xff]  }
  0x19   : > { %1048 = vmatpush3.bf16.msra.mxu0 %v1184_v7  ;;  %1164 = vmatpush3.bf16.msra.mxu1 %v1184_v7  ;;  %v1233_v42 = vld [vmem:[%s1310_s9 + $0x60] ss:$8 sps:$4 sm:$0xff]   ;;  %v1235_v44 = vld [vmem:[%s1310_s9 + $0x74] ss:$8 sps:$4 sm:$0xff]   ;;  %v1239_v46 = vld [vmem:[%s1310_s9 + $0x70] ss:$8 sps:$4 sm:$0xff]  }
  0x1a   : > { %1049 = vmatprep.subr.bf16.mxu0 %v1185_v8  ;;  %1157 = vmatprep.subr.bf16.mxu1 %v1185_v8  ;;  %v1234_v43 = vld [vmem:[%s1310_s9 + $0xe0] ss:$8 sps:$4 sm:$0xff]   ;;  %v1237_v45 = vld [vmem:[%s1310_s9 + $0xf4] ss:$8 sps:$4 sm:$0xff]   ;;  %v1240_v47 = vld [vmem:[%s1310_s9 + $0xf0] ss:$8 sps:$4 sm:$0xff]  }
  0x1b   : > { %v1368_v50 = vld [vmem:[%s1477_s2] ss:$0 sm:$0xff] }
  0x1d   : > { %1050 = vmatpush3.bf16.msra.mxu0 %v1186_v9  ;;  %1165 = vmatpush3.bf16.msra.mxu1 %v1186_v9 }
  0x1e   : > { %1051 = vmatprep.subr.bf16.mxu0 %v1187_v10  ;;  %1158 = vmatprep.subr.bf16.mxu1 %v1187_v10 }
  0x21   : > { %1052 = vmatpush3.bf16.msra.mxu0 %v1188_v13  ;;  %1166 = vmatpush3.bf16.msra.mxu1 %v1188_v13 }
  0x22   : > { %1053 = vmatprep.subr.bf16.mxu0 %v1189_v14  ;;  %1159 = vmatprep.subr.bf16.mxu1 %v1189_v14 }
  0x25   : > { %1054 = vmatpush3.bf16.msra.mxu0 %v1190_v15  ;;  %1167 = vmatpush3.bf16.msra.mxu1 %v1190_v15 }
  0x26   : > { %1055 = vmatprep.subr.bf16.mxu0 %v1191_v16  ;;  %1160 = vmatprep.subr.bf16.mxu1 %v1191_v16 }
  0x29   : > { %1056 = vmatpush3.bf16.msra.mxu0 %v1192_v17  ;;  %1168 = vmatpush3.bf16.msra.mxu1 %v1192_v17 }
  0x2c   : > { %538 = vmatmul.mubr.bf16.vlgmr.msra.gmra.mxu0 %v1193_v18  ;;  %602 = vmatmul.mubr.bf16.vlgmr.msra.gmra.mxu1 %v1196_v19 }
  0x2d   : > { %545 = vmatprep.mubr.bf16.mxu0 %v1199_v20  ;;  %609 = vmatprep.mubr.bf16.mxu1 %v1201_v21 }
  0x34   : > { %546 = vmatmul.mubr.bf16.gmra.mxu0 %v1203_v22  ;;  %610 = vmatmul.mubr.bf16.gmra.mxu1 %v1204_v23 }
  0x35   : > { %553 = vmatprep.mubr.bf16.mxu0 %v1205_v24  ;;  %617 = vmatprep.mubr.bf16.mxu1 %v1207_v25 }
  0x3c   : > { %554 = vmatmul.mubr.bf16.gmra.mxu0 %v1209_v26  ;;  %618 = vmatmul.mubr.bf16.gmra.mxu1 %v1210_v27 }
  0x3d   : > { %561 = vmatprep.mubr.bf16.mxu0 %v1211_v28  ;;  %625 = vmatprep.mubr.bf16.mxu1 %v1213_v29 }
  0x44   : > { %562 = vmatmul.mubr.bf16.gmra.mxu0 %v1215_v30  ;;  %626 = vmatmul.mubr.bf16.gmra.mxu1 %v1216_v31 }
  0x45   : > { %569 = vmatprep.mubr.bf16.mxu0 %v1217_v32  ;;  %633 = vmatprep.mubr.bf16.mxu1 %v1219_v33 }
  0x4c   : > { %570 = vmatmul.mubr.bf16.gmra.mxu0 %v1221_v34  ;;  %634 = vmatmul.mubr.bf16.gmra.mxu1 %v1222_v35 }
  0x4d   : > { %577 = vmatprep.mubr.bf16.mxu0 %v1223_v36  ;;  %641 = vmatprep.mubr.bf16.mxu1 %v1225_v37 }
  0x54   : > { %578 = vmatmul.mubr.bf16.gmra.mxu0 %v1227_v38  ;;  %642 = vmatmul.mubr.bf16.gmra.mxu1 %v1228_v39 }
  0x55   : > { %585 = vmatprep.mubr.bf16.mxu0 %v1229_v40  ;;  %649 = vmatprep.mubr.bf16.mxu1 %v1231_v41 }
  0x5c   : > { %586 = vmatmul.mubr.bf16.gmra.mxu0 %v1233_v42  ;;  %650 = vmatmul.mubr.bf16.gmra.mxu1 %v1234_v43 }
  0x5d   : > { %593 = vmatprep.mubr.bf16.mxu0 %v1235_v44  ;;  %657 = vmatprep.mubr.bf16.mxu1 %v1237_v45 }
  0x64   : > { %594 = vmatmul.mubr.bf16.gmra.mxu0 %v1239_v46  ;;  %658 = vmatmul.mubr.bf16.gmra.mxu1 %v1240_v47 }
  0xec   : > { %v1057_v48 = vpop.f32.mrf.mxu0  ;;  %v1105_v49 = vpop.f32.mrf.mxu1 }
  0xee   : > { %v1058_v51 = vpop.f32.mrf.mxu0  ;;  %v1106_v52 = vpop.f32.mrf.mxu1 }
  0xef   : > { %v1059_v53 = vadd.f32 %v1058_v51, %v1057_v48  ;;  %v1107_v54 = vadd.f32 %v1106_v52, %v1105_v49 }
  0xf0   : > { %v1060_v55 = vpop.f32.mrf.mxu0  ;;  %v1108_v56 = vpop.f32.mrf.mxu1 }
  0xf1   : > { %v540_v57 = vadd.f32 %v1059_v53, %v1368_v50  ;;  %v604_v58 = vadd.f32 %v1107_v54, %v1368_v50 }
  0xf2   : > { %v1061_v59 = vpop.f32.mrf.mxu0  ;;  %v1109_v60 = vpop.f32.mrf.mxu1 }
  0xf3   : > { %v666_v61 = vmax.f32 %v540_v57, 0.0  ;;  %v682_v62 = vmax.f32 %v604_v58, 0.0  ;;  %v1062_v63 = vadd.f32 %v1061_v59, %v1060_v55  ;;  %v1110_v0 = vadd.f32 %v1109_v60, %v1108_v56 }
  0xf4   : > { %v1063_v1 = vpop.f32.mrf.mxu0  ;;  %v1111_v2 = vpop.f32.mrf.mxu1 }
  0xf5   : > { %v1009_v3 = vpack.c.bf16 %v666_v61, %v666_v61  ;;  %v1025_v4 = vpack.c.bf16 %v682_v62, %v682_v62  ;;  %v543_v5 = vadd.f32 %v1062_v63, %v1368_v50  ;;  %v607_v6 = vadd.f32 %v1110_v0, %v1368_v50 }
  0xf6   : > { %v1064_v7 = vpop.f32.mrf.mxu0  ;;  %v1112_v8 = vpop.f32.mrf.mxu1 }
  0xf7   : > { %827 = vst.msk [vmem:[%s1376_s4] sm:$0xf] %vm826_vm0, %v1009_v3  ;;  %843 = vst.msk [vmem:[%s1376_s4 + $0x40] sm:$0xf] %vm826_vm0, %v1025_v4  ;;  %v667_v9 = vmax.f32 %v543_v5, 0.0  ;;  %v683_v10 = vmax.f32 %v607_v6, 0.0  ;;  %v1065_v11 = vadd.f32 %v1064_v7, %v1063_v1  ;;  %v1113_v12 = vadd.f32 %v1112_v8, %v1111_v2 }
  0xf8   : > { %v1066_v13 = vpop.f32.mrf.mxu0  ;;  %v1114_v14 = vpop.f32.mrf.mxu1 }
  0xf9   : > { %v1010_v15 = vpack.c.bf16 %v667_v9, %v667_v9  ;;  %v1026_v16 = vpack.c.bf16 %v683_v10, %v683_v10  ;;  %v548_v17 = vadd.f32 %v1065_v11, %v1368_v50  ;;  %v612_v18 = vadd.f32 %v1113_v12, %v1368_v50 }
  0xfa   : > { %v1067_v19 = vpop.f32.mrf.mxu0  ;;  %v1115_v20 = vpop.f32.mrf.mxu1 }
  0xfb   : > { %828 = vst.msk [vmem:[%s1376_s4 + $0x4] sm:$0xf] %vm826_vm0, %v1010_v15  ;;  %844 = vst.msk [vmem:[%s1376_s4 + $0x44] sm:$0xf] %vm826_vm0, %v1026_v16  ;;  %v668_v21 = vmax.f32 %v548_v17, 0.0  ;;  %v684_v22 = vmax.f32 %v612_v18, 0.0  ;;  %v1068_v23 = vadd.f32 %v1067_v19, %v1066_v13  ;;  %v1116_v24 = vadd.f32 %v1115_v20, %v1114_v14 }
  0xfc   : > { %v1069_v25 = vpop.f32.mrf.mxu0  ;;  %v1117_v26 = vpop.f32.mrf.mxu1 }
  0xfd   : > { %v1011_v27 = vpack.c.bf16 %v668_v21, %v668_v21  ;;  %v1027_v28 = vpack.c.bf16 %v684_v22, %v684_v22  ;;  %v551_v29 = vadd.f32 %v1068_v23, %v1368_v50  ;;  %v615_v30 = vadd.f32 %v1116_v24, %v1368_v50 }
  0xfe   : > { %v1070_v31 = vpop.f32.mrf.mxu0  ;;  %v1118_v32 = vpop.f32.mrf.mxu1 }
  0xff   : > { %829 = vst.msk [vmem:[%s1376_s4 + $0x8] sm:$0xf] %vm826_vm0, %v1011_v27  ;;  %845 = vst.msk [vmem:[%s1376_s4 + $0x48] sm:$0xf] %vm826_vm0, %v1027_v28  ;;  %v669_v33 = vmax.f32 %v551_v29, 0.0  ;;  %v685_v34 = vmax.f32 %v615_v30, 0.0  ;;  %v1071_v35 = vadd.f32 %v1070_v31, %v1069_v25  ;;  %v1119_v36 = vadd.f32 %v1118_v32, %v1117_v26 }
 0x100   : > { %v1072_v37 = vpop.f32.mrf.mxu0  ;;  %v1120_v38 = vpop.f32.mrf.mxu1 }
 0x101   : > { %v1012_v39 = vpack.c.bf16 %v669_v33, %v669_v33  ;;  %v1028_v40 = vpack.c.bf16 %v685_v34, %v685_v34  ;;  %v556_v41 = vadd.f32 %v1071_v35, %v1368_v50  ;;  %v620_v42 = vadd.f32 %v1119_v36, %v1368_v50 }
 0x102   : > { %v1073_v43 = vpop.f32.mrf.mxu0  ;;  %v1121_v44 = vpop.f32.mrf.mxu1 }
 0x103   : > { %830 = vst.msk [vmem:[%s1376_s4 + $0xc] sm:$0xf] %vm826_vm0, %v1012_v39  ;;  %846 = vst.msk [vmem:[%s1376_s4 + $0x4c] sm:$0xf] %vm826_vm0, %v1028_v40  ;;  %v670_v45 = vmax.f32 %v556_v41, 0.0  ;;  %v686_v46 = vmax.f32 %v620_v42, 0.0  ;;  %v1074_v47 = vadd.f32 %v1073_v43, %v1072_v37  ;;  %v1122_v48 = vadd.f32 %v1121_v44, %v1120_v38 }
 0x104   : > { %v1075_v49 = vpop.f32.mrf.mxu0  ;;  %v1123_v51 = vpop.f32.mrf.mxu1 }
 0x105   : > { %v1013_v52 = vpack.c.bf16 %v670_v45, %v670_v45  ;;  %v1029_v53 = vpack.c.bf16 %v686_v46, %v686_v46  ;;  %v559_v54 = vadd.f32 %v1074_v47, %v1368_v50  ;;  %v623_v55 = vadd.f32 %v1122_v48, %v1368_v50 }
 0x106   : > { %v1076_v56 = vpop.f32.mrf.mxu0  ;;  %v1124_v57 = vpop.f32.mrf.mxu1 }
 0x107   : > { %831 = vst.msk [vmem:[%s1376_s4 + $0x10] sm:$0xf] %vm826_vm0, %v1013_v52  ;;  %847 = vst.msk [vmem:[%s1376_s4 + $0x50] sm:$0xf] %vm826_vm0, %v1029_v53  ;;  %v671_v58 = vmax.f32 %v559_v54, 0.0  ;;  %v687_v59 = vmax.f32 %v623_v55, 0.0  ;;  %v1077_v60 = vadd.f32 %v1076_v56, %v1075_v49  ;;  %v1125_v61 = vadd.f32 %v1124_v57, %v1123_v51 }
 0x108   : > { %v1078_v62 = vpop.f32.mrf.mxu0  ;;  %v1126_v63 = vpop.f32.mrf.mxu1 }
 0x109   : > { %v1014_v0 = vpack.c.bf16 %v671_v58, %v671_v58  ;;  %v1030_v1 = vpack.c.bf16 %v687_v59, %v687_v59  ;;  %v564_v2 = vadd.f32 %v1077_v60, %v1368_v50  ;;  %v628_v3 = vadd.f32 %v1125_v61, %v1368_v50 }
 0x10a   : > { %v1079_v4 = vpop.f32.mrf.mxu0  ;;  %v1127_v5 = vpop.f32.mrf.mxu1 }
 0x10b   : > { %832 = vst.msk [vmem:[%s1376_s4 + $0x14] sm:$0xf] %vm826_vm0, %v1014_v0  ;;  %848 = vst.msk [vmem:[%s1376_s4 + $0x54] sm:$0xf] %vm826_vm0, %v1030_v1  ;;  %v672_v6 = vmax.f32 %v564_v2, 0.0  ;;  %v688_v7 = vmax.f32 %v628_v3, 0.0  ;;  %v1080_v8 = vadd.f32 %v1079_v4, %v1078_v62  ;;  %v1128_v9 = vadd.f32 %v1127_v5, %v1126_v63 }
 0x10c   : > { %v1081_v10 = vpop.f32.mrf.mxu0  ;;  %v1129_v11 = vpop.f32.mrf.mxu1 }
 0x10d   : > { %v1015_v12 = vpack.c.bf16 %v672_v6, %v672_v6  ;;  %v1031_v13 = vpack.c.bf16 %v688_v7, %v688_v7  ;;  %v567_v14 = vadd.f32 %v1080_v8, %v1368_v50  ;;  %v631_v15 = vadd.f32 %v1128_v9, %v1368_v50 }
 0x10e   : > { %v1082_v16 = vpop.f32.mrf.mxu0  ;;  %v1130_v17 = vpop.f32.mrf.mxu1 }
 0x10f   : > { %833 = vst.msk [vmem:[%s1376_s4 + $0x18] sm:$0xf] %vm826_vm0, %v1015_v12  ;;  %849 = vst.msk [vmem:[%s1376_s4 + $0x58] sm:$0xf] %vm826_vm0, %v1031_v13  ;;  %v673_v18 = vmax.f32 %v567_v14, 0.0  ;;  %v689_v19 = vmax.f32 %v631_v15, 0.0  ;;  %v1083_v20 = vadd.f32 %v1082_v16, %v1081_v10  ;;  %v1131_v21 = vadd.f32 %v1130_v17, %v1129_v11 }
 0x110   : > { %v1084_v22 = vpop.f32.mrf.mxu0  ;;  %v1132_v23 = vpop.f32.mrf.mxu1 }
 0x111   : > { %v1016_v24 = vpack.c.bf16 %v673_v18, %v673_v18  ;;  %v1032_v25 = vpack.c.bf16 %v689_v19, %v689_v19  ;;  %v572_v26 = vadd.f32 %v1083_v20, %v1368_v50  ;;  %v636_v27 = vadd.f32 %v1131_v21, %v1368_v50 }
 0x112   : > { %v1085_v28 = vpop.f32.mrf.mxu0  ;;  %v1133_v29 = vpop.f32.mrf.mxu1 }
 0x113   : > { %834 = vst.msk [vmem:[%s1376_s4 + $0x1c] sm:$0xf] %vm826_vm0, %v1016_v24  ;;  %850 = vst.msk [vmem:[%s1376_s4 + $0x5c] sm:$0xf] %vm826_vm0, %v1032_v25  ;;  %v674_v30 = vmax.f32 %v572_v26, 0.0  ;;  %v690_v31 = vmax.f32 %v636_v27, 0.0  ;;  %v1086_v32 = vadd.f32 %v1085_v28, %v1084_v22  ;;  %v1134_v33 = vadd.f32 %v1133_v29, %v1132_v23 }
 0x114   : > { %v1087_v34 = vpop.f32.mrf.mxu0  ;;  %v1135_v35 = vpop.f32.mrf.mxu1 }
 0x115   : > { %v1017_v36 = vpack.c.bf16 %v674_v30, %v674_v30  ;;  %v1033_v37 = vpack.c.bf16 %v690_v31, %v690_v31  ;;  %v575_v38 = vadd.f32 %v1086_v32, %v1368_v50  ;;  %v639_v39 = vadd.f32 %v1134_v33, %v1368_v50 }
 0x116   : > { %v1088_v40 = vpop.f32.mrf.mxu0  ;;  %v1136_v41 = vpop.f32.mrf.mxu1 }
 0x117   : > { %835 = vst.msk [vmem:[%s1376_s4 + $0x20] sm:$0xf] %vm826_vm0, %v1017_v36  ;;  %851 = vst.msk [vmem:[%s1376_s4 + $0x60] sm:$0xf] %vm826_vm0, %v1033_v37  ;;  %v675_v42 = vmax.f32 %v575_v38, 0.0  ;;  %v691_v43 = vmax.f32 %v639_v39, 0.0  ;;  %v1089_v44 = vadd.f32 %v1088_v40, %v1087_v34  ;;  %v1137_v45 = vadd.f32 %v1136_v41, %v1135_v35 }
 0x118   : > { %v1090_v46 = vpop.f32.mrf.mxu0  ;;  %v1138_v47 = vpop.f32.mrf.mxu1 }
 0x119   : > { %v1018_v48 = vpack.c.bf16 %v675_v42, %v675_v42  ;;  %v1034_v49 = vpack.c.bf16 %v691_v43, %v691_v43  ;;  %v580_v51 = vadd.f32 %v1089_v44, %v1368_v50  ;;  %v644_v52 = vadd.f32 %v1137_v45, %v1368_v50 }
 0x11a   : > { %v1091_v53 = vpop.f32.mrf.mxu0  ;;  %v1139_v54 = vpop.f32.mrf.mxu1 }
 0x11b   : > { %836 = vst.msk [vmem:[%s1376_s4 + $0x24] sm:$0xf] %vm826_vm0, %v1018_v48  ;;  %852 = vst.msk [vmem:[%s1376_s4 + $0x64] sm:$0xf] %vm826_vm0, %v1034_v49  ;;  %v676_v55 = vmax.f32 %v580_v51, 0.0  ;;  %v692_v56 = vmax.f32 %v644_v52, 0.0  ;;  %v1092_v57 = vadd.f32 %v1091_v53, %v1090_v46  ;;  %v1140_v58 = vadd.f32 %v1139_v54, %v1138_v47 }
 0x11c   : > { %v1093_v59 = vpop.f32.mrf.mxu0  ;;  %v1141_v60 = vpop.f32.mrf.mxu1 }
 0x11d   : > { %v1019_v61 = vpack.c.bf16 %v676_v55, %v676_v55  ;;  %v1035_v62 = vpack.c.bf16 %v692_v56, %v692_v56  ;;  %v583_v63 = vadd.f32 %v1092_v57, %v1368_v50  ;;  %v647_v0 = vadd.f32 %v1140_v58, %v1368_v50 }
 0x11e   : > { %v1094_v1 = vpop.f32.mrf.mxu0  ;;  %v1142_v2 = vpop.f32.mrf.mxu1 }
 0x11f   : > { %837 = vst.msk [vmem:[%s1376_s4 + $0x28] sm:$0xf] %vm826_vm0, %v1019_v61  ;;  %853 = vst.msk [vmem:[%s1376_s4 + $0x68] sm:$0xf] %vm826_vm0, %v1035_v62  ;;  %v677_v3 = vmax.f32 %v583_v63, 0.0  ;;  %v693_v4 = vmax.f32 %v647_v0, 0.0  ;;  %v1095_v5 = vadd.f32 %v1094_v1, %v1093_v59  ;;  %v1143_v6 = vadd.f32 %v1142_v2, %v1141_v60 }
 0x120   : > { %v1096_v7 = vpop.f32.mrf.mxu0  ;;  %v1144_v8 = vpop.f32.mrf.mxu1 }
 0x121   : > { %v1020_v9 = vpack.c.bf16 %v677_v3, %v677_v3  ;;  %v1036_v10 = vpack.c.bf16 %v693_v4, %v693_v4  ;;  %v588_v11 = vadd.f32 %v1095_v5, %v1368_v50  ;;  %v652_v12 = vadd.f32 %v1143_v6, %v1368_v50 }
 0x122   : > { %v1097_v13 = vpop.f32.mrf.mxu0  ;;  %v1145_v14 = vpop.f32.mrf.mxu1 }
 0x123   : > { %838 = vst.msk [vmem:[%s1376_s4 + $0x2c] sm:$0xf] %vm826_vm0, %v1020_v9  ;;  %854 = vst.msk [vmem:[%s1376_s4 + $0x6c] sm:$0xf] %vm826_vm0, %v1036_v10  ;;  %v678_v15 = vmax.f32 %v588_v11, 0.0  ;;  %v694_v16 = vmax.f32 %v652_v12, 0.0  ;;  %v1098_v17 = vadd.f32 %v1097_v13, %v1096_v7  ;;  %v1146_v18 = vadd.f32 %v1145_v14, %v1144_v8 }
 0x124   : > { %v1099_v19 = vpop.f32.mrf.mxu0  ;;  %v1147_v20 = vpop.f32.mrf.mxu1 }
 0x125   : > { %v1021_v21 = vpack.c.bf16 %v678_v15, %v678_v15  ;;  %v1037_v22 = vpack.c.bf16 %v694_v16, %v694_v16  ;;  %v591_v23 = vadd.f32 %v1098_v17, %v1368_v50  ;;  %v655_v24 = vadd.f32 %v1146_v18, %v1368_v50 }
 0x126   : > { %v1100_v25 = vpop.f32.mrf.mxu0  ;;  %v1148_v26 = vpop.f32.mrf.mxu1 }
 0x127   : > { %839 = vst.msk [vmem:[%s1376_s4 + $0x30] sm:$0xf] %vm826_vm0, %v1021_v21  ;;  %855 = vst.msk [vmem:[%s1376_s4 + $0x70] sm:$0xf] %vm826_vm0, %v1037_v22  ;;  %v679_v27 = vmax.f32 %v591_v23, 0.0  ;;  %v695_v28 = vmax.f32 %v655_v24, 0.0  ;;  %v1101_v29 = vadd.f32 %v1100_v25, %v1099_v19  ;;  %v1149_v30 = vadd.f32 %v1148_v26, %v1147_v20 }
 0x128   : > { %v1102_v31 = vpop.f32.mrf.mxu0  ;;  %v1150_v32 = vpop.f32.mrf.mxu1 }
 0x129   : > { %v1022_v33 = vpack.c.bf16 %v679_v27, %v679_v27  ;;  %v1038_v34 = vpack.c.bf16 %v695_v28, %v695_v28  ;;  %v596_v35 = vadd.f32 %v1101_v29, %v1368_v50  ;;  %v660_v36 = vadd.f32 %v1149_v30, %v1368_v50 }
 0x12a   : > { %v1103_v37 = vpop.f32.mrf.mxu0  ;;  %v1151_v38 = vpop.f32.mrf.mxu1 }
 0x12b   : > { %840 = vst.msk [vmem:[%s1376_s4 + $0x34] sm:$0xf] %vm826_vm0, %v1022_v33  ;;  %856 = vst.msk [vmem:[%s1376_s4 + $0x74] sm:$0xf] %vm826_vm0, %v1038_v34  ;;  %v680_v39 = vmax.f32 %v596_v35, 0.0  ;;  %v696_v40 = vmax.f32 %v660_v36, 0.0  ;;  %v1104_v41 = vadd.f32 %v1103_v37, %v1102_v31  ;;  %v1152_v42 = vadd.f32 %v1151_v38, %v1150_v32 }
 0x12d   : > { %v1023_v43 = vpack.c.bf16 %v680_v39, %v680_v39  ;;  %v1039_v44 = vpack.c.bf16 %v696_v40, %v696_v40  ;;  %v599_v45 = vadd.f32 %v1104_v41, %v1368_v50  ;;  %v663_v46 = vadd.f32 %v1152_v42, %v1368_v50 }
 0x12f   : > { %841 = vst.msk [vmem:[%s1376_s4 + $0x38] sm:$0xf] %vm826_vm0, %v1023_v43  ;;  %857 = vst.msk [vmem:[%s1376_s4 + $0x78] sm:$0xf] %vm826_vm0, %v1039_v44  ;;  %v681_v47 = vmax.f32 %v599_v45, 0.0  ;;  %v697_v48 = vmax.f32 %v663_v46, 0.0 }
 0x131   : > { %v1024_v49 = vpack.c.bf16 %v681_v47, %v681_v47  ;;  %v1040_v51 = vpack.c.bf16 %v697_v48, %v697_v48 }
 0x133   : > { %842 = vst.msk [vmem:[%s1376_s4 + $0x3c] sm:$0xf] %vm826_vm0, %v1024_v49  ;;  %858 = vst.msk [vmem:[%s1376_s4 + $0x7c] sm:$0xf] %vm826_vm0, %v1040_v51 }
 0x134 PF: > { %s13_s12 = sadd.s32 1, %s1247_s12  }
 0x135   : > { %p10_p4 = scmp.ge.s32.totalorder %s13_s12, 10  }
 0x137   :  { %12 = sbr.rel (!%p10_p4) target bundleno = 1 (0x1), region = 62 }

// kernel: net_forward.23
= control target key start
LH: loop header
LB: loop body
LE: loop exit
PB: predicated region body
PF: predicated region fallthrough
CT: control target
= control target key end

     0   :  { %s464_s6 = smov 0   ;;  %s466_s7 = smov 0   ;;  %s560_s0 = inlined_call_operand.vmem [shape: bf16[9,32,128], index: 0, kind: input, shape index: {}]   ;;  %s561_s1 = inlined_call_operand.vmem [shape: bf16[32,128], index: 1, kind: output, shape index: {}]  }
   0x1   :  { %s468_s8 = smov 0  }
   0x2 LB: > { %s386_s9 = sadd.s32 4294967295, %s452_s8   ;;  %s481_s10 = sadd.s32 1, %s452_s8   ;;  %s452_s8 = sphi %s468_s8, %s564_s8   ;;  %s448_s7 = sphi %s466_s7, %s563_s7   ;;  %s444_s6 = sphi %s464_s6, %s562_s6  }
   0x3   : > { %s15_s11 = ssub.s32 %s452_s8, %s481_s10  ;;  %s18_s12 = sadd.s32 1, %s448_s7 }
   0x4   : > { %p16_p0 = scmp.eq.s32.totalorder %s15_s11, 0  ;;  %p25_p1 = scmp.ne.s32.totalorder %s448_s7, %s444_s6 }
   0x5   : > { %p26_p2 = scmp.eq.s32.totalorder %s452_s8, 0  ;;  %p389_p4 = scmp.ge.s32.totalorder %s452_s8, 2 }
   0x6   : > { %s490_s13 = scalar_select %p16_p0, %s448_s7, %s18_s12  }
   0x7   : > { %p27_p3 = por %p26_p2, %p25_p1  ;;  %77 = sbr.rel (%p389_p4) target bundleno = 21 (0x15), region = 16 }
   0xc   : > { %80 = sbr.rel (!%p27_p3) target bundleno = 21 (0x15), region = 20  ;;  %s82_s14 = sand.u32 (%p27_p3), 1, %s448_s7  }
   0xd   : > { %s397_s15 = sshll.u32 (%p27_p3), %s452_s8, 3  ;;  %s404_s16 = smul.u32 (%p27_p3), 72, %s82_s14 }
   0xe   : > { %s87_s19 = scalar_lea.vmem (%p27_p3), %s560_s0, %s397_s15 }
   0xf   : > { %v104_v0 = vld [vmem:[%s87_s19] sm:$0xff] (%p27_p3)   ;;  %v108_v1 = vld [vmem:[%s87_s19 + $0x10] sm:$0xff] (%p27_p3)   ;;  %s84_s20 = scalar_lea.vmem (%p27_p3), [#allocation2], %s404_s16 }
  0x10   : > { %v112_v2 = vld [vmem:[%s87_s19 + $0x20] sm:$0xff] (%p27_p3)   ;;  %v116_v3 = vld [vmem:[%s87_s19 + $0x30] sm:$0xff] (%p27_p3)   ;;  %105 = vst [vmem:[%s84_s20] sm:$0xff] (%p27_p3), %v104_v0   ;;  %109 = vst [vmem:[%s84_s20 + $0x8] sm:$0xff] (%p27_p3), %v108_v1  }
  0x11   : > { %v120_v4 = vld [vmem:[%s87_s19 + $0x40] sm:$0xff]   ;;  %v124_v5 = vld [vmem:[%s87_s19 + $0x50] sm:$0xff]   ;;  %113 = vst [vmem:[%s84_s20 + $0x10] sm:$0xff] %v112_v2   ;;  %117 = vst [vmem:[%s84_s20 + $0x18] sm:$0xff] %v116_v3  }
  0x12   : > { %121 = vst [vmem:[%s84_s20 + $0x20] sm:$0xff] %v120_v4   ;;  %125 = vst [vmem:[%s84_s20 + $0x28] sm:$0xff] %v124_v5   ;;  %v128_v6 = vld [vmem:[%s87_s19 + $0x60] sm:$0xff]   ;;  %v132_v7 = vld [vmem:[%s87_s19 + $0x70] sm:$0xff]  }
  0x13   : > { %v136_v8 = vld [vmem:[%s87_s19 + $0x80] sm:$0xff]   ;;  %129 = vst [vmem:[%s84_s20 + $0x30] sm:$0xff] %v128_v6   ;;  %133 = vst [vmem:[%s84_s20 + $0x38] sm:$0xff] %v132_v7  }
  0x14   : > { %137 = vst [vmem:[%s84_s20 + $0x40] sm:$0xff] %v136_v8  }
  0x15 PF: > { %p392_p5 = scmp.ge.s32.totalorder %s452_s8, 1  ;;  %p198_p6 = scmp.lt.s32.totalorder %s452_s8, 3 }
  0x17   : > { %p199_p7 = pnand %p392_p5, %p198_p6 }
  0x18   : > { %s205_s21 = sand.u32 (!%p199_p7), 1, %s444_s6   ;;  %s503_s23 = sshll.u32 (!%p199_p7), %s386_s9, 1 }
  0x19   : > { %202 = sbr.rel (%p199_p7) target bundleno = 53 (0x35), region = 61  ;;  %p226_p8 = scmp.lt.s32.totalorder (!%p199_p7), %s503_s23, 3 }
  0x1a   : > { %s405_s22 = smul.u32 (!%p199_p7), 72, %s205_s21 }
  0x1c   : > { %s506_s24 = scalar_lea.vmem (!%p199_p7), [#allocation2], %s405_s22 }
  0x1e   : > { %v232_v9 = vld [vmem:[%s506_s24] sm:$0xf]  ;;  %vm250_vm0 = vcmask 1043456   ;;  %v234_v10 = vld [vmem:[%s506_s24 + $0x8] sm:$0xf]  ;;  %s566_s23 = smov (!%p226_p8, %s503_s23), 3 }
  0x1f   : > { %v236_v11 = vld [vmem:[%s506_s24 + $0x10] sm:$0xf]  ;;  %v238_v12 = vld [vmem:[%s506_s24 + $0x18] sm:$0xf]  ;;  %v233_v13 = vld [vmem:[%s506_s24 + $0x4] sm:$0xf] }
  0x20   : > { %v235_v14 = vld [vmem:[%s506_s24 + $0xc] sm:$0xf]  ;;  %v240_v15 = vld [vmem:[%s506_s24 + $0x20] sm:$0xf]  ;;  %v242_v16 = vld [vmem:[%s506_s24 + $0x28] sm:$0xf] }
  0x21   : > { %v244_v17 = vld [vmem:[%s506_s24 + $0x30] sm:$0xf]  ;;  %v237_v18 = vld [vmem:[%s506_s24 + $0x14] sm:$0xf]  ;;  %v239_v19 = vld [vmem:[%s506_s24 + $0x1c] sm:$0xf] }
  0x22   : > { %v241_v20 = vld [vmem:[%s506_s24 + $0x24] sm:$0xf]  ;;  %v246_v21 = vld [vmem:[%s506_s24 + $0x38] sm:$0xf]  ;;  %v248_v22 = vld [vmem:[%s506_s24 + $0x40] sm:$0xf] }
  0x23   : > { %v253_v23 = vsel %vm250_vm0, %v232_v9, 4286644096  ;;  %v256_v24 = vsel %vm250_vm0, %v234_v10, 4286644096  ;;  %v259_v25 = vsel %vm250_vm0, %v236_v11, 4286644096 }
  0x24   : > { %v263_v26 = vsel %vm250_vm0, %v238_v12, 4286644096  ;;  %v243_v27 = vld [vmem:[%s506_s24 + $0x2c] sm:$0xf]  ;;  %v245_v28 = vld [vmem:[%s506_s24 + $0x34] sm:$0xf]  ;;  %v261_v29 = vmax.bf16 %v259_v25, %v253_v23 }
  0x25   : > { %v265_v30 = vmax.bf16 %v263_v26, %v256_v24  ;;  %v267_v31 = vsel %vm250_vm0, %v240_v15, 4286644096  ;;  %v271_v32 = vsel %vm250_vm0, %v242_v16, 4286644096  ;;  %v275_v33 = vsel %vm250_vm0, %v244_v17, 4286644096 }
  0x26   : > { %v279_v34 = vsel %vm250_vm0, %v246_v21, 4286644096  ;;  %v283_v35 = vsel %vm250_vm0, %v248_v22, 4286644096  ;;  %v247_v36 = vld [vmem:[%s506_s24 + $0x3c] sm:$0xf]  ;;  %v269_v37 = vmax.bf16 %v267_v31, %v261_v29 }
  0x27   : > { %v273_v38 = vmax.bf16 %v271_v32, %v265_v30  ;;  %v288_v39 = vsel %vm250_vm0, %v233_v13, 4286644096  ;;  %v291_v40 = vsel %vm250_vm0, %v235_v14, 4286644096  ;;  %v294_v41 = vsel %vm250_vm0, %v237_v18, 4286644096 }
  0x28   : > { %v298_v42 = vsel %vm250_vm0, %v239_v19, 4286644096  ;;  %v302_v43 = vsel %vm250_vm0, %v241_v20, 4286644096  ;;  %v249_v44 = vld [vmem:[%s506_s24 + $0x44] sm:$0xf]  ;;  %v277_v45 = vmax.bf16 %v275_v33, %v269_v37  ;;  %v296_v46 = vmax.bf16 %v294_v41, %v288_v39 }
  0x29   : > { %v300_v47 = vmax.bf16 %v298_v42, %v291_v40  ;;  %v306_v48 = vsel %vm250_vm0, %v243_v27, 4286644096  ;;  %v310_v49 = vsel %vm250_vm0, %v245_v28, 4286644096  ;;  %v314_v50 = vsel %vm250_vm0, %v247_v36, 4286644096 }
  0x2a   : > { %v281_v51 = vmax.bf16 %v279_v34, %v273_v38  ;;  %v285_v52 = vmax.bf16 %v283_v35, %v277_v45  ;;  %v304_v53 = vmax.bf16 %v302_v43, %v296_v46  ;;  %v318_v55 = vsel %vm250_vm0, %v249_v44, 4286644096  ;;  %s394_s25 = sshll.u32 %s566_s23, 2 }
  0x2b   : > { %v308_v54 = vmax.bf16 %v306_v48, %v300_v47  ;;  %s229_s28 = scalar_lea.vmem %s561_s1, %s394_s25 }
  0x2c   : > { %v312_v56 = vmax.bf16 %v310_v49, %v304_v53  ;;  %v286_v58 = vmax.bf16 %v285_v52, %v281_v51 }
  0x2d   : > { %v316_v57 = vmax.bf16 %v314_v50, %v308_v54 }
  0x2e   : > { %v320_v59 = vmax.bf16 %v318_v55, %v312_v56 }
  0x30   : > { %v321_v60 = vmax.bf16 %v320_v59, %v316_v57 }
  0x32   : > { %v403_v61 = vcombine.low %v286_v58, %v321_v60 }
  0x34   : > { %402 = vst [vmem:[%s229_s28] sm:$0xff] %v403_v61  }
  0x35 PF: > { %p8_p9 = scmp.ge.s32.totalorder %s481_s10, 4   ;;  %s562_s6 = smov %s448_s7 }
  0x36   : > { %s563_s7 = smov %s490_s13  ;;  %s564_s8 = smov %s481_s10 }
  0x37   :  { %10 = sbr.rel (!%p8_p9) target bundleno = 2 (0x2), region = 100 }

// kernel: net_forward.24
= control target key start
LH: loop header
LB: loop body
LE: loop exit
PB: predicated region body
PF: predicated region fallthrough
CT: control target
= control target key end

     0   :  { %s1032_s12 = smov 0   ;;  %s1201_s0 = inlined_call_operand.vmem [shape: bf16[512,128], index: 0, kind: input, shape index: {}]   ;;  %s1202_s1 = inlined_call_operand.vmem [shape: bf16[128,8], index: 1, kind: input, shape index: {}]   ;;  %s1203_s2 = inlined_call_operand.vmem [shape: f32[1,8], index: 2, kind: input, shape index: {}]   ;;  %s1204_s3 = inlined_call_operand.vmem [shape: bf16[512,8], index: 3, kind: output, shape index: {}]  }
   0x1 LB: > { %s784_s13 = sadd.s32 4294967295, %s1010_s12   ;;  %p788_p0 = scmp.ge.s32.totalorder %s1010_s12, 1  ;;  %s1010_s12 = sphi %s1032_s12, %s13_s12  }
   0x2   : > { %p138_p1 = scmp.lt.s32.totalorder %s1010_s12, 3 }
   0x4   : > { %p139_p2 = pnand %p788_p0, %p138_p1 }
   0x5   : > { %s789_s16 = sshll.u32 (!%p139_p2), %s784_s13, 5 }
   0x6   : > { %142 = sbr.rel (%p139_p2) target bundleno = 275 (0x113), region = 32  ;;  %p163_p3 = scmp.lt.s32.totalorder (!%p139_p2), %s789_s16, 63 }
   0xb   : > { %v980_v0 = vld [vmem:[%s1202_s1 + $0x38] sm:$0xff]   ;;  %v981_v1 = vld [vmem:[%s1202_s1 + $0x30] sm:$0xff]   ;;  %s1206_s16 = smov (!%p163_p3, %s789_s16), 63  ;;  %v982_v2 = vld [vmem:[%s1202_s1 + $0x28] sm:$0xff]   ;;  %vm695_vm0 = vcmask 60416  }
   0xc   : > { %908 = vmatprep.subr.bf16.mxu0 %v980_v0  ;;  %956 = vmatprep.subr.bf16.mxu1 %v980_v0  ;;  %s790_s21 = sshll.u32 %s1206_s16, 2  ;;  %v983_v3 = vld [vmem:[%s1202_s1 + $0x20] sm:$0xff]   ;;  %v984_v6 = vld [vmem:[%s1202_s1 + $0x18] sm:$0xff]   ;;  %v985_v7 = vld [vmem:[%s1202_s1 + $0x10] sm:$0xff]  }
   0xd   : > { %909 = vmatpush3.bf16.msra.mxu0 %v980_v0  ;;  %964 = vmatpush3.bf16.msra.mxu1 %v980_v0  ;;  %s1057_s24 = scalar_lea.vmem %s1201_s0, %s790_s21  ;;  %v986_v8 = vld [vmem:[%s1202_s1 + $0x8] sm:$0xff]   ;;  %v987_v9 = vld [vmem:[%s1202_s1] sm:$0xff]   ;;  %s1104_s13 = scalar_lea.vmem %s1204_s3, %s790_s21 }
   0xe   : > { %910 = vmatprep.subr.bf16.mxu0 %v981_v1  ;;  %957 = vmatprep.subr.bf16.mxu1 %v981_v1  ;;  %v988_v4 = vld [vmem:[%s1057_s24] sm:$0xff]   ;;  %v990_v10 = vld [vmem:[%s1057_s24 + $0x8] sm:$0xff]   ;;  %v992_v12 = vld [vmem:[%s1057_s24 + $0x10] sm:$0xff]  }
   0xf   : > { %v989_v5 = vld [vmem:[%s1057_s24 + $0x40] sm:$0xff]   ;;  %924 = vmatprep.mubr.bf16.mxu0 %v988_v4  ;;  %v991_v11 = vld [vmem:[%s1057_s24 + $0x48] sm:$0xff]   ;;  %v993_v13 = vld [vmem:[%s1057_s24 + $0x50] sm:$0xff]  }
  0x10   : > { %940 = vmatprep.mubr.bf16.mxu1 %v989_v5  ;;  %v994_v14 = vld [vmem:[%s1057_s24 + $0x18] sm:$0xff]   ;;  %v996_v16 = vld [vmem:[%s1057_s24 + $0x20] sm:$0xff]   ;;  %v998_v18 = vld [vmem:[%s1057_s24 + $0x28] sm:$0xff]  }
  0x11   : > { %911 = vmatpush3.bf16.msra.mxu0 %v981_v1  ;;  %965 = vmatpush3.bf16.msra.mxu1 %v981_v1  ;;  %v995_v15 = vld [vmem:[%s1057_s24 + $0x58] sm:$0xff]   ;;  %v997_v17 = vld [vmem:[%s1057_s24 + $0x60] sm:$0xff]   ;;  %v999_v19 = vld [vmem:[%s1057_s24 + $0x68] sm:$0xff]  }
  0x12   : > { %912 = vmatprep.subr.bf16.mxu0 %v982_v2  ;;  %958 = vmatprep.subr.bf16.mxu1 %v982_v2  ;;  %v1000_v20 = vld [vmem:[%s1057_s24 + $0x30] sm:$0xff]   ;;  %v1002_v22 = vld [vmem:[%s1057_s24 + $0x38] sm:$0xff]   ;;  %v1093_v24 = vld [vmem:[%s1203_s2] ss:$0 sm:$0xff] }
  0x13   : > { %v1001_v21 = vld [vmem:[%s1057_s24 + $0x70] sm:$0xff]   ;;  %v1003_v23 = vld [vmem:[%s1057_s24 + $0x78] sm:$0xff]  }
  0x15   : > { %913 = vmatpush3.bf16.msra.mxu0 %v982_v2  ;;  %966 = vmatpush3.bf16.msra.mxu1 %v982_v2 }
  0x16   : > { %914 = vmatprep.subr.bf16.mxu0 %v983_v3  ;;  %959 = vmatprep.subr.bf16.mxu1 %v983_v3 }
  0x19   : > { %915 = vmatpush3.bf16.msra.mxu0 %v983_v3  ;;  %967 = vmatpush3.bf16.msra.mxu1 %v983_v3 }
  0x1a   : > { %916 = vmatprep.subr.bf16.mxu0 %v984_v6  ;;  %960 = vmatprep.subr.bf16.mxu1 %v984_v6 }
  0x1d   : > { %917 = vmatpush3.bf16.msra.mxu0 %v984_v6  ;;  %968 = vmatpush3.bf16.msra.mxu1 %v984_v6 }
  0x1e   : > { %918 = vmatprep.subr.bf16.mxu0 %v985_v7  ;;  %961 = vmatprep.subr.bf16.mxu1 %v985_v7 }
  0x21   : > { %919 = vmatpush3.bf16.msra.mxu0 %v985_v7  ;;  %969 = vmatpush3.bf16.msra.mxu1 %v985_v7 }
  0x22   : > { %920 = vmatprep.subr.bf16.mxu0 %v986_v8  ;;  %962 = vmatprep.subr.bf16.mxu1 %v986_v8 }
  0x25   : > { %921 = vmatpush3.bf16.msra.mxu0 %v986_v8  ;;  %970 = vmatpush3.bf16.msra.mxu1 %v986_v8 }
  0x26   : > { %922 = vmatprep.subr.bf16.mxu0 %v987_v9  ;;  %963 = vmatprep.subr.bf16.mxu1 %v987_v9 }
  0x29   : > { %923 = vmatpush3.bf16.msra.mxu0 %v987_v9  ;;  %971 = vmatpush3.bf16.msra.mxu1 %v987_v9 }
  0x2c   : > { %925 = vmatmul.mubr.bf16.vlgmr.msra.gmra.mxu0 %v990_v10  ;;  %941 = vmatmul.mubr.bf16.vlgmr.msra.gmra.mxu1 %v991_v11 }
  0x2d   : > { %928 = vmatprep.mubr.bf16.mxu0 %v992_v12  ;;  %944 = vmatprep.mubr.bf16.mxu1 %v993_v13 }
  0x34   : > { %929 = vmatmul.mubr.bf16.gmra.mxu0 %v994_v14  ;;  %945 = vmatmul.mubr.bf16.gmra.mxu1 %v995_v15 }
  0x35   : > { %932 = vmatprep.mubr.bf16.mxu0 %v996_v16  ;;  %948 = vmatprep.mubr.bf16.mxu1 %v997_v17 }
  0x3c   : > { %933 = vmatmul.mubr.bf16.gmra.mxu0 %v998_v18  ;;  %949 = vmatmul.mubr.bf16.gmra.mxu1 %v999_v19 }
  0x3d   : > { %936 = vmatprep.mubr.bf16.mxu0 %v1000_v20  ;;  %952 = vmatprep.mubr.bf16.mxu1 %v1001_v21 }
  0x44   : > { %937 = vmatmul.mubr.bf16.gmra.mxu0 %v1002_v22  ;;  %953 = vmatmul.mubr.bf16.gmra.mxu1 %v1003_v23 }
  0xec   : > { %v926_v25 = vpop.f32.mrf.mxu0  ;;  %v942_v26 = vpop.f32.mrf.mxu1 }
  0xed   : > { %v417_v27 = vadd.f32 %v926_v25, %v1093_v24  ;;  %v481_v28 = vadd.f32 %v942_v26, %v1093_v24 }
  0xee   : > { %v408_v29 = vpop.f32.mrf.mxu0  ;;  %v472_v30 = vpop.f32.mrf.mxu1 }
  0xef   : > { %v537_v31 = vmax.f32 %v417_v27, 0.0  ;;  %v553_v32 = vmax.f32 %v481_v28, 0.0  ;;  %v409_v33 = vadd.f32 %v1093_v24, %v408_v29  ;;  %v473_v34 = vadd.f32 %v1093_v24, %v472_v30 }
  0xf0   : > { %v927_v35 = vpop.f32.mrf.mxu0  ;;  %v943_v36 = vpop.f32.mrf.mxu1 }
  0xf1   : > { %v854_v37 = vpack.c.bf16 %v537_v31, %v537_v31  ;;  %v870_v38 = vpack.c.bf16 %v553_v32, %v553_v32  ;;  %v535_v39 = vmax.f32 %v409_v33, 0.0  ;;  %v551_v40 = vmax.f32 %v473_v34, 0.0 }
  0xf2   : > { %v420_v41 = vadd.f32 %v927_v35, %v1093_v24  ;;  %v484_v42 = vadd.f32 %v943_v36, %v1093_v24  ;;  %v411_v43 = vpop.f32.mrf.mxu0  ;;  %v475_v44 = vpop.f32.mrf.mxu1 }
  0xf3   : > { %698 = vst.msk [vmem:[%s1104_s13 + $0x8] sm:$0xf] %vm695_vm0, %v854_v37  ;;  %714 = vst.msk [vmem:[%s1104_s13 + $0x48] sm:$0xf] %vm695_vm0, %v870_v38  ;;  %v852_v45 = vpack.c.bf16 %v535_v39, %v535_v39  ;;  %v868_v46 = vpack.c.bf16 %v551_v40, %v551_v40  ;;  %v412_v47 = vadd.f32 %v1093_v24, %v411_v43 }
  0xf4   : > { %v476_v48 = vadd.f32 %v1093_v24, %v475_v44  ;;  %v538_v49 = vmax.f32 %v420_v41, 0.0  ;;  %v554_v50 = vmax.f32 %v484_v42, 0.0  ;;  %v930_v51 = vpop.f32.mrf.mxu0  ;;  %v946_v52 = vpop.f32.mrf.mxu1 }
  0xf5   : > { %696 = vst.msk [vmem:[%s1104_s13] sm:$0xf] %vm695_vm0, %v852_v45  ;;  %712 = vst.msk [vmem:[%s1104_s13 + $0x40] sm:$0xf] %vm695_vm0, %v868_v46  ;;  %v536_v53 = vmax.f32 %v412_v47, 0.0  ;;  %v433_v55 = vadd.f32 %v930_v51, %v1093_v24  ;;  %v497_v56 = vadd.f32 %v946_v52, %v1093_v24 }
  0xf6   : > { %v552_v54 = vmax.f32 %v476_v48, 0.0  ;;  %v855_v57 = vpack.c.bf16 %v538_v49, %v538_v49  ;;  %v871_v58 = vpack.c.bf16 %v554_v50, %v554_v50  ;;  %v424_v59 = vpop.f32.mrf.mxu0  ;;  %v488_v60 = vpop.f32.mrf.mxu1 }
  0xf7   : > { %v853_v61 = vpack.c.bf16 %v536_v53, %v536_v53  ;;  %v541_v63 = vmax.f32 %v433_v55, 0.0  ;;  %v557_v0 = vmax.f32 %v497_v56, 0.0  ;;  %v425_v1 = vadd.f32 %v1093_v24, %v424_v59 }
  0xf8   : > { %v869_v62 = vpack.c.bf16 %v552_v54, %v552_v54  ;;  %699 = vst.msk [vmem:[%s1104_s13 + $0xc] sm:$0xf] %vm695_vm0, %v855_v57  ;;  %715 = vst.msk [vmem:[%s1104_s13 + $0x4c] sm:$0xf] %vm695_vm0, %v871_v58  ;;  %v489_v2 = vadd.f32 %v1093_v24, %v488_v60  ;;  %v931_v3 = vpop.f32.mrf.mxu0  ;;  %v947_v4 = vpop.f32.mrf.mxu1 }
  0xf9   : > { %697 = vst.msk [vmem:[%s1104_s13 + $0x4] sm:$0xf] %vm695_vm0, %v853_v61  ;;  %v858_v5 = vpack.c.bf16 %v541_v63, %v541_v63  ;;  %v874_v6 = vpack.c.bf16 %v557_v0, %v557_v0  ;;  %v436_v7 = vadd.f32 %v931_v3, %v1093_v24  ;;  %v500_v8 = vadd.f32 %v947_v4, %v1093_v24 }
  0xfa   : > { %713 = vst.msk [vmem:[%s1104_s13 + $0x44] sm:$0xf] %vm695_vm0, %v869_v62  ;;  %v539_v9 = vmax.f32 %v425_v1, 0.0  ;;  %v555_v10 = vmax.f32 %v489_v2, 0.0  ;;  %v427_v11 = vpop.f32.mrf.mxu0  ;;  %v491_v12 = vpop.f32.mrf.mxu1 }
  0xfb   : > { %702 = vst.msk [vmem:[%s1104_s13 + $0x18] sm:$0xf] %vm695_vm0, %v858_v5  ;;  %718 = vst.msk [vmem:[%s1104_s13 + $0x58] sm:$0xf] %vm695_vm0, %v874_v6  ;;  %v542_v13 = vmax.f32 %v436_v7, 0.0  ;;  %v558_v14 = vmax.f32 %v500_v8, 0.0  ;;  %v428_v15 = vadd.f32 %v1093_v24, %v427_v11  ;;  %v492_v16 = vadd.f32 %v1093_v24, %v491_v12 }
  0xfc   : > { %v856_v17 = vpack.c.bf16 %v539_v9, %v539_v9  ;;  %v872_v18 = vpack.c.bf16 %v555_v10, %v555_v10  ;;  %v934_v19 = vpop.f32.mrf.mxu0  ;;  %v950_v20 = vpop.f32.mrf.mxu1 }
  0xfd   : > { %v859_v21 = vpack.c.bf16 %v542_v13, %v542_v13  ;;  %v875_v22 = vpack.c.bf16 %v558_v14, %v558_v14  ;;  %v540_v23 = vmax.f32 %v428_v15, 0.0  ;;  %v556_v25 = vmax.f32 %v492_v16, 0.0 }
  0xfe   : > { %700 = vst.msk [vmem:[%s1104_s13 + $0x10] sm:$0xf] %vm695_vm0, %v856_v17  ;;  %716 = vst.msk [vmem:[%s1104_s13 + $0x50] sm:$0xf] %vm695_vm0, %v872_v18  ;;  %v449_v26 = vadd.f32 %v934_v19, %v1093_v24  ;;  %v513_v27 = vadd.f32 %v950_v20, %v1093_v24  ;;  %v440_v28 = vpop.f32.mrf.mxu0  ;;  %v504_v29 = vpop.f32.mrf.mxu1 }
  0xff   : > { %703 = vst.msk [vmem:[%s1104_s13 + $0x1c] sm:$0xf] %vm695_vm0, %v859_v21  ;;  %719 = vst.msk [vmem:[%s1104_s13 + $0x5c] sm:$0xf] %vm695_vm0, %v875_v22  ;;  %v857_v30 = vpack.c.bf16 %v540_v23, %v540_v23  ;;  %v873_v31 = vpack.c.bf16 %v556_v25, %v556_v25  ;;  %v441_v32 = vadd.f32 %v1093_v24, %v440_v28 }
 0x100   : > { %v505_v33 = vadd.f32 %v1093_v24, %v504_v29  ;;  %v545_v34 = vmax.f32 %v449_v26, 0.0  ;;  %v561_v35 = vmax.f32 %v513_v27, 0.0  ;;  %v935_v36 = vpop.f32.mrf.mxu0  ;;  %v951_v37 = vpop.f32.mrf.mxu1 }
 0x101   : > { %701 = vst.msk [vmem:[%s1104_s13 + $0x14] sm:$0xf] %vm695_vm0, %v857_v30  ;;  %717 = vst.msk [vmem:[%s1104_s13 + $0x54] sm:$0xf] %vm695_vm0, %v873_v31  ;;  %v543_v38 = vmax.f32 %v441_v32, 0.0  ;;  %v452_v40 = vadd.f32 %v935_v36, %v1093_v24  ;;  %v516_v41 = vadd.f32 %v951_v37, %v1093_v24 }
 0x102   : > { %v559_v39 = vmax.f32 %v505_v33, 0.0  ;;  %v862_v42 = vpack.c.bf16 %v545_v34, %v545_v34  ;;  %v878_v43 = vpack.c.bf16 %v561_v35, %v561_v35  ;;  %v443_v44 = vpop.f32.mrf.mxu0  ;;  %v507_v45 = vpop.f32.mrf.mxu1 }
 0x103   : > { %v860_v46 = vpack.c.bf16 %v543_v38, %v543_v38  ;;  %v546_v48 = vmax.f32 %v452_v40, 0.0  ;;  %v562_v49 = vmax.f32 %v516_v41, 0.0  ;;  %v444_v50 = vadd.f32 %v1093_v24, %v443_v44 }
 0x104   : > { %v876_v47 = vpack.c.bf16 %v559_v39, %v559_v39  ;;  %706 = vst.msk [vmem:[%s1104_s13 + $0x28] sm:$0xf] %vm695_vm0, %v862_v42  ;;  %722 = vst.msk [vmem:[%s1104_s13 + $0x68] sm:$0xf] %vm695_vm0, %v878_v43  ;;  %v508_v51 = vadd.f32 %v1093_v24, %v507_v45  ;;  %v938_v52 = vpop.f32.mrf.mxu0  ;;  %v954_v53 = vpop.f32.mrf.mxu1 }
 0x105   : > { %704 = vst.msk [vmem:[%s1104_s13 + $0x20] sm:$0xf] %vm695_vm0, %v860_v46  ;;  %v863_v54 = vpack.c.bf16 %v546_v48, %v546_v48  ;;  %v879_v55 = vpack.c.bf16 %v562_v49, %v562_v49  ;;  %v465_v56 = vadd.f32 %v938_v52, %v1093_v24  ;;  %v529_v57 = vadd.f32 %v954_v53, %v1093_v24 }
 0x106   : > { %720 = vst.msk [vmem:[%s1104_s13 + $0x60] sm:$0xf] %vm695_vm0, %v876_v47  ;;  %v544_v58 = vmax.f32 %v444_v50, 0.0  ;;  %v560_v59 = vmax.f32 %v508_v51, 0.0  ;;  %v456_v60 = vpop.f32.mrf.mxu0  ;;  %v520_v61 = vpop.f32.mrf.mxu1 }
 0x107   : > { %707 = vst.msk [vmem:[%s1104_s13 + $0x2c] sm:$0xf] %vm695_vm0, %v863_v54  ;;  %723 = vst.msk [vmem:[%s1104_s13 + $0x6c] sm:$0xf] %vm695_vm0, %v879_v55  ;;  %v549_v62 = vmax.f32 %v465_v56, 0.0  ;;  %v565_v63 = vmax.f32 %v529_v57, 0.0  ;;  %v457_v0 = vadd.f32 %v1093_v24, %v456_v60  ;;  %v521_v1 = vadd.f32 %v1093_v24, %v520_v61 }
 0x108   : > { %v861_v2 = vpack.c.bf16 %v544_v58, %v544_v58  ;;  %v877_v3 = vpack.c.bf16 %v560_v59, %v560_v59  ;;  %v939_v4 = vpop.f32.mrf.mxu0  ;;  %v955_v5 = vpop.f32.mrf.mxu1 }
 0x109   : > { %v866_v6 = vpack.c.bf16 %v549_v62, %v549_v62  ;;  %v882_v7 = vpack.c.bf16 %v565_v63, %v565_v63  ;;  %v547_v8 = vmax.f32 %v457_v0, 0.0  ;;  %v563_v9 = vmax.f32 %v521_v1, 0.0 }
 0x10a   : > { %705 = vst.msk [vmem:[%s1104_s13 + $0x24] sm:$0xf] %vm695_vm0, %v861_v2  ;;  %721 = vst.msk [vmem:[%s1104_s13 + $0x64] sm:$0xf] %vm695_vm0, %v877_v3  ;;  %v468_v10 = vadd.f32 %v939_v4, %v1093_v24  ;;  %v532_v11 = vadd.f32 %v955_v5, %v1093_v24  ;;  %v459_v12 = vpop.f32.mrf.mxu0  ;;  %v523_v13 = vpop.f32.mrf.mxu1 }
 0x10b   : > { %710 = vst.msk [vmem:[%s1104_s13 + $0x38] sm:$0xf] %vm695_vm0, %v866_v6  ;;  %726 = vst.msk [vmem:[%s1104_s13 + $0x78] sm:$0xf] %vm695_vm0, %v882_v7  ;;  %v864_v14 = vpack.c.bf16 %v547_v8, %v547_v8  ;;  %v880_v15 = vpack.c.bf16 %v563_v9, %v563_v9  ;;  %v460_v16 = vadd.f32 %v1093_v24, %v459_v12 }
 0x10c   : > { %v524_v17 = vadd.f32 %v1093_v24, %v523_v13  ;;  %v550_v18 = vmax.f32 %v468_v10, 0.0  ;;  %v566_v19 = vmax.f32 %v532_v11, 0.0 }
 0x10d   : > { %708 = vst.msk [vmem:[%s1104_s13 + $0x30] sm:$0xf] %vm695_vm0, %v864_v14  ;;  %724 = vst.msk [vmem:[%s1104_s13 + $0x70] sm:$0xf] %vm695_vm0, %v880_v15  ;;  %v548_v20 = vmax.f32 %v460_v16, 0.0 }
 0x10e   : > { %v564_v21 = vmax.f32 %v524_v17, 0.0  ;;  %v867_v22 = vpack.c.bf16 %v550_v18, %v550_v18  ;;  %v883_v23 = vpack.c.bf16 %v566_v19, %v566_v19 }
 0x10f   : > { %v865_v25 = vpack.c.bf16 %v548_v20, %v548_v20 }
 0x110   : > { %v881_v26 = vpack.c.bf16 %v564_v21, %v564_v21  ;;  %711 = vst.msk [vmem:[%s1104_s13 + $0x3c] sm:$0xf] %vm695_vm0, %v867_v22  ;;  %727 = vst.msk [vmem:[%s1104_s13 + $0x7c] sm:$0xf] %vm695_vm0, %v883_v23 }
 0x111   : > { %709 = vst.msk [vmem:[%s1104_s13 + $0x34] sm:$0xf] %vm695_vm0, %v865_v25 }
 0x112   : > { %725 = vst.msk [vmem:[%s1104_s13 + $0x74] sm:$0xf] %vm695_vm0, %v881_v26 }
 0x113 PF: > { %s13_s12 = sadd.s32 1, %s1010_s12  }
 0x114   : > { %p10_p4 = scmp.ge.s32.totalorder %s13_s12, 4  }
 0x116   :  { %12 = sbr.rel (!%p10_p4) target bundleno = 1 (0x1), region = 62 }

// kernel: net_forward.25
= control target key start
LH: loop header
LB: loop body
LE: loop exit
PB: predicated region body
PF: predicated region fallthrough
CT: control target
= control target key end

     0   :  { %s1275_s15 = smov 0   ;;  %s1579_s0 = inlined_call_operand.vmem [shape: bf16[512,128], index: 0, kind: input, shape index: {}]   ;;  %s1580_s1 = inlined_call_operand.vmem [shape: bf16[128,8], index: 1, kind: input, shape index: {}]   ;;  %s1581_s2 = inlined_call_operand.vmem [shape: f32[1,8], index: 2, kind: input, shape index: {}]   ;;  %s1582_s3 = inlined_call_operand.vmem [shape: bf16[512,8], index: 3, kind: input, shape index: {}]   ;;  %s1583_s4 = inlined_call_operand.vmem [shape: bf16[512,8], index: 4, kind: output, shape index: {}]  }
   0x1 LB: > { %s941_s16 = sadd.s32 4294967295, %s1248_s15   ;;  %p945_p0 = scmp.ge.s32.totalorder %s1248_s15, 1  ;;  %s1248_s15 = sphi %s1275_s15, %s14_s15  }
   0x2   : > { %p174_p1 = scmp.lt.s32.totalorder %s1248_s15, 3 }
   0x4   : > { %p175_p2 = pnand %p945_p0, %p174_p1 }
   0x5   : > { %s946_s19 = sshll.u32 (!%p175_p2), %s941_s16, 5 }
   0x6   : > { %178 = sbr.rel (%p175_p2) target bundleno = 279 (0x117), region = 36  ;;  %p206_p3 = scmp.lt.s32.totalorder (!%p175_p2), %s946_s19, 63 }
   0xb   : > { %v1218_v0 = vld [vmem:[%s1580_s1 + $0x38] sm:$0xff]   ;;  %v1219_v1 = vld [vmem:[%s1580_s1 + $0x30] sm:$0xff]   ;;  %s1585_s19 = smov (!%p206_p3, %s946_s19), 63  ;;  %v1220_v2 = vld [vmem:[%s1580_s1 + $0x28] sm:$0xff]   ;;  %vm840_vm0 = vcmask 60416  }
   0xc   : > { %1146 = vmatprep.subr.bf16.mxu0 %v1218_v0  ;;  %1194 = vmatprep.subr.bf16.mxu1 %v1218_v0  ;;  %s1292_s24 = sshll.u32 %s1585_s19, 2  ;;  %v1221_v3 = vld [vmem:[%s1580_s1 + $0x20] sm:$0xff]   ;;  %v1222_v6 = vld [vmem:[%s1580_s1 + $0x18] sm:$0xff]   ;;  %v1223_v7 = vld [vmem:[%s1580_s1 + $0x10] sm:$0xff]  }
   0xd   : > { %1147 = vmatpush3.bf16.msra.mxu0 %v1218_v0  ;;  %1202 = vmatpush3.bf16.msra.mxu1 %v1218_v0  ;;  %s1298_s27 = scalar_lea.vmem %s1579_s0, %s1292_s24  ;;  %v1224_v8 = vld [vmem:[%s1580_s1 + $0x8] sm:$0xff]   ;;  %v1225_v9 = vld [vmem:[%s1580_s1] sm:$0xff]   ;;  %s1335_s14 = scalar_lea.vmem %s1582_s3, %s1292_s24 }
   0xe   : > { %1148 = vmatprep.subr.bf16.mxu0 %v1219_v1  ;;  %1195 = vmatprep.subr.bf16.mxu1 %v1219_v1  ;;  %v1226_v4 = vld [vmem:[%s1298_s27] sm:$0xff]   ;;  %v1228_v10 = vld [vmem:[%s1298_s27 + $0x8] sm:$0xff]   ;;  %v1230_v12 = vld [vmem:[%s1298_s27 + $0x10] sm:$0xff]   ;;  %s1428_s20 = scalar_lea.vmem %s1583_s4, %s1292_s24 }
   0xf   : > { %v1227_v5 = vld [vmem:[%s1298_s27 + $0x40] sm:$0xff]   ;;  %1162 = vmatprep.mubr.bf16.mxu0 %v1226_v4  ;;  %v1229_v11 = vld [vmem:[%s1298_s27 + $0x48] sm:$0xff]   ;;  %v1231_v13 = vld [vmem:[%s1298_s27 + $0x50] sm:$0xff]  }
  0x10   : > { %1178 = vmatprep.mubr.bf16.mxu1 %v1227_v5  ;;  %v1232_v14 = vld [vmem:[%s1298_s27 + $0x18] sm:$0xff]   ;;  %v1234_v16 = vld [vmem:[%s1298_s27 + $0x20] sm:$0xff]   ;;  %v1236_v18 = vld [vmem:[%s1298_s27 + $0x28] sm:$0xff]  }
  0x11   : > { %1149 = vmatpush3.bf16.msra.mxu0 %v1219_v1  ;;  %1203 = vmatpush3.bf16.msra.mxu1 %v1219_v1  ;;  %v1233_v15 = vld [vmem:[%s1298_s27 + $0x58] sm:$0xff]   ;;  %v1235_v17 = vld [vmem:[%s1298_s27 + $0x60] sm:$0xff]   ;;  %v1237_v19 = vld [vmem:[%s1298_s27 + $0x68] sm:$0xff]  }
  0x12   : > { %1150 = vmatprep.subr.bf16.mxu0 %v1220_v2  ;;  %1196 = vmatprep.subr.bf16.mxu1 %v1220_v2  ;;  %v1238_v20 = vld [vmem:[%s1298_s27 + $0x30] sm:$0xff]   ;;  %v1240_v22 = vld [vmem:[%s1298_s27 + $0x38] sm:$0xff]   ;;  %v1338_v24 = vld [vmem:[%s1335_s14 + $0x8] sm:$0xff]  }
  0x13   : > { %v1239_v21 = vld [vmem:[%s1298_s27 + $0x70] sm:$0xff]   ;;  %v1241_v23 = vld [vmem:[%s1298_s27 + $0x78] sm:$0xff]   ;;  %v1341_v25 = vld [vmem:[%s1335_s14 + $0x48] sm:$0xff]   ;;  %v1049_v32 = vunpack.c.l.bf16 %v1338_v24  ;;  %v1050_v37 = vunpack.c.h.bf16 %v1338_v24 }
  0x14   : > { %v1344_v26 = vld [vmem:[%s1335_s14] sm:$0xff]   ;;  %v1350_v28 = vld [vmem:[%s1335_s14 + $0x18] sm:$0xff]   ;;  %v1356_v30 = vld [vmem:[%s1335_s14 + $0x10] sm:$0xff]   ;;  %v1081_v33 = vunpack.c.l.bf16 %v1341_v25  ;;  %v1082_v38 = vunpack.c.h.bf16 %v1341_v25 }
  0x15   : > { %1151 = vmatpush3.bf16.msra.mxu0 %v1220_v2  ;;  %1204 = vmatpush3.bf16.msra.mxu1 %v1220_v2  ;;  %v1347_v27 = vld [vmem:[%s1335_s14 + $0x40] sm:$0xff]   ;;  %v1353_v29 = vld [vmem:[%s1335_s14 + $0x58] sm:$0xff]   ;;  %v1359_v31 = vld [vmem:[%s1335_s14 + $0x50] sm:$0xff]   ;;  %v1045_v34 = vunpack.c.l.bf16 %v1344_v26  ;;  %v1046_v39 = vunpack.c.h.bf16 %v1344_v26  ;;  %v1057_v45 = vunpack.c.l.bf16 %v1350_v28  ;;  %v1053_v47 = vunpack.c.l.bf16 %v1356_v30 }
  0x16   : > { %1152 = vmatprep.subr.bf16.mxu0 %v1221_v3  ;;  %1197 = vmatprep.subr.bf16.mxu1 %v1221_v3  ;;  %v1077_v35 = vunpack.c.l.bf16 %v1347_v27  ;;  %v1366_v36 = vld [vmem:[%s1335_s14 + $0x28] sm:$0xff]   ;;  %v1078_v40 = vunpack.c.h.bf16 %v1347_v27  ;;  %v1376_v42 = vld [vmem:[%s1335_s14 + $0x20] sm:$0xff]   ;;  %v1089_v46 = vunpack.c.l.bf16 %v1353_v29  ;;  %v1085_v48 = vunpack.c.l.bf16 %v1359_v31  ;;  %v1395_v53 = vld [vmem:[%s1335_s14 + $0x38] sm:$0xff]  }
  0x17   : > { %v1373_v41 = vld [vmem:[%s1335_s14 + $0x68] sm:$0xff]   ;;  %v1379_v43 = vld [vmem:[%s1335_s14 + $0x60] sm:$0xff]   ;;  %v1058_v49 = vunpack.c.h.bf16 %v1350_v28  ;;  %v1090_v50 = vunpack.c.h.bf16 %v1353_v29  ;;  %v1054_v51 = vunpack.c.h.bf16 %v1356_v30  ;;  %v1086_v52 = vunpack.c.h.bf16 %v1359_v31  ;;  %v1398_v54 = vld [vmem:[%s1335_s14 + $0x78] sm:$0xff]  }
  0x18   : > { %v1384_v44 = vld [vmem:[%s1581_s2] ss:$0 sm:$0xff]  ;;  %v1065_v57 = vunpack.c.l.bf16 %v1366_v36  ;;  %v1097_v58 = vunpack.c.l.bf16 %v1373_v41  ;;  %v1061_v59 = vunpack.c.l.bf16 %v1376_v42  ;;  %v1093_v60 = vunpack.c.l.bf16 %v1379_v43  ;;  %v1409_v1 = vld [vmem:[%s1335_s14 + $0x30] sm:$0xff]  }
  0x19   : > { %1153 = vmatpush3.bf16.msra.mxu0 %v1221_v3  ;;  %1205 = vmatpush3.bf16.msra.mxu1 %v1221_v3  ;;  %v1066_v63 = vunpack.c.h.bf16 %v1366_v36  ;;  %v1098_v0 = vunpack.c.h.bf16 %v1373_v41  ;;  %v1412_v2 = vld [vmem:[%s1335_s14 + $0x70] sm:$0xff]   ;;  %v1062_v5 = vunpack.c.h.bf16 %v1376_v42 }
  0x1a   : > { %1154 = vmatprep.subr.bf16.mxu0 %v1222_v6  ;;  %1198 = vmatprep.subr.bf16.mxu1 %v1222_v6 }
  0x1d   : > { %1155 = vmatpush3.bf16.msra.mxu0 %v1222_v6  ;;  %1206 = vmatpush3.bf16.msra.mxu1 %v1222_v6  ;;  %v1094_v6 = vunpack.c.h.bf16 %v1379_v43 }
  0x1e   : > { %1156 = vmatprep.subr.bf16.mxu0 %v1223_v7  ;;  %1199 = vmatprep.subr.bf16.mxu1 %v1223_v7 }
  0x21   : > { %1157 = vmatpush3.bf16.msra.mxu0 %v1223_v7  ;;  %1207 = vmatpush3.bf16.msra.mxu1 %v1223_v7  ;;  %v1073_v7 = vunpack.c.l.bf16 %v1395_v53 }
  0x22   : > { %1158 = vmatprep.subr.bf16.mxu0 %v1224_v8  ;;  %1200 = vmatprep.subr.bf16.mxu1 %v1224_v8 }
  0x25   : > { %1159 = vmatpush3.bf16.msra.mxu0 %v1224_v8  ;;  %1208 = vmatpush3.bf16.msra.mxu1 %v1224_v8  ;;  %v1105_v8 = vunpack.c.l.bf16 %v1398_v54 }
  0x26   : > { %1160 = vmatprep.subr.bf16.mxu0 %v1225_v9  ;;  %1201 = vmatprep.subr.bf16.mxu1 %v1225_v9 }
  0x29   : > { %1161 = vmatpush3.bf16.msra.mxu0 %v1225_v9  ;;  %1209 = vmatpush3.bf16.msra.mxu1 %v1225_v9 }
  0x2c   : > { %1163 = vmatmul.mubr.bf16.vlgmr.msra.gmra.mxu0 %v1228_v10  ;;  %1179 = vmatmul.mubr.bf16.vlgmr.msra.gmra.mxu1 %v1229_v11 }
  0x2d   : > { %1166 = vmatprep.mubr.bf16.mxu0 %v1230_v12  ;;  %1182 = vmatprep.mubr.bf16.mxu1 %v1231_v13 }
  0x34   : > { %1167 = vmatmul.mubr.bf16.gmra.mxu0 %v1232_v14  ;;  %1183 = vmatmul.mubr.bf16.gmra.mxu1 %v1233_v15  ;;  %v1069_v15 = vunpack.c.l.bf16 %v1409_v1 }
  0x35   : > { %1170 = vmatprep.mubr.bf16.mxu0 %v1234_v16  ;;  %1186 = vmatprep.mubr.bf16.mxu1 %v1235_v17  ;;  %v1101_v16 = vunpack.c.l.bf16 %v1412_v2  ;;  %v1074_v17 = vunpack.c.h.bf16 %v1395_v53 }
  0x3c   : > { %1171 = vmatmul.mubr.bf16.gmra.mxu0 %v1236_v18  ;;  %1187 = vmatmul.mubr.bf16.gmra.mxu1 %v1237_v19  ;;  %v1106_v18 = vunpack.c.h.bf16 %v1398_v54 }
  0x3d   : > { %1174 = vmatprep.mubr.bf16.mxu0 %v1238_v20  ;;  %1190 = vmatprep.mubr.bf16.mxu1 %v1239_v21 }
  0x44   : > { %1175 = vmatmul.mubr.bf16.gmra.mxu0 %v1240_v22  ;;  %1191 = vmatmul.mubr.bf16.gmra.mxu1 %v1241_v23 }
  0xec   : > { %v1164_v55 = vpop.f32.mrf.mxu0  ;;  %v1180_v56 = vpop.f32.mrf.mxu1 }
  0xed   : > { %v466_v61 = vadd.f32 %v1164_v55, %v1384_v44  ;;  %v530_v62 = vadd.f32 %v1180_v56, %v1384_v44  ;;  %v1102_v55 = vunpack.c.h.bf16 %v1412_v2 }
  0xee   : > { %v457_v3 = vpop.f32.mrf.mxu0  ;;  %v521_v4 = vpop.f32.mrf.mxu1 }
  0xef   : > { %v650_v9 = vadd.f32 %v1049_v32, %v466_v61  ;;  %v666_v10 = vadd.f32 %v1081_v33, %v530_v62  ;;  %v458_v11 = vadd.f32 %v1384_v44, %v457_v3  ;;  %v522_v12 = vadd.f32 %v1384_v44, %v521_v4 }
  0xf0   : > { %v1165_v13 = vpop.f32.mrf.mxu0  ;;  %v1181_v14 = vpop.f32.mrf.mxu1  ;;  %v1070_v33 = vunpack.c.h.bf16 %v1409_v1 }
  0xf1   : > { %v682_v19 = vmax.f32 %v650_v9, 0.0  ;;  %v698_v20 = vmax.f32 %v666_v10, 0.0  ;;  %v648_v21 = vadd.f32 %v1045_v34, %v458_v11  ;;  %v664_v22 = vadd.f32 %v1077_v35, %v522_v12 }
  0xf2   : > { %v469_v23 = vadd.f32 %v1165_v13, %v1384_v44  ;;  %v533_v24 = vadd.f32 %v1181_v14, %v1384_v44  ;;  %v460_v25 = vpop.f32.mrf.mxu0  ;;  %v524_v32 = vpop.f32.mrf.mxu1 }
  0xf3   : > { %v1013_v56 = vpack.c.bf16 %v682_v19, %v682_v19  ;;  %v1029_v34 = vpack.c.bf16 %v698_v20, %v698_v20  ;;  %v680_v35 = vmax.f32 %v648_v21, 0.0  ;;  %v696_v61 = vmax.f32 %v664_v22, 0.0 }
  0xf4   : > { %v651_v62 = vadd.f32 %v1050_v37, %v469_v23  ;;  %v667_v3 = vadd.f32 %v1082_v38, %v533_v24  ;;  %v461_v4 = vadd.f32 %v1384_v44, %v460_v25  ;;  %v525_v9 = vadd.f32 %v1384_v44, %v524_v32  ;;  %v1168_v10 = vpop.f32.mrf.mxu0  ;;  %v1184_v11 = vpop.f32.mrf.mxu1 }
  0xf5   : > { %843 = vst.msk [vmem:[%s1428_s20 + $0x8] sm:$0xf] %vm840_vm0, %v1013_v56  ;;  %859 = vst.msk [vmem:[%s1428_s20 + $0x48] sm:$0xf] %vm840_vm0, %v1029_v34  ;;  %v1011_v12 = vpack.c.bf16 %v680_v35, %v680_v35  ;;  %v1027_v13 = vpack.c.bf16 %v696_v61, %v696_v61  ;;  %v482_v14 = vadd.f32 %v1168_v10, %v1384_v44 }
  0xf6   : > { %v546_v19 = vadd.f32 %v1184_v11, %v1384_v44  ;;  %v683_v37 = vmax.f32 %v651_v62, 0.0  ;;  %v699_v38 = vmax.f32 %v667_v3, 0.0  ;;  %v649_v20 = vadd.f32 %v1046_v39, %v461_v4  ;;  %v473_v22 = vpop.f32.mrf.mxu0  ;;  %v537_v23 = vpop.f32.mrf.mxu1 }
  0xf7   : > { %v665_v21 = vadd.f32 %v1078_v40, %v525_v9  ;;  %841 = vst.msk [vmem:[%s1428_s20] sm:$0xf] %vm840_vm0, %v1011_v12  ;;  %857 = vst.msk [vmem:[%s1428_s20 + $0x40] sm:$0xf] %vm840_vm0, %v1027_v13  ;;  %v654_v24 = vadd.f32 %v1057_v45, %v482_v14  ;;  %v474_v26 = vadd.f32 %v1384_v44, %v473_v22 }
  0xf8   : > { %v670_v25 = vadd.f32 %v1089_v46, %v546_v19  ;;  %v538_v39 = vadd.f32 %v1384_v44, %v537_v23  ;;  %v1014_v27 = vpack.c.bf16 %v683_v37, %v683_v37  ;;  %v1030_v40 = vpack.c.bf16 %v699_v38, %v699_v38  ;;  %v1169_v34 = vpop.f32.mrf.mxu0  ;;  %v1185_v35 = vpop.f32.mrf.mxu1 }
  0xf9   : > { %v681_v32 = vmax.f32 %v649_v20, 0.0  ;;  %v697_v56 = vmax.f32 %v665_v21, 0.0  ;;  %v686_v61 = vmax.f32 %v654_v24, 0.0  ;;  %v652_v45 = vadd.f32 %v1053_v47, %v474_v26 }
  0xfa   : > { %v702_v62 = vmax.f32 %v670_v25, 0.0  ;;  %v668_v46 = vadd.f32 %v1085_v48, %v538_v39  ;;  %844 = vst.msk [vmem:[%s1428_s20 + $0xc] sm:$0xf] %vm840_vm0, %v1014_v27  ;;  %860 = vst.msk [vmem:[%s1428_s20 + $0x4c] sm:$0xf] %vm840_vm0, %v1030_v40  ;;  %v485_v9 = vadd.f32 %v1169_v34, %v1384_v44  ;;  %v549_v10 = vadd.f32 %v1185_v35, %v1384_v44  ;;  %v476_v11 = vpop.f32.mrf.mxu0  ;;  %v540_v12 = vpop.f32.mrf.mxu1 }
  0xfb   : > { %v1012_v3 = vpack.c.bf16 %v681_v32, %v681_v32  ;;  %v1028_v4 = vpack.c.bf16 %v697_v56, %v697_v56  ;;  %v1017_v13 = vpack.c.bf16 %v686_v61, %v686_v61  ;;  %v684_v47 = vmax.f32 %v652_v45, 0.0 }
  0xfc   : > { %v1033_v14 = vpack.c.bf16 %v702_v62, %v702_v62  ;;  %v700_v19 = vmax.f32 %v668_v46, 0.0  ;;  %v655_v48 = vadd.f32 %v1058_v49, %v485_v9  ;;  %v671_v37 = vadd.f32 %v1090_v50, %v549_v10  ;;  %v1172_v21 = vpop.f32.mrf.mxu0  ;;  %v1188_v22 = vpop.f32.mrf.mxu1 }
  0xfd   : > { %842 = vst.msk [vmem:[%s1428_s20 + $0x4] sm:$0xf] %vm840_vm0, %v1012_v3  ;;  %858 = vst.msk [vmem:[%s1428_s20 + $0x44] sm:$0xf] %vm840_vm0, %v1028_v4  ;;  %v477_v38 = vadd.f32 %v1384_v44, %v476_v11  ;;  %v541_v20 = vadd.f32 %v1384_v44, %v540_v12  ;;  %v1015_v23 = vpack.c.bf16 %v684_v47, %v684_v47 }
  0xfe   : > { %847 = vst.msk [vmem:[%s1428_s20 + $0x18] sm:$0xf] %vm840_vm0, %v1017_v13  ;;  %863 = vst.msk [vmem:[%s1428_s20 + $0x58] sm:$0xf] %vm840_vm0, %v1033_v14  ;;  %v1031_v24 = vpack.c.bf16 %v700_v19, %v700_v19  ;;  %v498_v28 = vadd.f32 %v1172_v21, %v1384_v44  ;;  %v562_v49 = vadd.f32 %v1188_v22, %v1384_v44  ;;  %v687_v29 = vmax.f32 %v655_v48, 0.0  ;;  %v489_v39 = vpop.f32.mrf.mxu0  ;;  %v553_v27 = vpop.f32.mrf.mxu1 }
  0xff   : > { %v703_v50 = vmax.f32 %v671_v37, 0.0  ;;  %v653_v25 = vadd.f32 %v1054_v51, %v477_v38  ;;  %v669_v26 = vadd.f32 %v1086_v52, %v541_v20  ;;  %845 = vst.msk [vmem:[%s1428_s20 + $0x10] sm:$0xf] %vm840_vm0, %v1015_v23  ;;  %v490_v30 = vadd.f32 %v1384_v44, %v489_v39 }
 0x100   : > { %861 = vst.msk [vmem:[%s1428_s20 + $0x50] sm:$0xf] %vm840_vm0, %v1031_v24  ;;  %v658_v40 = vadd.f32 %v1065_v57, %v498_v28  ;;  %v674_v32 = vadd.f32 %v1097_v58, %v562_v49  ;;  %v554_v51 = vadd.f32 %v1384_v44, %v553_v27  ;;  %v1018_v31 = vpack.c.bf16 %v687_v29, %v687_v29  ;;  %v1173_v35 = vpop.f32.mrf.mxu0  ;;  %v1189_v61 = vpop.f32.mrf.mxu1 }
 0x101   : > { %v1034_v52 = vpack.c.bf16 %v703_v50, %v703_v50  ;;  %v685_v56 = vmax.f32 %v653_v25, 0.0  ;;  %v701_v34 = vmax.f32 %v669_v26, 0.0  ;;  %v656_v57 = vadd.f32 %v1061_v59, %v490_v30 }
 0x102   : > { %v690_v62 = vmax.f32 %v658_v40, 0.0  ;;  %v706_v45 = vmax.f32 %v674_v32, 0.0  ;;  %v672_v58 = vadd.f32 %v1093_v60, %v554_v51  ;;  %848 = vst.msk [vmem:[%s1428_s20 + $0x1c] sm:$0xf] %vm840_vm0, %v1018_v31  ;;  %v501_v4 = vadd.f32 %v1173_v35, %v1384_v44  ;;  %v492_v10 = vpop.f32.mrf.mxu0  ;;  %v556_v11 = vpop.f32.mrf.mxu1 }
 0x103   : > { %864 = vst.msk [vmem:[%s1428_s20 + $0x5c] sm:$0xf] %vm840_vm0, %v1034_v52  ;;  %v1016_v46 = vpack.c.bf16 %v685_v56, %v685_v56  ;;  %v1032_v3 = vpack.c.bf16 %v701_v34, %v701_v34  ;;  %v565_v9 = vadd.f32 %v1189_v61, %v1384_v44  ;;  %v688_v59 = vmax.f32 %v656_v57, 0.0 }
 0x104   : > { %v1021_v12 = vpack.c.bf16 %v690_v62, %v690_v62  ;;  %v1037_v13 = vpack.c.bf16 %v706_v45, %v706_v45  ;;  %v704_v14 = vmax.f32 %v672_v58, 0.0  ;;  %v659_v60 = vadd.f32 %v1066_v63, %v501_v4  ;;  %v1176_v37 = vpop.f32.mrf.mxu0  ;;  %v1192_v38 = vpop.f32.mrf.mxu1 }
 0x105   : > { %846 = vst.msk [vmem:[%s1428_s20 + $0x14] sm:$0xf] %vm840_vm0, %v1016_v46  ;;  %862 = vst.msk [vmem:[%s1428_s20 + $0x54] sm:$0xf] %vm840_vm0, %v1032_v3  ;;  %v675_v47 = vadd.f32 %v1098_v0, %v565_v9  ;;  %v493_v19 = vadd.f32 %v1384_v44, %v492_v10  ;;  %v557_v48 = vadd.f32 %v1384_v44, %v556_v11 }
 0x106   : > { %851 = vst.msk [vmem:[%s1428_s20 + $0x28] sm:$0xf] %vm840_vm0, %v1021_v12  ;;  %867 = vst.msk [vmem:[%s1428_s20 + $0x68] sm:$0xf] %vm840_vm0, %v1037_v13  ;;  %v1019_v20 = vpack.c.bf16 %v688_v59, %v688_v59  ;;  %v1035_v21 = vpack.c.bf16 %v704_v14, %v704_v14  ;;  %v514_v36 = vadd.f32 %v1176_v37, %v1384_v44  ;;  %v691_v41 = vmax.f32 %v659_v60, 0.0  ;;  %v505_v24 = vpop.f32.mrf.mxu0  ;;  %v569_v28 = vpop.f32.mrf.mxu1 }
 0x107   : > { %v578_v63 = vadd.f32 %v1192_v38, %v1384_v44  ;;  %v707_v0 = vmax.f32 %v675_v47, 0.0  ;;  %v657_v22 = vadd.f32 %v1062_v5, %v493_v19  ;;  %v673_v23 = vadd.f32 %v1094_v6, %v557_v48 }
 0x108   : > { %849 = vst.msk [vmem:[%s1428_s20 + $0x20] sm:$0xf] %vm840_vm0, %v1019_v20  ;;  %865 = vst.msk [vmem:[%s1428_s20 + $0x60] sm:$0xf] %vm840_vm0, %v1035_v21  ;;  %v662_v49 = vadd.f32 %v1073_v7, %v514_v36  ;;  %v506_v42 = vadd.f32 %v1384_v44, %v505_v24  ;;  %v570_v5 = vadd.f32 %v1384_v44, %v569_v28  ;;  %v1177_v26 = vpop.f32.mrf.mxu0  ;;  %v1193_v39 = vpop.f32.mrf.mxu1 }
 0x109   : > { %v678_v29 = vadd.f32 %v1105_v8, %v578_v63  ;;  %v1022_v43 = vpack.c.bf16 %v691_v41, %v691_v41  ;;  %v1038_v6 = vpack.c.bf16 %v707_v0, %v707_v0  ;;  %v689_v50 = vmax.f32 %v657_v22, 0.0 }
 0x10a   : > { %v705_v25 = vmax.f32 %v673_v23, 0.0  ;;  %v694_v27 = vmax.f32 %v662_v49, 0.0  ;;  %v660_v7 = vadd.f32 %v1069_v15, %v506_v42  ;;  %v676_v8 = vadd.f32 %v1101_v16, %v570_v5  ;;  %v508_v52 = vpop.f32.mrf.mxu0  ;;  %v572_v56 = vpop.f32.mrf.mxu1 }
 0x10b   : > { %v710_v40 = vmax.f32 %v678_v29, 0.0  ;;  %852 = vst.msk [vmem:[%s1428_s20 + $0x2c] sm:$0xf] %vm840_vm0, %v1022_v43  ;;  %868 = vst.msk [vmem:[%s1428_s20 + $0x6c] sm:$0xf] %vm840_vm0, %v1038_v6  ;;  %v1020_v32 = vpack.c.bf16 %v689_v50, %v689_v50  ;;  %v517_v51 = vadd.f32 %v1177_v26, %v1384_v44  ;;  %v581_v31 = vadd.f32 %v1193_v39, %v1384_v44 }
 0x10c   : > { %v1036_v30 = vpack.c.bf16 %v705_v25, %v705_v25  ;;  %v1025_v34 = vpack.c.bf16 %v694_v27, %v694_v27  ;;  %v692_v15 = vmax.f32 %v660_v7, 0.0  ;;  %v708_v61 = vmax.f32 %v676_v8, 0.0 }
 0x10d   : > { %v1041_v35 = vpack.c.bf16 %v710_v40, %v710_v40  ;;  %850 = vst.msk [vmem:[%s1428_s20 + $0x24] sm:$0xf] %vm840_vm0, %v1020_v32  ;;  %v663_v16 = vadd.f32 %v1074_v17, %v517_v51  ;;  %v679_v62 = vadd.f32 %v1106_v18, %v581_v31  ;;  %v509_v45 = vadd.f32 %v1384_v44, %v508_v52 }
 0x10e   : > { %866 = vst.msk [vmem:[%s1428_s20 + $0x64] sm:$0xf] %vm840_vm0, %v1036_v30  ;;  %v573_v57 = vadd.f32 %v1384_v44, %v572_v56  ;;  %855 = vst.msk [vmem:[%s1428_s20 + $0x38] sm:$0xf] %vm840_vm0, %v1025_v34  ;;  %v1023_v58 = vpack.c.bf16 %v692_v15, %v692_v15  ;;  %v1039_v46 = vpack.c.bf16 %v708_v61, %v708_v61 }
 0x10f   : > { %871 = vst.msk [vmem:[%s1428_s20 + $0x78] sm:$0xf] %vm840_vm0, %v1041_v35  ;;  %v695_v3 = vmax.f32 %v663_v16, 0.0  ;;  %v711_v53 = vmax.f32 %v679_v62, 0.0  ;;  %v661_v54 = vadd.f32 %v1070_v33, %v509_v45 }
 0x110   : > { %v677_v17 = vadd.f32 %v1102_v55, %v573_v57  ;;  %853 = vst.msk [vmem:[%s1428_s20 + $0x30] sm:$0xf] %vm840_vm0, %v1023_v58  ;;  %869 = vst.msk [vmem:[%s1428_s20 + $0x70] sm:$0xf] %vm840_vm0, %v1039_v46 }
 0x111   : > { %v1026_v44 = vpack.c.bf16 %v695_v3, %v695_v3  ;;  %v1042_v18 = vpack.c.bf16 %v711_v53, %v711_v53  ;;  %v693_v4 = vmax.f32 %v661_v54, 0.0 }
 0x112   : > { %v709_v9 = vmax.f32 %v677_v17, 0.0 }
 0x113   : > { %856 = vst.msk [vmem:[%s1428_s20 + $0x3c] sm:$0xf] %vm840_vm0, %v1026_v44  ;;  %872 = vst.msk [vmem:[%s1428_s20 + $0x7c] sm:$0xf] %vm840_vm0, %v1042_v18  ;;  %v1024_v10 = vpack.c.bf16 %v693_v4, %v693_v4 }
 0x114   : > { %v1040_v11 = vpack.c.bf16 %v709_v9, %v709_v9 }
 0x115   : > { %854 = vst.msk [vmem:[%s1428_s20 + $0x34] sm:$0xf] %vm840_vm0, %v1024_v10 }
 0x116   : > { %870 = vst.msk [vmem:[%s1428_s20 + $0x74] sm:$0xf] %vm840_vm0, %v1040_v11 }
 0x117 PF: > { %s14_s15 = sadd.s32 1, %s1248_s15  }
 0x118   : > { %p11_p4 = scmp.ge.s32.totalorder %s14_s15, 4  }
 0x11a   :  { %13 = sbr.rel (!%p11_p4) target bundleno = 1 (0x1), region = 69 }

// kernel: net_forward.29
= control target key start
LH: loop header
LB: loop body
LE: loop exit
PB: predicated region body
PF: predicated region fallthrough
CT: control target
= control target key end

     0   :  { %vm327_vm0 = vcmask 125952   ;;  %s630_s1 = inlined_call_operand.vmem [shape: bf16[128,16], index: 1, kind: input, shape index: {}]   ;;  %s631_s0 = inlined_call_operand.vmem [shape: bf16[128,128], index: 0, kind: input, shape index: {}]   ;;  %s632_s2 = inlined_call_operand.vmem [shape: f32[1,16], index: 2, kind: input, shape index: {}]   ;;  %s633_s3 = inlined_call_operand.vmem [shape: bf16[128,16], index: 3, kind: output, shape index: {}]  }
   0x1   :  { %v461_v0 = vld [vmem:[%s630_s1 + $0x38] sm:$0xff]   ;;  %v462_v1 = vld [vmem:[%s630_s1 + $0x30] sm:$0xff]   ;;  %v463_v2 = vld [vmem:[%s630_s1 + $0x28] sm:$0xff]  }
   0x2   :  { %413 = vmatprep.subr.bf16.mxu0 %v461_v0  ;;  %445 = vmatprep.subr.bf16.mxu1 %v461_v0  ;;  %v464_v3 = vld [vmem:[%s630_s1 + $0x20] sm:$0xff]   ;;  %v465_v6 = vld [vmem:[%s630_s1 + $0x18] sm:$0xff]   ;;  %v466_v7 = vld [vmem:[%s630_s1 + $0x10] sm:$0xff]  }
   0x3   :  { %414 = vmatpush3.bf16.msra.mxu0 %v461_v0  ;;  %453 = vmatpush3.bf16.msra.mxu1 %v461_v0  ;;  %v469_v4 = vld [vmem:[%s631_s0] sm:$0xff]   ;;  %v467_v8 = vld [vmem:[%s630_s1 + $0x8] sm:$0xff]   ;;  %v473_v12 = vld [vmem:[%s631_s0 + $0x10] sm:$0xff]  }
   0x4   :  { %415 = vmatprep.subr.bf16.mxu0 %v462_v1  ;;  %446 = vmatprep.subr.bf16.mxu1 %v462_v1  ;;  %v470_v5 = vld [vmem:[%s631_s0 + $0x20] sm:$0xff]   ;;  %v471_v10 = vld [vmem:[%s631_s0 + $0x8] sm:$0xff]   ;;  %v474_v13 = vld [vmem:[%s631_s0 + $0x30] sm:$0xff]  }
   0x5   :  { %429 = vmatprep.mubr.bf16.mxu0 %v469_v4  ;;  %437 = vmatprep.mubr.bf16.mxu1 %v470_v5  ;;  %v468_v9 = vld [vmem:[%s630_s1] sm:$0xff]   ;;  %v472_v11 = vld [vmem:[%s631_s0 + $0x28] sm:$0xff]   ;;  %v475_v14 = vld [vmem:[%s631_s0 + $0x18] sm:$0xff]  }
   0x6   :  { %v476_v15 = vld [vmem:[%s631_s0 + $0x38] sm:$0xff]   ;;  %v548_v16 = vld [vmem:[%s632_s2] ss:$0 sm:$0xff] }
   0x7   :  { %416 = vmatpush3.bf16.msra.mxu0 %v462_v1  ;;  %454 = vmatpush3.bf16.msra.mxu1 %v462_v1 }
   0x8   :  { %417 = vmatprep.subr.bf16.mxu0 %v463_v2  ;;  %447 = vmatprep.subr.bf16.mxu1 %v463_v2 }
   0xb   :  { %418 = vmatpush3.bf16.msra.mxu0 %v463_v2  ;;  %455 = vmatpush3.bf16.msra.mxu1 %v463_v2 }
   0xc   :  { %419 = vmatprep.subr.bf16.mxu0 %v464_v3  ;;  %448 = vmatprep.subr.bf16.mxu1 %v464_v3 }
   0xf   :  { %420 = vmatpush3.bf16.msra.mxu0 %v464_v3  ;;  %456 = vmatpush3.bf16.msra.mxu1 %v464_v3 }
  0x10   :  { %421 = vmatprep.subr.bf16.mxu0 %v465_v6  ;;  %449 = vmatprep.subr.bf16.mxu1 %v465_v6 }
  0x13   :  { %422 = vmatpush3.bf16.msra.mxu0 %v465_v6  ;;  %457 = vmatpush3.bf16.msra.mxu1 %v465_v6 }
  0x14   :  { %423 = vmatprep.subr.bf16.mxu0 %v466_v7  ;;  %450 = vmatprep.subr.bf16.mxu1 %v466_v7 }
  0x17   :  { %424 = vmatpush3.bf16.msra.mxu0 %v466_v7  ;;  %458 = vmatpush3.bf16.msra.mxu1 %v466_v7 }
  0x18   :  { %425 = vmatprep.subr.bf16.mxu0 %v467_v8  ;;  %451 = vmatprep.subr.bf16.mxu1 %v467_v8 }
  0x1b   :  { %426 = vmatpush3.bf16.msra.mxu0 %v467_v8  ;;  %459 = vmatpush3.bf16.msra.mxu1 %v467_v8 }
  0x1c   :  { %427 = vmatprep.subr.bf16.mxu0 %v468_v9  ;;  %452 = vmatprep.subr.bf16.mxu1 %v468_v9 }
  0x1f   :  { %428 = vmatpush3.bf16.msra.mxu0 %v468_v9  ;;  %460 = vmatpush3.bf16.msra.mxu1 %v468_v9 }
  0x22   :  { %430 = vmatmul.mubr.bf16.vlgmr.msra.gmra.mxu0 %v471_v10  ;;  %438 = vmatmul.mubr.bf16.vlgmr.msra.gmra.mxu1 %v472_v11 }
  0x23   :  { %433 = vmatprep.mubr.bf16.mxu0 %v473_v12  ;;  %441 = vmatprep.mubr.bf16.mxu1 %v474_v13 }
  0x2a   :  { %434 = vmatmul.mubr.bf16.gmra.mxu0 %v475_v14  ;;  %442 = vmatmul.mubr.bf16.gmra.mxu1 %v476_v15 }
  0xe2   :  { %v431_v17 = vpop.f32.mrf.mxu0  ;;  %v439_v18 = vpop.f32.mrf.mxu1 }
  0xe3   :  { %v193_v19 = vadd.f32 %v431_v17, %v548_v16  ;;  %v225_v20 = vadd.f32 %v439_v18, %v548_v16 }
  0xe4   :  { %v184_v21 = vpop.f32.mrf.mxu0  ;;  %v216_v22 = vpop.f32.mrf.mxu1 }
  0xe5   :  { %v249_v23 = vmax.f32 %v193_v19, 0.0  ;;  %v257_v24 = vmax.f32 %v225_v20, 0.0  ;;  %v185_v25 = vadd.f32 %v548_v16, %v184_v21  ;;  %v217_v26 = vadd.f32 %v548_v16, %v216_v22 }
  0xe6   :  { %v432_v27 = vpop.f32.mrf.mxu0  ;;  %v440_v28 = vpop.f32.mrf.mxu1 }
  0xe7   :  { %v383_v29 = vpack.c.bf16 %v249_v23, %v249_v23  ;;  %v391_v30 = vpack.c.bf16 %v257_v24, %v257_v24  ;;  %v247_v31 = vmax.f32 %v185_v25, 0.0  ;;  %v255_v32 = vmax.f32 %v217_v26, 0.0 }
  0xe8   :  { %v196_v33 = vadd.f32 %v432_v27, %v548_v16  ;;  %v228_v34 = vadd.f32 %v440_v28, %v548_v16  ;;  %v187_v35 = vpop.f32.mrf.mxu0  ;;  %v219_v36 = vpop.f32.mrf.mxu1 }
  0xe9   :  { %330 = vst.msk [vmem:[%s633_s3 + $0x8] sm:$0xf] %vm327_vm0, %v383_v29  ;;  %338 = vst.msk [vmem:[%s633_s3 + $0x28] sm:$0xf] %vm327_vm0, %v391_v30  ;;  %v381_v37 = vpack.c.bf16 %v247_v31, %v247_v31  ;;  %v389_v38 = vpack.c.bf16 %v255_v32, %v255_v32  ;;  %v188_v39 = vadd.f32 %v548_v16, %v187_v35 }
  0xea   :  { %v220_v40 = vadd.f32 %v548_v16, %v219_v36  ;;  %v250_v41 = vmax.f32 %v196_v33, 0.0  ;;  %v258_v42 = vmax.f32 %v228_v34, 0.0  ;;  %v435_v43 = vpop.f32.mrf.mxu0  ;;  %v443_v44 = vpop.f32.mrf.mxu1 }
  0xeb   :  { %328 = vst.msk [vmem:[%s633_s3] sm:$0xf] %vm327_vm0, %v381_v37  ;;  %336 = vst.msk [vmem:[%s633_s3 + $0x20] sm:$0xf] %vm327_vm0, %v389_v38  ;;  %v248_v45 = vmax.f32 %v188_v39, 0.0  ;;  %v209_v47 = vadd.f32 %v435_v43, %v548_v16  ;;  %v241_v48 = vadd.f32 %v443_v44, %v548_v16 }
  0xec   :  { %v256_v46 = vmax.f32 %v220_v40, 0.0  ;;  %v384_v49 = vpack.c.bf16 %v250_v41, %v250_v41  ;;  %v392_v50 = vpack.c.bf16 %v258_v42, %v258_v42  ;;  %v200_v51 = vpop.f32.mrf.mxu0  ;;  %v232_v52 = vpop.f32.mrf.mxu1 }
  0xed   :  { %v382_v53 = vpack.c.bf16 %v248_v45, %v248_v45  ;;  %v253_v55 = vmax.f32 %v209_v47, 0.0  ;;  %v261_v56 = vmax.f32 %v241_v48, 0.0  ;;  %v201_v57 = vadd.f32 %v548_v16, %v200_v51 }
  0xee   :  { %v390_v54 = vpack.c.bf16 %v256_v46, %v256_v46  ;;  %331 = vst.msk [vmem:[%s633_s3 + $0xc] sm:$0xf] %vm327_vm0, %v384_v49  ;;  %339 = vst.msk [vmem:[%s633_s3 + $0x2c] sm:$0xf] %vm327_vm0, %v392_v50  ;;  %v233_v58 = vadd.f32 %v548_v16, %v232_v52  ;;  %v436_v59 = vpop.f32.mrf.mxu0  ;;  %v444_v60 = vpop.f32.mrf.mxu1 }
  0xef   :  { %329 = vst.msk [vmem:[%s633_s3 + $0x4] sm:$0xf] %vm327_vm0, %v382_v53  ;;  %v387_v61 = vpack.c.bf16 %v253_v55, %v253_v55  ;;  %v395_v62 = vpack.c.bf16 %v261_v56, %v261_v56  ;;  %v212_v63 = vadd.f32 %v436_v59, %v548_v16  ;;  %v244_v0 = vadd.f32 %v444_v60, %v548_v16 }
  0xf0   :  { %337 = vst.msk [vmem:[%s633_s3 + $0x24] sm:$0xf] %vm327_vm0, %v390_v54  ;;  %v251_v1 = vmax.f32 %v201_v57, 0.0  ;;  %v259_v2 = vmax.f32 %v233_v58, 0.0  ;;  %v203_v3 = vpop.f32.mrf.mxu0  ;;  %v235_v4 = vpop.f32.mrf.mxu1 }
  0xf1   :  { %334 = vst.msk [vmem:[%s633_s3 + $0x18] sm:$0xf] %vm327_vm0, %v387_v61  ;;  %342 = vst.msk [vmem:[%s633_s3 + $0x38] sm:$0xf] %vm327_vm0, %v395_v62  ;;  %v254_v5 = vmax.f32 %v212_v63, 0.0  ;;  %v262_v6 = vmax.f32 %v244_v0, 0.0  ;;  %v204_v7 = vadd.f32 %v548_v16, %v203_v3  ;;  %v236_v8 = vadd.f32 %v548_v16, %v235_v4 }
  0xf2   :  { %v385_v9 = vpack.c.bf16 %v251_v1, %v251_v1  ;;  %v393_v10 = vpack.c.bf16 %v259_v2, %v259_v2 }
  0xf3   :  { %v388_v11 = vpack.c.bf16 %v254_v5, %v254_v5  ;;  %v396_v12 = vpack.c.bf16 %v262_v6, %v262_v6  ;;  %v252_v13 = vmax.f32 %v204_v7, 0.0  ;;  %v260_v14 = vmax.f32 %v236_v8, 0.0 }
  0xf4   :  { %332 = vst.msk [vmem:[%s633_s3 + $0x10] sm:$0xf] %vm327_vm0, %v385_v9  ;;  %340 = vst.msk [vmem:[%s633_s3 + $0x30] sm:$0xf] %vm327_vm0, %v393_v10 }
  0xf5   :  { %335 = vst.msk [vmem:[%s633_s3 + $0x1c] sm:$0xf] %vm327_vm0, %v388_v11  ;;  %343 = vst.msk [vmem:[%s633_s3 + $0x3c] sm:$0xf] %vm327_vm0, %v396_v12  ;;  %v386_v15 = vpack.c.bf16 %v252_v13, %v252_v13  ;;  %v394_v16 = vpack.c.bf16 %v260_v14, %v260_v14 }
  0xf7   :  { %333 = vst.msk [vmem:[%s633_s3 + $0x14] sm:$0xf] %vm327_vm0, %v386_v15  ;;  %341 = vst.msk [vmem:[%s633_s3 + $0x34] sm:$0xf] %vm327_vm0, %v394_v16 }

// kernel: net_forward.28
= control target key start
LH: loop header
LB: loop body
LE: loop exit
PB: predicated region body
PF: predicated region fallthrough
CT: control target
= control target key end

     0   :  { %vm311_vm0 = vcmask 125952   ;;  %s596_s1 = inlined_call_operand.vmem [shape: bf16[128,16], index: 1, kind: input, shape index: {}]   ;;  %s597_s0 = inlined_call_operand.vmem [shape: bf16[128,128], index: 0, kind: input, shape index: {}]   ;;  %s598_s2 = inlined_call_operand.vmem [shape: f32[1,16], index: 2, kind: input, shape index: {}]   ;;  %s599_s3 = inlined_call_operand.vmem [shape: bf16[128,16], index: 3, kind: output, shape index: {}]  }
   0x1   :  { %v445_v0 = vld [vmem:[%s596_s1 + $0x38] sm:$0xff]   ;;  %v446_v1 = vld [vmem:[%s596_s1 + $0x30] sm:$0xff]   ;;  %v447_v2 = vld [vmem:[%s596_s1 + $0x28] sm:$0xff]  }
   0x2   :  { %397 = vmatprep.subr.bf16.mxu0 %v445_v0  ;;  %429 = vmatprep.subr.bf16.mxu1 %v445_v0  ;;  %v448_v3 = vld [vmem:[%s596_s1 + $0x20] sm:$0xff]   ;;  %v449_v6 = vld [vmem:[%s596_s1 + $0x18] sm:$0xff]   ;;  %v450_v7 = vld [vmem:[%s596_s1 + $0x10] sm:$0xff]  }
   0x3   :  { %398 = vmatpush3.bf16.msra.mxu0 %v445_v0  ;;  %437 = vmatpush3.bf16.msra.mxu1 %v445_v0  ;;  %v453_v4 = vld [vmem:[%s597_s0] sm:$0xff]   ;;  %v451_v8 = vld [vmem:[%s596_s1 + $0x8] sm:$0xff]   ;;  %v457_v12 = vld [vmem:[%s597_s0 + $0x10] sm:$0xff]  }
   0x4   :  { %399 = vmatprep.subr.bf16.mxu0 %v446_v1  ;;  %430 = vmatprep.subr.bf16.mxu1 %v446_v1  ;;  %v454_v5 = vld [vmem:[%s597_s0 + $0x20] sm:$0xff]   ;;  %v455_v10 = vld [vmem:[%s597_s0 + $0x8] sm:$0xff]   ;;  %v458_v13 = vld [vmem:[%s597_s0 + $0x30] sm:$0xff]  }
   0x5   :  { %413 = vmatprep.mubr.bf16.mxu0 %v453_v4  ;;  %421 = vmatprep.mubr.bf16.mxu1 %v454_v5  ;;  %v452_v9 = vld [vmem:[%s596_s1] sm:$0xff]   ;;  %v456_v11 = vld [vmem:[%s597_s0 + $0x28] sm:$0xff]   ;;  %v459_v14 = vld [vmem:[%s597_s0 + $0x18] sm:$0xff]  }
   0x6   :  { %v460_v15 = vld [vmem:[%s597_s0 + $0x38] sm:$0xff]   ;;  %v332_v16 = vld [vmem:[%s598_s2] ss:$0 sm:$0xff] }
   0x7   :  { %400 = vmatpush3.bf16.msra.mxu0 %v446_v1  ;;  %438 = vmatpush3.bf16.msra.mxu1 %v446_v1 }
   0x8   :  { %401 = vmatprep.subr.bf16.mxu0 %v447_v2  ;;  %431 = vmatprep.subr.bf16.mxu1 %v447_v2 }
   0xb   :  { %402 = vmatpush3.bf16.msra.mxu0 %v447_v2  ;;  %439 = vmatpush3.bf16.msra.mxu1 %v447_v2 }
   0xc   :  { %403 = vmatprep.subr.bf16.mxu0 %v448_v3  ;;  %432 = vmatprep.subr.bf16.mxu1 %v448_v3 }
   0xf   :  { %404 = vmatpush3.bf16.msra.mxu0 %v448_v3  ;;  %440 = vmatpush3.bf16.msra.mxu1 %v448_v3 }
  0x10   :  { %405 = vmatprep.subr.bf16.mxu0 %v449_v6  ;;  %433 = vmatprep.subr.bf16.mxu1 %v449_v6 }
  0x13   :  { %406 = vmatpush3.bf16.msra.mxu0 %v449_v6  ;;  %441 = vmatpush3.bf16.msra.mxu1 %v449_v6 }
  0x14   :  { %407 = vmatprep.subr.bf16.mxu0 %v450_v7  ;;  %434 = vmatprep.subr.bf16.mxu1 %v450_v7 }
  0x17   :  { %408 = vmatpush3.bf16.msra.mxu0 %v450_v7  ;;  %442 = vmatpush3.bf16.msra.mxu1 %v450_v7 }
  0x18   :  { %409 = vmatprep.subr.bf16.mxu0 %v451_v8  ;;  %435 = vmatprep.subr.bf16.mxu1 %v451_v8 }
  0x1b   :  { %410 = vmatpush3.bf16.msra.mxu0 %v451_v8  ;;  %443 = vmatpush3.bf16.msra.mxu1 %v451_v8 }
  0x1c   :  { %411 = vmatprep.subr.bf16.mxu0 %v452_v9  ;;  %436 = vmatprep.subr.bf16.mxu1 %v452_v9 }
  0x1f   :  { %412 = vmatpush3.bf16.msra.mxu0 %v452_v9  ;;  %444 = vmatpush3.bf16.msra.mxu1 %v452_v9 }
  0x22   :  { %414 = vmatmul.mubr.bf16.vlgmr.msra.gmra.mxu0 %v455_v10  ;;  %422 = vmatmul.mubr.bf16.vlgmr.msra.gmra.mxu1 %v456_v11 }
  0x23   :  { %417 = vmatprep.mubr.bf16.mxu0 %v457_v12  ;;  %425 = vmatprep.mubr.bf16.mxu1 %v458_v13 }
  0x2a   :  { %418 = vmatmul.mubr.bf16.gmra.mxu0 %v459_v14  ;;  %426 = vmatmul.mubr.bf16.gmra.mxu1 %v460_v15 }
  0xe2   :  { %v415_v17 = vpop.f32.mrf.mxu0  ;;  %v423_v18 = vpop.f32.mrf.mxu1 }
  0xe3   :  { %v193_v19 = vadd.f32 %v415_v17, %v332_v16  ;;  %v225_v20 = vadd.f32 %v423_v18, %v332_v16 }
  0xe4   :  { %v184_v21 = vpop.f32.mrf.mxu0  ;;  %v216_v22 = vpop.f32.mrf.mxu1 }
  0xe5   :  { %v367_v23 = vpack.c.bf16 %v193_v19, %v193_v19  ;;  %v375_v24 = vpack.c.bf16 %v225_v20, %v225_v20  ;;  %v185_v25 = vadd.f32 %v332_v16, %v184_v21  ;;  %v217_v26 = vadd.f32 %v332_v16, %v216_v22 }
  0xe6   :  { %v416_v27 = vpop.f32.mrf.mxu0  ;;  %v424_v28 = vpop.f32.mrf.mxu1 }
  0xe7   :  { %314 = vst.msk [vmem:[%s599_s3 + $0x8] sm:$0xf] %vm311_vm0, %v367_v23  ;;  %322 = vst.msk [vmem:[%s599_s3 + $0x28] sm:$0xf] %vm311_vm0, %v375_v24  ;;  %v365_v29 = vpack.c.bf16 %v185_v25, %v185_v25  ;;  %v373_v30 = vpack.c.bf16 %v217_v26, %v217_v26  ;;  %v196_v31 = vadd.f32 %v416_v27, %v332_v16 }
  0xe8   :  { %v228_v32 = vadd.f32 %v424_v28, %v332_v16  ;;  %v187_v33 = vpop.f32.mrf.mxu0  ;;  %v219_v34 = vpop.f32.mrf.mxu1 }
  0xe9   :  { %312 = vst.msk [vmem:[%s599_s3] sm:$0xf] %vm311_vm0, %v365_v29  ;;  %320 = vst.msk [vmem:[%s599_s3 + $0x20] sm:$0xf] %vm311_vm0, %v373_v30  ;;  %v368_v35 = vpack.c.bf16 %v196_v31, %v196_v31  ;;  %v188_v37 = vadd.f32 %v332_v16, %v187_v33  ;;  %v220_v38 = vadd.f32 %v332_v16, %v219_v34 }
  0xea   :  { %v376_v36 = vpack.c.bf16 %v228_v32, %v228_v32  ;;  %v419_v39 = vpop.f32.mrf.mxu0  ;;  %v427_v40 = vpop.f32.mrf.mxu1 }
  0xeb   :  { %315 = vst.msk [vmem:[%s599_s3 + $0xc] sm:$0xf] %vm311_vm0, %v368_v35  ;;  %v366_v41 = vpack.c.bf16 %v188_v37, %v188_v37  ;;  %v374_v42 = vpack.c.bf16 %v220_v38, %v220_v38  ;;  %v209_v43 = vadd.f32 %v419_v39, %v332_v16  ;;  %v241_v44 = vadd.f32 %v427_v40, %v332_v16 }
  0xec   :  { %323 = vst.msk [vmem:[%s599_s3 + $0x2c] sm:$0xf] %vm311_vm0, %v376_v36  ;;  %v200_v45 = vpop.f32.mrf.mxu0  ;;  %v232_v46 = vpop.f32.mrf.mxu1 }
  0xed   :  { %313 = vst.msk [vmem:[%s599_s3 + $0x4] sm:$0xf] %vm311_vm0, %v366_v41  ;;  %321 = vst.msk [vmem:[%s599_s3 + $0x24] sm:$0xf] %vm311_vm0, %v374_v42  ;;  %v371_v47 = vpack.c.bf16 %v209_v43, %v209_v43  ;;  %v379_v48 = vpack.c.bf16 %v241_v44, %v241_v44  ;;  %v201_v49 = vadd.f32 %v332_v16, %v200_v45 }
  0xee   :  { %v233_v50 = vadd.f32 %v332_v16, %v232_v46  ;;  %v420_v51 = vpop.f32.mrf.mxu0  ;;  %v428_v52 = vpop.f32.mrf.mxu1 }
  0xef   :  { %318 = vst.msk [vmem:[%s599_s3 + $0x18] sm:$0xf] %vm311_vm0, %v371_v47  ;;  %326 = vst.msk [vmem:[%s599_s3 + $0x38] sm:$0xf] %vm311_vm0, %v379_v48  ;;  %v369_v53 = vpack.c.bf16 %v201_v49, %v201_v49  ;;  %v212_v55 = vadd.f32 %v420_v51, %v332_v16  ;;  %v244_v56 = vadd.f32 %v428_v52, %v332_v16 }
  0xf0   :  { %v377_v54 = vpack.c.bf16 %v233_v50, %v233_v50  ;;  %v203_v57 = vpop.f32.mrf.mxu0  ;;  %v235_v58 = vpop.f32.mrf.mxu1 }
  0xf1   :  { %316 = vst.msk [vmem:[%s599_s3 + $0x10] sm:$0xf] %vm311_vm0, %v369_v53  ;;  %v372_v59 = vpack.c.bf16 %v212_v55, %v212_v55  ;;  %v380_v60 = vpack.c.bf16 %v244_v56, %v244_v56  ;;  %v204_v61 = vadd.f32 %v332_v16, %v203_v57  ;;  %v236_v62 = vadd.f32 %v332_v16, %v235_v58 }
  0xf2   :  { %324 = vst.msk [vmem:[%s599_s3 + $0x30] sm:$0xf] %vm311_vm0, %v377_v54 }
  0xf3   :  { %319 = vst.msk [vmem:[%s599_s3 + $0x1c] sm:$0xf] %vm311_vm0, %v372_v59  ;;  %327 = vst.msk [vmem:[%s599_s3 + $0x3c] sm:$0xf] %vm311_vm0, %v380_v60  ;;  %v370_v63 = vpack.c.bf16 %v204_v61, %v204_v61  ;;  %v378_v0 = vpack.c.bf16 %v236_v62, %v236_v62 }
  0xf5   :  { %317 = vst.msk [vmem:[%s599_s3 + $0x14] sm:$0xf] %vm311_vm0, %v370_v63  ;;  %325 = vst.msk [vmem:[%s599_s3 + $0x34] sm:$0xf] %vm311_vm0, %v378_v0 }

// kernel: net_forward.31
= control target key start
LH: loop header
LB: loop body
LE: loop exit
PB: predicated region body
PF: predicated region fallthrough
CT: control target
= control target key end

     0   :  { %vm423_vm0 = vcmask 125952   ;;  %s830_s1 = inlined_call_operand.vmem [shape: bf16[256,16], index: 1, kind: input, shape index: {}]   ;;  %s831_s0 = inlined_call_operand.vmem [shape: bf16[128,256], index: 0, kind: input, shape index: {}]   ;;  %s832_s2 = inlined_call_operand.vmem [shape: f32[1,16], index: 2, kind: input, shape index: {}]   ;;  %s833_s3 = inlined_call_operand.vmem [shape: bf16[128,16], index: 3, kind: output, shape index: {}]  }
   0x1   :  { %v589_v0 = vld [vmem:[%s830_s1 + $0x78] sm:$0xff]   ;;  %v591_v2 = vld [vmem:[%s830_s1 + $0x70] sm:$0xff]   ;;  %v593_v4 = vld [vmem:[%s830_s1 + $0x68] sm:$0xff]  }
   0x2   :  { %v590_v1 = vld [vmem:[%s830_s1 + $0x38] sm:$0xff]   ;;  %509 = vmatprep.subr.bf16.mxu0 %v589_v0  ;;  %573 = vmatprep.subr.bf16.mxu1 %v589_v0  ;;  %v592_v3 = vld [vmem:[%s830_s1 + $0x30] sm:$0xff]   ;;  %v594_v5 = vld [vmem:[%s830_s1 + $0x28] sm:$0xff]  }
   0x3   :  { %510 = vmatpush3.bf16.msra.mxu0 %v590_v1  ;;  %581 = vmatpush3.bf16.msra.mxu1 %v590_v1  ;;  %v595_v6 = vld [vmem:[%s830_s1 + $0x60] sm:$0xff]   ;;  %v597_v8 = vld [vmem:[%s830_s1 + $0x58] sm:$0xff]   ;;  %v599_v10 = vld [vmem:[%s830_s1 + $0x50] sm:$0xff]  }
   0x4   :  { %511 = vmatprep.subr.bf16.mxu0 %v591_v2  ;;  %574 = vmatprep.subr.bf16.mxu1 %v591_v2  ;;  %v596_v7 = vld [vmem:[%s830_s1 + $0x20] sm:$0xff]   ;;  %v598_v9 = vld [vmem:[%s830_s1 + $0x18] sm:$0xff]   ;;  %v600_v13 = vld [vmem:[%s830_s1 + $0x10] sm:$0xff]  }
   0x5   :  { %v607_v11 = vld [vmem:[%s831_s0 + $0x4] ss:$8 sps:$4 sm:$0xff]   ;;  %v605_v18 = vld [vmem:[%s831_s0] ss:$8 sps:$4 sm:$0xff]   ;;  %v611_v20 = vld [vmem:[%s831_s0 + $0x14] ss:$8 sps:$4 sm:$0xff]  }
   0x6   :  { %v610_v12 = vld [vmem:[%s831_s0 + $0x44] ss:$8 sps:$4 sm:$0xff]   ;;  %278 = vmatprep.mubr.bf16.mxu0 %v607_v11  ;;  %v608_v19 = vld [vmem:[%s831_s0 + $0x40] ss:$8 sps:$4 sm:$0xff]   ;;  %v613_v21 = vld [vmem:[%s831_s0 + $0x54] ss:$8 sps:$4 sm:$0xff]  }
   0x7   :  { %512 = vmatpush3.bf16.msra.mxu0 %v592_v3  ;;  %582 = vmatpush3.bf16.msra.mxu1 %v592_v3  ;;  %v601_v14 = vld [vmem:[%s830_s1 + $0x48] sm:$0xff]   ;;  %v603_v16 = vld [vmem:[%s830_s1 + $0x40] sm:$0xff]   ;;  %v615_v22 = vld [vmem:[%s831_s0 + $0x10] ss:$8 sps:$4 sm:$0xff]  }
   0x8   :  { %513 = vmatprep.subr.bf16.mxu0 %v593_v4  ;;  %575 = vmatprep.subr.bf16.mxu1 %v593_v4  ;;  %v602_v15 = vld [vmem:[%s830_s1 + $0x8] sm:$0xff]   ;;  %v604_v17 = vld [vmem:[%s830_s1] sm:$0xff]   ;;  %v616_v23 = vld [vmem:[%s831_s0 + $0x50] ss:$8 sps:$4 sm:$0xff]  }
   0x9   :  { %310 = vmatprep.mubr.bf16.mxu1 %v610_v12  ;;  %v617_v24 = vld [vmem:[%s831_s0 + $0x24] ss:$8 sps:$4 sm:$0xff]   ;;  %v621_v26 = vld [vmem:[%s831_s0 + $0x20] ss:$8 sps:$4 sm:$0xff]   ;;  %v623_v28 = vld [vmem:[%s831_s0 + $0x34] ss:$8 sps:$4 sm:$0xff]  }
   0xa   :  { %v619_v25 = vld [vmem:[%s831_s0 + $0x64] ss:$8 sps:$4 sm:$0xff]   ;;  %v622_v27 = vld [vmem:[%s831_s0 + $0x60] ss:$8 sps:$4 sm:$0xff]   ;;  %v625_v29 = vld [vmem:[%s831_s0 + $0x74] ss:$8 sps:$4 sm:$0xff]  }
   0xb   :  { %514 = vmatpush3.bf16.msra.mxu0 %v594_v5  ;;  %583 = vmatpush3.bf16.msra.mxu1 %v594_v5  ;;  %v627_v30 = vld [vmem:[%s831_s0 + $0x30] ss:$8 sps:$4 sm:$0xff]   ;;  %v748_v34 = vld [vmem:[%s832_s2] ss:$0 sm:$0xff] }
   0xc   :  { %515 = vmatprep.subr.bf16.mxu0 %v595_v6  ;;  %576 = vmatprep.subr.bf16.mxu1 %v595_v6  ;;  %v628_v31 = vld [vmem:[%s831_s0 + $0x70] ss:$8 sps:$4 sm:$0xff]  }
   0xf   :  { %516 = vmatpush3.bf16.msra.mxu0 %v596_v7  ;;  %584 = vmatpush3.bf16.msra.mxu1 %v596_v7 }
  0x10   :  { %517 = vmatprep.subr.bf16.mxu0 %v597_v8  ;;  %577 = vmatprep.subr.bf16.mxu1 %v597_v8 }
  0x13   :  { %518 = vmatpush3.bf16.msra.mxu0 %v598_v9  ;;  %585 = vmatpush3.bf16.msra.mxu1 %v598_v9 }
  0x14   :  { %519 = vmatprep.subr.bf16.mxu0 %v599_v10  ;;  %578 = vmatprep.subr.bf16.mxu1 %v599_v10 }
  0x17   :  { %520 = vmatpush3.bf16.msra.mxu0 %v600_v13  ;;  %586 = vmatpush3.bf16.msra.mxu1 %v600_v13 }
  0x18   :  { %521 = vmatprep.subr.bf16.mxu0 %v601_v14  ;;  %579 = vmatprep.subr.bf16.mxu1 %v601_v14 }
  0x1b   :  { %522 = vmatpush3.bf16.msra.mxu0 %v602_v15  ;;  %587 = vmatpush3.bf16.msra.mxu1 %v602_v15 }
  0x1c   :  { %523 = vmatprep.subr.bf16.mxu0 %v603_v16  ;;  %580 = vmatprep.subr.bf16.mxu1 %v603_v16 }
  0x1f   :  { %524 = vmatpush3.bf16.msra.mxu0 %v604_v17  ;;  %588 = vmatpush3.bf16.msra.mxu1 %v604_v17 }
  0x22   :  { %279 = vmatmul.mubr.bf16.vlgmr.msra.gmra.mxu0 %v605_v18  ;;  %311 = vmatmul.mubr.bf16.vlgmr.msra.gmra.mxu1 %v608_v19 }
  0x23   :  { %286 = vmatprep.mubr.bf16.mxu0 %v611_v20  ;;  %318 = vmatprep.mubr.bf16.mxu1 %v613_v21 }
  0x2a   :  { %287 = vmatmul.mubr.bf16.gmra.mxu0 %v615_v22  ;;  %319 = vmatmul.mubr.bf16.gmra.mxu1 %v616_v23 }
  0x2b   :  { %294 = vmatprep.mubr.bf16.mxu0 %v617_v24  ;;  %326 = vmatprep.mubr.bf16.mxu1 %v619_v25 }
  0x32   :  { %295 = vmatmul.mubr.bf16.gmra.mxu0 %v621_v26  ;;  %327 = vmatmul.mubr.bf16.gmra.mxu1 %v622_v27 }
  0x33   :  { %302 = vmatprep.mubr.bf16.mxu0 %v623_v28  ;;  %334 = vmatprep.mubr.bf16.mxu1 %v625_v29 }
  0x3a   :  { %303 = vmatmul.mubr.bf16.gmra.mxu0 %v627_v30  ;;  %335 = vmatmul.mubr.bf16.gmra.mxu1 %v628_v31 }
  0xe2   :  { %v525_v32 = vpop.f32.mrf.mxu0  ;;  %v549_v33 = vpop.f32.mrf.mxu1 }
  0xe4   :  { %v526_v35 = vpop.f32.mrf.mxu0  ;;  %v550_v36 = vpop.f32.mrf.mxu1 }
  0xe5   :  { %v527_v37 = vadd.f32 %v526_v35, %v525_v32  ;;  %v551_v38 = vadd.f32 %v550_v36, %v549_v33 }
  0xe6   :  { %v528_v39 = vpop.f32.mrf.mxu0  ;;  %v552_v40 = vpop.f32.mrf.mxu1 }
  0xe7   :  { %v281_v41 = vadd.f32 %v527_v37, %v748_v34  ;;  %v313_v42 = vadd.f32 %v551_v38, %v748_v34 }
  0xe8   :  { %v529_v43 = vpop.f32.mrf.mxu0  ;;  %v553_v44 = vpop.f32.mrf.mxu1 }
  0xe9   :  { %v343_v45 = vmax.f32 %v281_v41, 0.0  ;;  %v351_v46 = vmax.f32 %v313_v42, 0.0  ;;  %v530_v47 = vadd.f32 %v529_v43, %v528_v39  ;;  %v554_v48 = vadd.f32 %v553_v44, %v552_v40 }
  0xea   :  { %v531_v49 = vpop.f32.mrf.mxu0  ;;  %v555_v50 = vpop.f32.mrf.mxu1 }
  0xeb   :  { %v493_v51 = vpack.c.bf16 %v343_v45, %v343_v45  ;;  %v501_v52 = vpack.c.bf16 %v351_v46, %v351_v46  ;;  %v284_v53 = vadd.f32 %v530_v47, %v748_v34  ;;  %v316_v54 = vadd.f32 %v554_v48, %v748_v34 }
  0xec   :  { %v532_v55 = vpop.f32.mrf.mxu0  ;;  %v556_v56 = vpop.f32.mrf.mxu1 }
  0xed   :  { %424 = vst.msk [vmem:[%s833_s3] sm:$0xf] %vm423_vm0, %v493_v51  ;;  %432 = vst.msk [vmem:[%s833_s3 + $0x20] sm:$0xf] %vm423_vm0, %v501_v52  ;;  %v344_v57 = vmax.f32 %v284_v53, 0.0  ;;  %v352_v58 = vmax.f32 %v316_v54, 0.0  ;;  %v533_v59 = vadd.f32 %v532_v55, %v531_v49  ;;  %v557_v60 = vadd.f32 %v556_v56, %v555_v50 }
  0xee   :  { %v534_v61 = vpop.f32.mrf.mxu0  ;;  %v558_v62 = vpop.f32.mrf.mxu1 }
  0xef   :  { %v494_v63 = vpack.c.bf16 %v344_v57, %v344_v57  ;;  %v502_v0 = vpack.c.bf16 %v352_v58, %v352_v58  ;;  %v289_v1 = vadd.f32 %v533_v59, %v748_v34  ;;  %v321_v2 = vadd.f32 %v557_v60, %v748_v34 }
  0xf0   :  { %v535_v3 = vpop.f32.mrf.mxu0  ;;  %v559_v4 = vpop.f32.mrf.mxu1 }
  0xf1   :  { %425 = vst.msk [vmem:[%s833_s3 + $0x4] sm:$0xf] %vm423_vm0, %v494_v63  ;;  %433 = vst.msk [vmem:[%s833_s3 + $0x24] sm:$0xf] %vm423_vm0, %v502_v0  ;;  %v345_v5 = vmax.f32 %v289_v1, 0.0  ;;  %v353_v6 = vmax.f32 %v321_v2, 0.0  ;;  %v536_v7 = vadd.f32 %v535_v3, %v534_v61  ;;  %v560_v8 = vadd.f32 %v559_v4, %v558_v62 }
  0xf2   :  { %v537_v9 = vpop.f32.mrf.mxu0  ;;  %v561_v10 = vpop.f32.mrf.mxu1 }
  0xf3   :  { %v495_v11 = vpack.c.bf16 %v345_v5, %v345_v5  ;;  %v503_v12 = vpack.c.bf16 %v353_v6, %v353_v6  ;;  %v292_v13 = vadd.f32 %v536_v7, %v748_v34  ;;  %v324_v14 = vadd.f32 %v560_v8, %v748_v34 }
  0xf4   :  { %v538_v15 = vpop.f32.mrf.mxu0  ;;  %v562_v16 = vpop.f32.mrf.mxu1 }
  0xf5   :  { %426 = vst.msk [vmem:[%s833_s3 + $0x8] sm:$0xf] %vm423_vm0, %v495_v11  ;;  %434 = vst.msk [vmem:[%s833_s3 + $0x28] sm:$0xf] %vm423_vm0, %v503_v12  ;;  %v346_v17 = vmax.f32 %v292_v13, 0.0  ;;  %v354_v18 = vmax.f32 %v324_v14, 0.0  ;;  %v539_v19 = vadd.f32 %v538_v15, %v537_v9  ;;  %v563_v20 = vadd.f32 %v562_v16, %v561_v10 }
  0xf6   :  { %v540_v21 = vpop.f32.mrf.mxu0  ;;  %v564_v22 = vpop.f32.mrf.mxu1 }
  0xf7   :  { %v496_v23 = vpack.c.bf16 %v346_v17, %v346_v17  ;;  %v504_v24 = vpack.c.bf16 %v354_v18, %v354_v18  ;;  %v297_v25 = vadd.f32 %v539_v19, %v748_v34  ;;  %v329_v26 = vadd.f32 %v563_v20, %v748_v34 }
  0xf8   :  { %v541_v27 = vpop.f32.mrf.mxu0  ;;  %v565_v28 = vpop.f32.mrf.mxu1 }
  0xf9   :  { %427 = vst.msk [vmem:[%s833_s3 + $0xc] sm:$0xf] %vm423_vm0, %v496_v23  ;;  %435 = vst.msk [vmem:[%s833_s3 + $0x2c] sm:$0xf] %vm423_vm0, %v504_v24  ;;  %v347_v29 = vmax.f32 %v297_v25, 0.0  ;;  %v355_v30 = vmax.f32 %v329_v26, 0.0  ;;  %v542_v31 = vadd.f32 %v541_v27, %v540_v21  ;;  %v566_v32 = vadd.f32 %v565_v28, %v564_v22 }
  0xfa   :  { %v543_v33 = vpop.f32.mrf.mxu0  ;;  %v567_v35 = vpop.f32.mrf.mxu1 }
  0xfb   :  { %v497_v36 = vpack.c.bf16 %v347_v29, %v347_v29  ;;  %v505_v37 = vpack.c.bf16 %v355_v30, %v355_v30  ;;  %v300_v38 = vadd.f32 %v542_v31, %v748_v34  ;;  %v332_v39 = vadd.f32 %v566_v32, %v748_v34 }
  0xfc   :  { %v544_v40 = vpop.f32.mrf.mxu0  ;;  %v568_v41 = vpop.f32.mrf.mxu1 }
  0xfd   :  { %428 = vst.msk [vmem:[%s833_s3 + $0x10] sm:$0xf] %vm423_vm0, %v497_v36  ;;  %436 = vst.msk [vmem:[%s833_s3 + $0x30] sm:$0xf] %vm423_vm0, %v505_v37  ;;  %v348_v42 = vmax.f32 %v300_v38, 0.0  ;;  %v356_v43 = vmax.f32 %v332_v39, 0.0  ;;  %v545_v44 = vadd.f32 %v544_v40, %v543_v33  ;;  %v569_v45 = vadd.f32 %v568_v41, %v567_v35 }
  0xfe   :  { %v546_v46 = vpop.f32.mrf.mxu0  ;;  %v570_v47 = vpop.f32.mrf.mxu1 }
  0xff   :  { %v498_v48 = vpack.c.bf16 %v348_v42, %v348_v42  ;;  %v506_v49 = vpack.c.bf16 %v356_v43, %v356_v43  ;;  %v305_v50 = vadd.f32 %v545_v44, %v748_v34  ;;  %v337_v51 = vadd.f32 %v569_v45, %v748_v34 }
 0x100   :  { %v547_v52 = vpop.f32.mrf.mxu0  ;;  %v571_v53 = vpop.f32.mrf.mxu1 }
 0x101   :  { %429 = vst.msk [vmem:[%s833_s3 + $0x14] sm:$0xf] %vm423_vm0, %v498_v48  ;;  %437 = vst.msk [vmem:[%s833_s3 + $0x34] sm:$0xf] %vm423_vm0, %v506_v49  ;;  %v349_v54 = vmax.f32 %v305_v50, 0.0  ;;  %v357_v55 = vmax.f32 %v337_v51, 0.0  ;;  %v548_v56 = vadd.f32 %v547_v52, %v546_v46  ;;  %v572_v57 = vadd.f32 %v571_v53, %v570_v47 }
 0x103   :  { %v499_v58 = vpack.c.bf16 %v349_v54, %v349_v54  ;;  %v507_v59 = vpack.c.bf16 %v357_v55, %v357_v55  ;;  %v308_v60 = vadd.f32 %v548_v56, %v748_v34  ;;  %v340_v61 = vadd.f32 %v572_v57, %v748_v34 }
 0x105   :  { %430 = vst.msk [vmem:[%s833_s3 + $0x18] sm:$0xf] %vm423_vm0, %v499_v58  ;;  %438 = vst.msk [vmem:[%s833_s3 + $0x38] sm:$0xf] %vm423_vm0, %v507_v59  ;;  %v350_v62 = vmax.f32 %v308_v60, 0.0  ;;  %v358_v63 = vmax.f32 %v340_v61, 0.0 }
 0x107   :  { %v500_v0 = vpack.c.bf16 %v350_v62, %v350_v62  ;;  %v508_v1 = vpack.c.bf16 %v358_v63, %v358_v63 }
 0x109   :  { %431 = vst.msk [vmem:[%s833_s3 + $0x1c] sm:$0xf] %vm423_vm0, %v500_v0  ;;  %439 = vst.msk [vmem:[%s833_s3 + $0x3c] sm:$0xf] %vm423_vm0, %v508_v1 }

// kernel: net_forward.30
= control target key start
LH: loop header
LB: loop body
LE: loop exit
PB: predicated region body
PF: predicated region fallthrough
CT: control target
= control target key end

     0   :  { %vm474_vm0 = vcmask 125952   ;;  %s949_s1 = inlined_call_operand.vmem [shape: bf16[256,16], index: 1, kind: input, shape index: {}]   ;;  %s950_s0 = inlined_call_operand.vmem [shape: bf16[128,256], index: 0, kind: input, shape index: {}]   ;;  %s951_s3 = inlined_call_operand.vmem [shape: bf16[128,16], index: 3, kind: input, shape index: {}]   ;;  %s952_s2 = inlined_call_operand.vmem [shape: f32[1,16], index: 2, kind: input, shape index: {}]   ;;  %s953_s4 = inlined_call_operand.vmem [shape: bf16[128,16], index: 4, kind: output, shape index: {}]  }
   0x1   :  { %v679_v0 = vld [vmem:[%s949_s1 + $0x78] sm:$0xff]   ;;  %v681_v2 = vld [vmem:[%s949_s1 + $0x70] sm:$0xff]   ;;  %v683_v4 = vld [vmem:[%s949_s1 + $0x68] sm:$0xff]  }
   0x2   :  { %v680_v1 = vld [vmem:[%s949_s1 + $0x38] sm:$0xff]   ;;  %599 = vmatprep.subr.bf16.mxu0 %v679_v0  ;;  %663 = vmatprep.subr.bf16.mxu1 %v679_v0  ;;  %v682_v3 = vld [vmem:[%s949_s1 + $0x30] sm:$0xff]   ;;  %v684_v5 = vld [vmem:[%s949_s1 + $0x28] sm:$0xff]  }
   0x3   :  { %600 = vmatpush3.bf16.msra.mxu0 %v680_v1  ;;  %671 = vmatpush3.bf16.msra.mxu1 %v680_v1  ;;  %v685_v6 = vld [vmem:[%s949_s1 + $0x60] sm:$0xff]   ;;  %v687_v8 = vld [vmem:[%s949_s1 + $0x58] sm:$0xff]   ;;  %v689_v10 = vld [vmem:[%s949_s1 + $0x50] sm:$0xff]  }
   0x4   :  { %601 = vmatprep.subr.bf16.mxu0 %v681_v2  ;;  %664 = vmatprep.subr.bf16.mxu1 %v681_v2  ;;  %v686_v7 = vld [vmem:[%s949_s1 + $0x20] sm:$0xff]   ;;  %v688_v9 = vld [vmem:[%s949_s1 + $0x18] sm:$0xff]   ;;  %v690_v13 = vld [vmem:[%s949_s1 + $0x10] sm:$0xff]  }
   0x5   :  { %v697_v11 = vld [vmem:[%s950_s0 + $0x4] ss:$8 sps:$4 sm:$0xff]   ;;  %v695_v18 = vld [vmem:[%s950_s0] ss:$8 sps:$4 sm:$0xff]   ;;  %v701_v20 = vld [vmem:[%s950_s0 + $0x14] ss:$8 sps:$4 sm:$0xff]  }
   0x6   :  { %v700_v12 = vld [vmem:[%s950_s0 + $0x44] ss:$8 sps:$4 sm:$0xff]   ;;  %281 = vmatprep.mubr.bf16.mxu0 %v697_v11  ;;  %v698_v19 = vld [vmem:[%s950_s0 + $0x40] ss:$8 sps:$4 sm:$0xff]   ;;  %v703_v21 = vld [vmem:[%s950_s0 + $0x54] ss:$8 sps:$4 sm:$0xff]  }
   0x7   :  { %602 = vmatpush3.bf16.msra.mxu0 %v682_v3  ;;  %672 = vmatpush3.bf16.msra.mxu1 %v682_v3  ;;  %v691_v14 = vld [vmem:[%s949_s1 + $0x48] sm:$0xff]   ;;  %v693_v16 = vld [vmem:[%s949_s1 + $0x40] sm:$0xff]   ;;  %v705_v22 = vld [vmem:[%s950_s0 + $0x10] ss:$8 sps:$4 sm:$0xff]  }
   0x8   :  { %603 = vmatprep.subr.bf16.mxu0 %v683_v4  ;;  %665 = vmatprep.subr.bf16.mxu1 %v683_v4  ;;  %v692_v15 = vld [vmem:[%s949_s1 + $0x8] sm:$0xff]   ;;  %v694_v17 = vld [vmem:[%s949_s1] sm:$0xff]   ;;  %v706_v23 = vld [vmem:[%s950_s0 + $0x50] ss:$8 sps:$4 sm:$0xff]  }
   0x9   :  { %313 = vmatprep.mubr.bf16.mxu1 %v700_v12  ;;  %v707_v24 = vld [vmem:[%s950_s0 + $0x24] ss:$8 sps:$4 sm:$0xff]   ;;  %v711_v26 = vld [vmem:[%s950_s0 + $0x20] ss:$8 sps:$4 sm:$0xff]   ;;  %v713_v28 = vld [vmem:[%s950_s0 + $0x34] ss:$8 sps:$4 sm:$0xff]  }
   0xa   :  { %v709_v25 = vld [vmem:[%s950_s0 + $0x64] ss:$8 sps:$4 sm:$0xff]   ;;  %v712_v27 = vld [vmem:[%s950_s0 + $0x60] ss:$8 sps:$4 sm:$0xff]   ;;  %v715_v29 = vld [vmem:[%s950_s0 + $0x74] ss:$8 sps:$4 sm:$0xff]  }
   0xb   :  { %604 = vmatpush3.bf16.msra.mxu0 %v684_v5  ;;  %673 = vmatpush3.bf16.msra.mxu1 %v684_v5  ;;  %v717_v30 = vld [vmem:[%s950_s0 + $0x30] ss:$8 sps:$4 sm:$0xff]   ;;  %v561_v34 = vld [vmem:[%s951_s3] sm:$0xff]   ;;  %v592_v61 = vld [vmem:[%s951_s3 + $0x8] sm:$0xff]  }
   0xc   :  { %605 = vmatprep.subr.bf16.mxu0 %v685_v6  ;;  %666 = vmatprep.subr.bf16.mxu1 %v685_v6  ;;  %v718_v31 = vld [vmem:[%s950_s0 + $0x70] ss:$8 sps:$4 sm:$0xff]   ;;  %v595_v35 = vld [vmem:[%s951_s3 + $0x20] sm:$0xff]   ;;  %v562_v40 = vunpack.c.l.bf16 %v561_v34  ;;  %v563_v48 = vunpack.c.h.bf16 %v561_v34  ;;  %v596_v62 = vld [vmem:[%s951_s3 + $0x28] sm:$0xff]   ;;  %v566_v6 = vunpack.c.l.bf16 %v592_v61 }
   0xd   :  { %v849_v36 = vld [vmem:[%s952_s2] ss:$0 sm:$0xff]  ;;  %v578_v42 = vunpack.c.l.bf16 %v595_v35  ;;  %v579_v50 = vunpack.c.h.bf16 %v595_v35 }
   0xf   :  { %606 = vmatpush3.bf16.msra.mxu0 %v686_v7  ;;  %674 = vmatpush3.bf16.msra.mxu1 %v686_v7 }
  0x10   :  { %607 = vmatprep.subr.bf16.mxu0 %v687_v8  ;;  %667 = vmatprep.subr.bf16.mxu1 %v687_v8  ;;  %v582_v8 = vunpack.c.l.bf16 %v596_v62 }
  0x13   :  { %608 = vmatpush3.bf16.msra.mxu0 %v688_v9  ;;  %675 = vmatpush3.bf16.msra.mxu1 %v688_v9 }
  0x14   :  { %609 = vmatprep.subr.bf16.mxu0 %v689_v10  ;;  %668 = vmatprep.subr.bf16.mxu1 %v689_v10 }
  0x17   :  { %610 = vmatpush3.bf16.msra.mxu0 %v690_v13  ;;  %676 = vmatpush3.bf16.msra.mxu1 %v690_v13 }
  0x18   :  { %611 = vmatprep.subr.bf16.mxu0 %v691_v14  ;;  %669 = vmatprep.subr.bf16.mxu1 %v691_v14 }
  0x1b   :  { %612 = vmatpush3.bf16.msra.mxu0 %v692_v15  ;;  %677 = vmatpush3.bf16.msra.mxu1 %v692_v15 }
  0x1c   :  { %613 = vmatprep.subr.bf16.mxu0 %v693_v16  ;;  %670 = vmatprep.subr.bf16.mxu1 %v693_v16  ;;  %v567_v16 = vunpack.c.h.bf16 %v592_v61 }
  0x1f   :  { %614 = vmatpush3.bf16.msra.mxu0 %v694_v17  ;;  %678 = vmatpush3.bf16.msra.mxu1 %v694_v17 }
  0x22   :  { %282 = vmatmul.mubr.bf16.vlgmr.msra.gmra.mxu0 %v695_v18  ;;  %314 = vmatmul.mubr.bf16.vlgmr.msra.gmra.mxu1 %v698_v19  ;;  %v583_v18 = vunpack.c.h.bf16 %v596_v62 }
  0x23   :  { %289 = vmatprep.mubr.bf16.mxu0 %v701_v20  ;;  %321 = vmatprep.mubr.bf16.mxu1 %v703_v21 }
  0x2a   :  { %290 = vmatmul.mubr.bf16.gmra.mxu0 %v705_v22  ;;  %322 = vmatmul.mubr.bf16.gmra.mxu1 %v706_v23  ;;  %v593_v23 = vld [vmem:[%s951_s3 + $0x10] sm:$0xff]  }
  0x2b   :  { %297 = vmatprep.mubr.bf16.mxu0 %v707_v24  ;;  %329 = vmatprep.mubr.bf16.mxu1 %v709_v25  ;;  %v597_v24 = vld [vmem:[%s951_s3 + $0x30] sm:$0xff]   ;;  %v570_v34 = vunpack.c.l.bf16 %v593_v23 }
  0x2c   :  { %v587_v61 = vunpack.c.h.bf16 %v597_v24 }
  0x32   :  { %298 = vmatmul.mubr.bf16.gmra.mxu0 %v711_v26  ;;  %330 = vmatmul.mubr.bf16.gmra.mxu1 %v712_v27 }
  0x33   :  { %305 = vmatprep.mubr.bf16.mxu0 %v713_v28  ;;  %337 = vmatprep.mubr.bf16.mxu1 %v715_v29 }
  0x3a   :  { %306 = vmatmul.mubr.bf16.gmra.mxu0 %v717_v30  ;;  %338 = vmatmul.mubr.bf16.gmra.mxu1 %v718_v31 }
  0xe2   :  { %v615_v32 = vpop.f32.mrf.mxu0  ;;  %v639_v33 = vpop.f32.mrf.mxu1 }
  0xe4   :  { %v616_v37 = vpop.f32.mrf.mxu0  ;;  %v640_v38 = vpop.f32.mrf.mxu1 }
  0xe5   :  { %v617_v39 = vadd.f32 %v616_v37, %v615_v32  ;;  %v641_v41 = vadd.f32 %v640_v38, %v639_v33  ;;  %v586_v37 = vunpack.c.l.bf16 %v597_v24 }
  0xe6   :  { %v618_v43 = vpop.f32.mrf.mxu0  ;;  %v642_v44 = vpop.f32.mrf.mxu1 }
  0xe7   :  { %v284_v45 = vadd.f32 %v617_v39, %v849_v36  ;;  %v316_v46 = vadd.f32 %v641_v41, %v849_v36 }
  0xe8   :  { %v619_v47 = vpop.f32.mrf.mxu0  ;;  %v643_v49 = vpop.f32.mrf.mxu1 }
  0xe9   :  { %v378_v51 = vadd.f32 %v562_v40, %v284_v45  ;;  %v386_v52 = vadd.f32 %v578_v42, %v316_v46  ;;  %v620_v53 = vadd.f32 %v619_v47, %v618_v43  ;;  %v644_v54 = vadd.f32 %v643_v49, %v642_v44 }
  0xea   :  { %v621_v55 = vpop.f32.mrf.mxu0  ;;  %v645_v56 = vpop.f32.mrf.mxu1 }
  0xeb   :  { %v394_v57 = vmax.f32 %v378_v51, 0.0  ;;  %v402_v58 = vmax.f32 %v386_v52, 0.0  ;;  %v287_v59 = vadd.f32 %v620_v53, %v849_v36  ;;  %v319_v60 = vadd.f32 %v644_v54, %v849_v36 }
  0xec   :  { %v622_v63 = vpop.f32.mrf.mxu0  ;;  %v646_v0 = vpop.f32.mrf.mxu1 }
  0xed   :  { %v544_v1 = vpack.c.bf16 %v394_v57, %v394_v57  ;;  %v552_v2 = vpack.c.bf16 %v402_v58, %v402_v58  ;;  %v379_v3 = vadd.f32 %v563_v48, %v287_v59  ;;  %v387_v4 = vadd.f32 %v579_v50, %v319_v60  ;;  %v598_v57 = vld [vmem:[%s951_s3 + $0x38] sm:$0xff]  }
  0xee   :  { %v623_v5 = vadd.f32 %v622_v63, %v621_v55  ;;  %v647_v7 = vadd.f32 %v646_v0, %v645_v56  ;;  %v624_v9 = vpop.f32.mrf.mxu0  ;;  %v648_v10 = vpop.f32.mrf.mxu1  ;;  %v594_v56 = vld [vmem:[%s951_s3 + $0x18] sm:$0xff]   ;;  %v571_v59 = vunpack.c.h.bf16 %v593_v23  ;;  %v591_v23 = vunpack.c.h.bf16 %v598_v57 }
  0xef   :  { %475 = vst.msk [vmem:[%s953_s4] sm:$0xf] %vm474_vm0, %v544_v1  ;;  %483 = vst.msk [vmem:[%s953_s4 + $0x20] sm:$0xf] %vm474_vm0, %v552_v2  ;;  %v395_v11 = vmax.f32 %v379_v3, 0.0  ;;  %v403_v12 = vmax.f32 %v387_v4, 0.0 }
  0xf0   :  { %v292_v13 = vadd.f32 %v623_v5, %v849_v36  ;;  %v324_v14 = vadd.f32 %v647_v7, %v849_v36  ;;  %v625_v15 = vpop.f32.mrf.mxu0  ;;  %v649_v17 = vpop.f32.mrf.mxu1  ;;  %v574_v5 = vunpack.c.l.bf16 %v594_v56  ;;  %v590_v7 = vunpack.c.l.bf16 %v598_v57 }
  0xf1   :  { %v545_v19 = vpack.c.bf16 %v395_v11, %v395_v11  ;;  %v553_v20 = vpack.c.bf16 %v403_v12, %v403_v12  ;;  %v626_v21 = vadd.f32 %v625_v15, %v624_v9  ;;  %v650_v22 = vadd.f32 %v649_v17, %v648_v10 }
  0xf2   :  { %v380_v25 = vadd.f32 %v566_v6, %v292_v13  ;;  %v388_v26 = vadd.f32 %v582_v8, %v324_v14  ;;  %v627_v27 = vpop.f32.mrf.mxu0  ;;  %v651_v28 = vpop.f32.mrf.mxu1 }
  0xf3   :  { %476 = vst.msk [vmem:[%s953_s4 + $0x4] sm:$0xf] %vm474_vm0, %v545_v19  ;;  %484 = vst.msk [vmem:[%s953_s4 + $0x24] sm:$0xf] %vm474_vm0, %v553_v20  ;;  %v295_v29 = vadd.f32 %v626_v21, %v849_v36  ;;  %v327_v30 = vadd.f32 %v650_v22, %v849_v36  ;;  %v575_v21 = vunpack.c.h.bf16 %v594_v56 }
  0xf4   :  { %v396_v31 = vmax.f32 %v380_v25, 0.0  ;;  %v404_v32 = vmax.f32 %v388_v26, 0.0  ;;  %v628_v33 = vpop.f32.mrf.mxu0  ;;  %v652_v35 = vpop.f32.mrf.mxu1 }
  0xf5   :  { %v381_v38 = vadd.f32 %v567_v16, %v295_v29  ;;  %v389_v39 = vadd.f32 %v583_v18, %v327_v30  ;;  %v629_v40 = vadd.f32 %v628_v33, %v627_v27  ;;  %v653_v41 = vadd.f32 %v652_v35, %v651_v28 }
  0xf6   :  { %v546_v42 = vpack.c.bf16 %v396_v31, %v396_v31  ;;  %v554_v43 = vpack.c.bf16 %v404_v32, %v404_v32  ;;  %v630_v44 = vpop.f32.mrf.mxu0  ;;  %v654_v45 = vpop.f32.mrf.mxu1 }
  0xf7   :  { %v397_v46 = vmax.f32 %v381_v38, 0.0  ;;  %v405_v47 = vmax.f32 %v389_v39, 0.0  ;;  %v300_v48 = vadd.f32 %v629_v40, %v849_v36  ;;  %v332_v49 = vadd.f32 %v653_v41, %v849_v36 }
  0xf8   :  { %477 = vst.msk [vmem:[%s953_s4 + $0x8] sm:$0xf] %vm474_vm0, %v546_v42  ;;  %485 = vst.msk [vmem:[%s953_s4 + $0x28] sm:$0xf] %vm474_vm0, %v554_v43  ;;  %v631_v50 = vpop.f32.mrf.mxu0  ;;  %v655_v51 = vpop.f32.mrf.mxu1 }
  0xf9   :  { %v547_v52 = vpack.c.bf16 %v397_v46, %v397_v46  ;;  %v555_v53 = vpack.c.bf16 %v405_v47, %v405_v47  ;;  %v382_v54 = vadd.f32 %v570_v34, %v300_v48  ;;  %v390_v55 = vadd.f32 %v586_v37, %v332_v49 }
  0xfa   :  { %v632_v58 = vadd.f32 %v631_v50, %v630_v44  ;;  %v656_v60 = vadd.f32 %v655_v51, %v654_v45  ;;  %v633_v62 = vpop.f32.mrf.mxu0  ;;  %v657_v63 = vpop.f32.mrf.mxu1 }
  0xfb   :  { %478 = vst.msk [vmem:[%s953_s4 + $0xc] sm:$0xf] %vm474_vm0, %v547_v52  ;;  %486 = vst.msk [vmem:[%s953_s4 + $0x2c] sm:$0xf] %vm474_vm0, %v555_v53  ;;  %v398_v0 = vmax.f32 %v382_v54, 0.0  ;;  %v406_v1 = vmax.f32 %v390_v55, 0.0 }
  0xfc   :  { %v303_v2 = vadd.f32 %v632_v58, %v849_v36  ;;  %v335_v3 = vadd.f32 %v656_v60, %v849_v36  ;;  %v634_v4 = vpop.f32.mrf.mxu0  ;;  %v658_v6 = vpop.f32.mrf.mxu1 }
  0xfd   :  { %v548_v8 = vpack.c.bf16 %v398_v0, %v398_v0  ;;  %v556_v9 = vpack.c.bf16 %v406_v1, %v406_v1  ;;  %v635_v10 = vadd.f32 %v634_v4, %v633_v62  ;;  %v659_v11 = vadd.f32 %v658_v6, %v657_v63 }
  0xfe   :  { %v383_v12 = vadd.f32 %v571_v59, %v303_v2  ;;  %v391_v13 = vadd.f32 %v587_v61, %v335_v3  ;;  %v636_v14 = vpop.f32.mrf.mxu0  ;;  %v660_v15 = vpop.f32.mrf.mxu1 }
  0xff   :  { %479 = vst.msk [vmem:[%s953_s4 + $0x10] sm:$0xf] %vm474_vm0, %v548_v8  ;;  %487 = vst.msk [vmem:[%s953_s4 + $0x30] sm:$0xf] %vm474_vm0, %v556_v9  ;;  %v308_v16 = vadd.f32 %v635_v10, %v849_v36  ;;  %v340_v17 = vadd.f32 %v659_v11, %v849_v36 }
 0x100   :  { %v399_v18 = vmax.f32 %v383_v12, 0.0  ;;  %v407_v19 = vmax.f32 %v391_v13, 0.0  ;;  %v637_v20 = vpop.f32.mrf.mxu0  ;;  %v661_v22 = vpop.f32.mrf.mxu1 }
 0x101   :  { %v384_v24 = vadd.f32 %v574_v5, %v308_v16  ;;  %v392_v25 = vadd.f32 %v590_v7, %v340_v17  ;;  %v638_v26 = vadd.f32 %v637_v20, %v636_v14  ;;  %v662_v27 = vadd.f32 %v661_v22, %v660_v15 }
 0x102   :  { %v549_v28 = vpack.c.bf16 %v399_v18, %v399_v18  ;;  %v557_v29 = vpack.c.bf16 %v407_v19, %v407_v19 }
 0x103   :  { %v400_v30 = vmax.f32 %v384_v24, 0.0  ;;  %v408_v31 = vmax.f32 %v392_v25, 0.0  ;;  %v311_v32 = vadd.f32 %v638_v26, %v849_v36  ;;  %v343_v33 = vadd.f32 %v662_v27, %v849_v36 }
 0x104   :  { %480 = vst.msk [vmem:[%s953_s4 + $0x14] sm:$0xf] %vm474_vm0, %v549_v28  ;;  %488 = vst.msk [vmem:[%s953_s4 + $0x34] sm:$0xf] %vm474_vm0, %v557_v29 }
 0x105   :  { %v550_v34 = vpack.c.bf16 %v400_v30, %v400_v30  ;;  %v558_v35 = vpack.c.bf16 %v408_v31, %v408_v31  ;;  %v385_v37 = vadd.f32 %v575_v21, %v311_v32  ;;  %v393_v38 = vadd.f32 %v591_v23, %v343_v33 }
 0x107   :  { %481 = vst.msk [vmem:[%s953_s4 + $0x18] sm:$0xf] %vm474_vm0, %v550_v34  ;;  %489 = vst.msk [vmem:[%s953_s4 + $0x38] sm:$0xf] %vm474_vm0, %v558_v35  ;;  %v401_v36 = vmax.f32 %v385_v37, 0.0  ;;  %v409_v39 = vmax.f32 %v393_v38, 0.0 }
 0x109   :  { %v551_v40 = vpack.c.bf16 %v401_v36, %v401_v36  ;;  %v559_v41 = vpack.c.bf16 %v409_v39, %v409_v39 }
 0x10b   :  { %482 = vst.msk [vmem:[%s953_s4 + $0x1c] sm:$0xf] %vm474_vm0, %v551_v40  ;;  %490 = vst.msk [vmem:[%s953_s4 + $0x3c] sm:$0xf] %vm474_vm0, %v559_v41 }

// kernel: net_forward.34
= control target key start
LH: loop header
LB: loop body
LE: loop exit
PB: predicated region body
PF: predicated region fallthrough
CT: control target
= control target key end

     0   :  { %vm243_vm0 = vcmask 257024   ;;  %s442_s1 = inlined_call_operand.vmem [shape: bf16[256,32], index: 1, kind: input, shape index: {}]   ;;  %s443_s0 = inlined_call_operand.vmem [shape: bf16[32,256], index: 0, kind: input, shape index: {}]   ;;  %s444_s2 = inlined_call_operand.vmem [shape: f32[1,32], index: 2, kind: input, shape index: {}]   ;;  %s445_s3 = inlined_call_operand.vmem [shape: bf16[32,32], index: 3, kind: output, shape index: {}]  }
   0x1   :  { %v325_v0 = vld [vmem:[%s442_s1 + $0x78] sm:$0xff]   ;;  %v327_v2 = vld [vmem:[%s442_s1 + $0x70] sm:$0xff]   ;;  %v329_v4 = vld [vmem:[%s442_s1 + $0x68] sm:$0xff]  }
   0x2   :  { %v326_v1 = vld [vmem:[%s442_s1 + $0x38] sm:$0xff]   ;;  %281 = vmatprep.subr.bf16.mxu0 %v325_v0  ;;  %309 = vmatprep.subr.bf16.mxu1 %v325_v0  ;;  %v328_v3 = vld [vmem:[%s442_s1 + $0x30] sm:$0xff]   ;;  %v330_v5 = vld [vmem:[%s442_s1 + $0x28] sm:$0xff]  }
   0x3   :  { %282 = vmatpush3.bf16.msra.mxu0 %v326_v1  ;;  %317 = vmatpush3.bf16.msra.mxu1 %v326_v1  ;;  %v331_v6 = vld [vmem:[%s442_s1 + $0x60] sm:$0xff]   ;;  %v333_v8 = vld [vmem:[%s442_s1 + $0x58] sm:$0xff]   ;;  %v335_v10 = vld [vmem:[%s442_s1 + $0x50] sm:$0xff]  }
   0x4   :  { %283 = vmatprep.subr.bf16.mxu0 %v327_v2  ;;  %310 = vmatprep.subr.bf16.mxu1 %v327_v2  ;;  %v332_v7 = vld [vmem:[%s442_s1 + $0x20] sm:$0xff]   ;;  %v334_v9 = vld [vmem:[%s442_s1 + $0x18] sm:$0xff]   ;;  %v336_v13 = vld [vmem:[%s442_s1 + $0x10] sm:$0xff]  }
   0x5   :  { %v343_v11 = vld [vmem:[%s443_s0 + $0x4] ss:$8 sps:$4 sm:$0xff]   ;;  %v346_v12 = vld [vmem:[%s443_s0 + $0x14] ss:$8 sps:$4 sm:$0xff]   ;;  %v341_v18 = vld [vmem:[%s443_s0] ss:$8 sps:$4 sm:$0xff]  }
   0x6   :  { %v337_v14 = vld [vmem:[%s442_s1 + $0x48] sm:$0xff]   ;;  %206 = vmatprep.mubr.bf16.mxu0 %v343_v11  ;;  %214 = vmatprep.mubr.bf16.mxu1 %v346_v12  ;;  %v339_v16 = vld [vmem:[%s442_s1 + $0x40] sm:$0xff]   ;;  %v344_v19 = vld [vmem:[%s443_s0 + $0x10] ss:$8 sps:$4 sm:$0xff]  }
   0x7   :  { %284 = vmatpush3.bf16.msra.mxu0 %v328_v3  ;;  %318 = vmatpush3.bf16.msra.mxu1 %v328_v3  ;;  %v338_v15 = vld [vmem:[%s442_s1 + $0x8] sm:$0xff]   ;;  %v340_v17 = vld [vmem:[%s442_s1] sm:$0xff]  }
   0x8   :  { %285 = vmatprep.subr.bf16.mxu0 %v329_v4  ;;  %311 = vmatprep.subr.bf16.mxu1 %v329_v4  ;;  %v252_v22 = vld [vmem:[%s444_s2] ss:$0 sm:$0xff] }
   0xb   :  { %286 = vmatpush3.bf16.msra.mxu0 %v330_v5  ;;  %319 = vmatpush3.bf16.msra.mxu1 %v330_v5 }
   0xc   :  { %287 = vmatprep.subr.bf16.mxu0 %v331_v6  ;;  %312 = vmatprep.subr.bf16.mxu1 %v331_v6 }
   0xf   :  { %288 = vmatpush3.bf16.msra.mxu0 %v332_v7  ;;  %320 = vmatpush3.bf16.msra.mxu1 %v332_v7 }
  0x10   :  { %289 = vmatprep.subr.bf16.mxu0 %v333_v8  ;;  %313 = vmatprep.subr.bf16.mxu1 %v333_v8 }
  0x13   :  { %290 = vmatpush3.bf16.msra.mxu0 %v334_v9  ;;  %321 = vmatpush3.bf16.msra.mxu1 %v334_v9 }
  0x14   :  { %291 = vmatprep.subr.bf16.mxu0 %v335_v10  ;;  %314 = vmatprep.subr.bf16.mxu1 %v335_v10 }
  0x17   :  { %292 = vmatpush3.bf16.msra.mxu0 %v336_v13  ;;  %322 = vmatpush3.bf16.msra.mxu1 %v336_v13 }
  0x18   :  { %293 = vmatprep.subr.bf16.mxu0 %v337_v14  ;;  %315 = vmatprep.subr.bf16.mxu1 %v337_v14 }
  0x1b   :  { %294 = vmatpush3.bf16.msra.mxu0 %v338_v15  ;;  %323 = vmatpush3.bf16.msra.mxu1 %v338_v15 }
  0x1c   :  { %295 = vmatprep.subr.bf16.mxu0 %v339_v16  ;;  %316 = vmatprep.subr.bf16.mxu1 %v339_v16 }
  0x1f   :  { %296 = vmatpush3.bf16.msra.mxu0 %v340_v17  ;;  %324 = vmatpush3.bf16.msra.mxu1 %v340_v17 }
  0x22   :  { %207 = vmatmul.mubr.bf16.vlgmr.msra.gmra.mxu0 %v341_v18  ;;  %215 = vmatmul.mubr.bf16.vlgmr.msra.gmra.mxu1 %v344_v19 }
  0xe2   :  { %v297_v20 = vpop.f32.mrf.mxu0  ;;  %v303_v21 = vpop.f32.mrf.mxu1 }
  0xe4   :  { %v298_v23 = vpop.f32.mrf.mxu0  ;;  %v304_v24 = vpop.f32.mrf.mxu1 }
  0xe5   :  { %v299_v25 = vadd.f32 %v298_v23, %v297_v20  ;;  %v305_v26 = vadd.f32 %v304_v24, %v303_v21 }
  0xe6   :  { %v300_v27 = vpop.f32.mrf.mxu0  ;;  %v306_v28 = vpop.f32.mrf.mxu1 }
  0xe7   :  { %v209_v29 = vadd.f32 %v299_v25, %v252_v22  ;;  %v217_v30 = vadd.f32 %v305_v26, %v252_v22 }
  0xe8   :  { %v301_v31 = vpop.f32.mrf.mxu0  ;;  %v307_v32 = vpop.f32.mrf.mxu1 }
  0xe9   :  { %v223_v33 = vmax.f32 %v209_v29, 0.0  ;;  %v225_v34 = vmax.f32 %v217_v30, 0.0  ;;  %v302_v35 = vadd.f32 %v301_v31, %v300_v27  ;;  %v308_v36 = vadd.f32 %v307_v32, %v306_v28 }
  0xeb   :  { %v277_v37 = vpack.c.bf16 %v223_v33, %v223_v33  ;;  %v279_v38 = vpack.c.bf16 %v225_v34, %v225_v34  ;;  %v212_v39 = vadd.f32 %v302_v35, %v252_v22  ;;  %v220_v40 = vadd.f32 %v308_v36, %v252_v22 }
  0xed   :  { %244 = vst.msk [vmem:[%s445_s3] sm:$0xf] %vm243_vm0, %v277_v37  ;;  %246 = vst.msk [vmem:[%s445_s3 + $0x8] sm:$0xf] %vm243_vm0, %v279_v38  ;;  %v224_v41 = vmax.f32 %v212_v39, 0.0  ;;  %v226_v42 = vmax.f32 %v220_v40, 0.0 }
  0xef   :  { %v278_v43 = vpack.c.bf16 %v224_v41, %v224_v41  ;;  %v280_v44 = vpack.c.bf16 %v226_v42, %v226_v42 }
  0xf1   :  { %245 = vst.msk [vmem:[%s445_s3 + $0x4] sm:$0xf] %vm243_vm0, %v278_v43  ;;  %247 = vst.msk [vmem:[%s445_s3 + $0xc] sm:$0xf] %vm243_vm0, %v280_v44 }

// kernel: net_forward.33
= control target key start
LH: loop header
LB: loop body
LE: loop exit
PB: predicated region body
PF: predicated region fallthrough
CT: control target
= control target key end

     0   :  { %vm167_vm0 = vcmask 257024   ;;  %s300_s1 = inlined_call_operand.vmem [shape: bf16[128,32], index: 1, kind: input, shape index: {}]   ;;  %s301_s0 = inlined_call_operand.vmem [shape: bf16[32,128], index: 0, kind: input, shape index: {}]   ;;  %s302_s2 = inlined_call_operand.vmem [shape: f32[1,32], index: 2, kind: input, shape index: {}]   ;;  %s303_s3 = inlined_call_operand.vmem [shape: bf16[32,32], index: 3, kind: output, shape index: {}]  }
   0x1   :  { %v225_v0 = vld [vmem:[%s300_s1 + $0x38] sm:$0xff]   ;;  %v226_v1 = vld [vmem:[%s300_s1 + $0x30] sm:$0xff]   ;;  %v227_v2 = vld [vmem:[%s300_s1 + $0x28] sm:$0xff]  }
   0x2   :  { %205 = vmatprep.subr.bf16.mxu0 %v225_v0  ;;  %v228_v3 = vld [vmem:[%s300_s1 + $0x20] sm:$0xff]   ;;  %v229_v5 = vld [vmem:[%s300_s1 + $0x18] sm:$0xff]   ;;  %v230_v6 = vld [vmem:[%s300_s1 + $0x10] sm:$0xff]  }
   0x3   :  { %206 = vmatpush3.bf16.msra.mxu0 %v225_v0  ;;  %v233_v4 = vld [vmem:[%s301_s0] sm:$0xff]   ;;  %v231_v7 = vld [vmem:[%s300_s1 + $0x8] sm:$0xff]  }
   0x4   :  { %207 = vmatprep.subr.bf16.mxu0 %v226_v1  ;;  %221 = vmatprep.mubr.bf16.mxu0 %v233_v4  ;;  %v232_v8 = vld [vmem:[%s300_s1] sm:$0xff]   ;;  %v234_v9 = vld [vmem:[%s301_s0 + $0x8] sm:$0xff]  }
   0x5   :  { %v176_v10 = vld [vmem:[%s302_s2] ss:$0 sm:$0xff] }
   0x7   :  { %208 = vmatpush3.bf16.msra.mxu0 %v226_v1 }
   0x8   :  { %209 = vmatprep.subr.bf16.mxu0 %v227_v2 }
   0xb   :  { %210 = vmatpush3.bf16.msra.mxu0 %v227_v2 }
   0xc   :  { %211 = vmatprep.subr.bf16.mxu0 %v228_v3 }
   0xf   :  { %212 = vmatpush3.bf16.msra.mxu0 %v228_v3 }
  0x10   :  { %213 = vmatprep.subr.bf16.mxu0 %v229_v5 }
  0x13   :  { %214 = vmatpush3.bf16.msra.mxu0 %v229_v5 }
  0x14   :  { %215 = vmatprep.subr.bf16.mxu0 %v230_v6 }
  0x17   :  { %216 = vmatpush3.bf16.msra.mxu0 %v230_v6 }
  0x18   :  { %217 = vmatprep.subr.bf16.mxu0 %v231_v7 }
  0x1b   :  { %218 = vmatpush3.bf16.msra.mxu0 %v231_v7 }
  0x1c   :  { %219 = vmatprep.subr.bf16.mxu0 %v232_v8 }
  0x1f   :  { %220 = vmatpush3.bf16.msra.mxu0 %v232_v8 }
  0x22   :  { %222 = vmatmul.mubr.bf16.vlgmr.msra.gmra.mxu0 %v234_v9 }
  0xe2   :  { %v223_v11 = vpop.f32.mrf.mxu0 }
  0xe3   :  { %v145_v12 = vadd.f32 %v223_v11, %v176_v10 }
  0xe4   :  { %v136_v13 = vpop.f32.mrf.mxu0 }
  0xe5   :  { %v193_v14 = vpack.c.bf16 %v145_v12, %v145_v12  ;;  %v137_v15 = vadd.f32 %v176_v10, %v136_v13 }
  0xe6   :  { %v224_v16 = vpop.f32.mrf.mxu0 }
  0xe7   :  { %170 = vst.msk [vmem:[%s303_s3 + $0x8] sm:$0xf] %vm167_vm0, %v193_v14  ;;  %v191_v17 = vpack.c.bf16 %v137_v15, %v137_v15  ;;  %v148_v18 = vadd.f32 %v224_v16, %v176_v10 }
  0xe8   :  { %v139_v19 = vpop.f32.mrf.mxu0 }
  0xe9   :  { %168 = vst.msk [vmem:[%s303_s3] sm:$0xf] %vm167_vm0, %v191_v17  ;;  %v194_v20 = vpack.c.bf16 %v148_v18, %v148_v18  ;;  %v140_v21 = vadd.f32 %v176_v10, %v139_v19 }
  0xeb   :  { %171 = vst.msk [vmem:[%s303_s3 + $0xc] sm:$0xf] %vm167_vm0, %v194_v20  ;;  %v192_v22 = vpack.c.bf16 %v140_v21, %v140_v21 }
  0xed   :  { %169 = vst.msk [vmem:[%s303_s3 + $0x4] sm:$0xf] %vm167_vm0, %v192_v22 }

// kernel: net_forward.36
= control target key start
LH: loop header
LB: loop body
LE: loop exit
PB: predicated region body
PF: predicated region fallthrough
CT: control target
= control target key end

     0   :  { %vm372_vm0 = vcmask 257024   ;;  %s639_s1 = inlined_call_operand.vmem [shape: bf16[384,32], index: 1, kind: input, shape index: {}]   ;;  %s640_s0 = inlined_call_operand.vmem [shape: bf16[32,384], index: 0, kind: input, shape index: {}]   ;;  %s641_s2 = inlined_call_operand.vmem [shape: f32[1,32], index: 2, kind: input, shape index: {}]   ;;  %s642_s3 = inlined_call_operand.vmem [shape: bf16[32,32], index: 3, kind: output, shape index: {}]  }
   0x1   :  { %v478_v0 = vld [vmem:[%s639_s1 + $0x78] sm:$0xff]   ;;  %v480_v2 = vld [vmem:[%s639_s1 + $0x70] sm:$0xff]   ;;  %v483_v5 = vld [vmem:[%s639_s1 + $0x68] sm:$0xff]  }
   0x2   :  { %v479_v1 = vld [vmem:[%s639_s1 + $0x38] sm:$0xff]   ;;  %420 = vmatprep.subr.bf16.mxu0 %v478_v0  ;;  %v482_v4 = vld [vmem:[%s639_s1 + $0x30] sm:$0xff]   ;;  %v485_v7 = vld [vmem:[%s639_s1 + $0x28] sm:$0xff]  }
   0x3   :  { %421 = vmatpush3.bf16.msra.mxu0 %v479_v1  ;;  %v481_v3 = vld [vmem:[%s639_s1 + $0xb8] sm:$0xff]   ;;  %v484_v6 = vld [vmem:[%s639_s1 + $0xb0] sm:$0xff]   ;;  %v486_v8 = vld [vmem:[%s639_s1 + $0x60] sm:$0xff]  }
   0x4   :  { %422 = vmatprep.subr.bf16.mxu0 %v480_v2  ;;  %458 = vmatprep.subr.bf16.mxu1 %v481_v3  ;;  %v487_v9 = vld [vmem:[%s639_s1 + $0xa8] sm:$0xff]   ;;  %v488_v10 = vld [vmem:[%s639_s1 + $0x20] sm:$0xff]   ;;  %v489_v11 = vld [vmem:[%s639_s1 + $0x58] sm:$0xff]  }
   0x5   :  { %459 = vmatpush3.bf16.msra.mxu1 %v481_v3  ;;  %v490_v12 = vld [vmem:[%s639_s1 + $0xa0] sm:$0xff]   ;;  %v491_v13 = vld [vmem:[%s639_s1 + $0x18] sm:$0xff]   ;;  %v492_v15 = vld [vmem:[%s639_s1 + $0x50] sm:$0xff]  }
   0x6   :  { %460 = vmatprep.subr.bf16.mxu1 %v484_v6  ;;  %v493_v14 = vld [vmem:[%s639_s1 + $0x98] sm:$0xff]   ;;  %v494_v16 = vld [vmem:[%s639_s1 + $0x10] sm:$0xff]   ;;  %v495_v18 = vld [vmem:[%s639_s1 + $0x48] sm:$0xff]  }
   0x7   :  { %423 = vmatpush3.bf16.msra.mxu0 %v482_v4  ;;  %v496_v17 = vld [vmem:[%s639_s1 + $0x90] sm:$0xff]   ;;  %v497_v19 = vld [vmem:[%s639_s1 + $0x8] sm:$0xff]   ;;  %v498_v20 = vld [vmem:[%s639_s1 + $0x40] sm:$0xff]  }
   0x8   :  { %424 = vmatprep.subr.bf16.mxu0 %v483_v5  ;;  %v499_v21 = vld [vmem:[%s639_s1 + $0x88] sm:$0xff]   ;;  %v503_v22 = vld [vmem:[%s640_s0 + $0x4] ss:$12 sps:$4 sm:$0xff]   ;;  %v381_v32 = vld [vmem:[%s641_s2] ss:$0 sm:$0xff] }
   0x9   :  { %461 = vmatpush3.bf16.msra.mxu1 %v484_v6  ;;  %v500_v23 = vld [vmem:[%s639_s1] sm:$0xff]   ;;  %286 = vmatprep.mubr.bf16.mxu0 %v503_v22  ;;  %v505_v24 = vld [vmem:[%s640_s0 + $0x8] ss:$12 sps:$4 sm:$0xff]  }
   0xa   :  { %462 = vmatprep.subr.bf16.mxu1 %v487_v9  ;;  %v504_v25 = vld [vmem:[%s639_s1 + $0x80] sm:$0xff]   ;;  %474 = vmatprep.mubr.bf16.mxu1 %v505_v24  ;;  %v507_v27 = vld [vmem:[%s640_s0 + $0x1c] ss:$12 sps:$4 sm:$0xff]  }
   0xb   :  { %425 = vmatpush3.bf16.msra.mxu0 %v485_v7  ;;  %v501_v26 = vld [vmem:[%s640_s0] ss:$12 sps:$4 sm:$0xff]   ;;  %v509_v29 = vld [vmem:[%s640_s0 + $0x18] ss:$12 sps:$4 sm:$0xff]  }
   0xc   :  { %426 = vmatprep.subr.bf16.mxu0 %v486_v8  ;;  %v506_v28 = vld [vmem:[%s640_s0 + $0x20] ss:$12 sps:$4 sm:$0xff]  }
   0xd   :  { %463 = vmatpush3.bf16.msra.mxu1 %v487_v9 }
   0xe   :  { %464 = vmatprep.subr.bf16.mxu1 %v490_v12 }
   0xf   :  { %427 = vmatpush3.bf16.msra.mxu0 %v488_v10 }
  0x10   :  { %428 = vmatprep.subr.bf16.mxu0 %v489_v11 }
  0x11   :  { %465 = vmatpush3.bf16.msra.mxu1 %v490_v12 }
  0x12   :  { %466 = vmatprep.subr.bf16.mxu1 %v493_v14 }
  0x13   :  { %429 = vmatpush3.bf16.msra.mxu0 %v491_v13 }
  0x14   :  { %430 = vmatprep.subr.bf16.mxu0 %v492_v15 }
  0x15   :  { %467 = vmatpush3.bf16.msra.mxu1 %v493_v14 }
  0x16   :  { %468 = vmatprep.subr.bf16.mxu1 %v496_v17 }
  0x17   :  { %431 = vmatpush3.bf16.msra.mxu0 %v494_v16 }
  0x18   :  { %432 = vmatprep.subr.bf16.mxu0 %v495_v18 }
  0x19   :  { %469 = vmatpush3.bf16.msra.mxu1 %v496_v17 }
  0x1a   :  { %470 = vmatprep.subr.bf16.mxu1 %v499_v21 }
  0x1b   :  { %433 = vmatpush3.bf16.msra.mxu0 %v497_v19 }
  0x1c   :  { %434 = vmatprep.subr.bf16.mxu0 %v498_v20 }
  0x1d   :  { %471 = vmatpush3.bf16.msra.mxu1 %v499_v21 }
  0x1e   :  { %472 = vmatprep.subr.bf16.mxu1 %v504_v25 }
  0x1f   :  { %435 = vmatpush3.bf16.msra.mxu0 %v500_v23 }
  0x21   :  { %473 = vmatpush3.bf16.msra.mxu1 %v504_v25 }
  0x22   :  { %287 = vmatmul.mubr.bf16.vlgmr.msra.gmra.mxu0 %v501_v26 }
  0x23   :  { %294 = vmatprep.mubr.bf16.mxu0 %v507_v27 }
  0x24   :  { %475 = vmatmul.mubr.bf16.vlgmr.msra.gmra.mxu1 %v506_v28 }
  0x2a   :  { %295 = vmatmul.mubr.bf16.gmra.mxu0 %v509_v29 }
  0xe2   :  { %v436_v30 = vpop.f32.mrf.mxu0 }
  0xe4   :  { %v437_v31 = vpop.f32.mrf.mxu0  ;;  %v476_v34 = vpop.f32.mrf.mxu1 }
  0xe5   :  { %v438_v33 = vadd.f32 %v437_v31, %v436_v30 }
  0xe6   :  { %v439_v35 = vpop.f32.mrf.mxu0  ;;  %v337_v37 = vpop.f32.mrf.mxu1 }
  0xe7   :  { %v289_v36 = vadd.f32 %v438_v33, %v381_v32 }
  0xe8   :  { %v440_v38 = vpop.f32.mrf.mxu0  ;;  %v477_v41 = vpop.f32.mrf.mxu1 }
  0xe9   :  { %v441_v39 = vadd.f32 %v440_v38, %v439_v35  ;;  %v338_v40 = vadd.f32 %v337_v37, %v289_v36 }
  0xea   :  { %v442_v42 = vpop.f32.mrf.mxu0  ;;  %v340_v45 = vpop.f32.mrf.mxu1 }
  0xeb   :  { %v352_v43 = vmax.f32 %v338_v40, 0.0  ;;  %v292_v44 = vadd.f32 %v441_v39, %v381_v32 }
  0xec   :  { %v443_v46 = vpop.f32.mrf.mxu0 }
  0xed   :  { %v416_v47 = vpack.c.bf16 %v352_v43, %v352_v43  ;;  %v444_v48 = vadd.f32 %v443_v46, %v442_v42  ;;  %v341_v49 = vadd.f32 %v340_v45, %v292_v44 }
  0xee   :  { %v445_v50 = vpop.f32.mrf.mxu0 }
  0xef   :  { %373 = vst.msk [vmem:[%s642_s3] sm:$0xf] %vm372_vm0, %v416_v47  ;;  %v297_v51 = vadd.f32 %v444_v48, %v381_v32  ;;  %v353_v52 = vmax.f32 %v341_v49, 0.0 }
  0xf0   :  { %v446_v53 = vpop.f32.mrf.mxu0 }
  0xf1   :  { %v346_v54 = vadd.f32 %v476_v34, %v297_v51  ;;  %v417_v55 = vpack.c.bf16 %v353_v52, %v353_v52  ;;  %v447_v56 = vadd.f32 %v446_v53, %v445_v50 }
  0xf3   :  { %v354_v57 = vmax.f32 %v346_v54, 0.0  ;;  %374 = vst.msk [vmem:[%s642_s3 + $0x4] sm:$0xf] %vm372_vm0, %v417_v55  ;;  %v300_v58 = vadd.f32 %v447_v56, %v381_v32 }
  0xf5   :  { %v418_v59 = vpack.c.bf16 %v354_v57, %v354_v57  ;;  %v349_v60 = vadd.f32 %v477_v41, %v300_v58 }
  0xf7   :  { %375 = vst.msk [vmem:[%s642_s3 + $0x8] sm:$0xf] %vm372_vm0, %v418_v59  ;;  %v355_v61 = vmax.f32 %v349_v60, 0.0 }
  0xf9   :  { %v419_v62 = vpack.c.bf16 %v355_v61, %v355_v61 }
  0xfb   :  { %376 = vst.msk [vmem:[%s642_s3 + $0xc] sm:$0xf] %vm372_vm0, %v419_v62 }

// kernel: net_forward.35
= control target key start
LH: loop header
LB: loop body
LE: loop exit
PB: predicated region body
PF: predicated region fallthrough
CT: control target
= control target key end

     0   :  { %vm387_vm0 = vcmask 257024   ;;  %s674_s1 = inlined_call_operand.vmem [shape: bf16[384,32], index: 1, kind: input, shape index: {}]   ;;  %s675_s0 = inlined_call_operand.vmem [shape: bf16[32,384], index: 0, kind: input, shape index: {}]   ;;  %s676_s2 = inlined_call_operand.vmem [shape: f32[1,32], index: 2, kind: input, shape index: {}]   ;;  %s677_s3 = inlined_call_operand.vmem [shape: bf16[32,32], index: 3, kind: input, shape index: {}]   ;;  %s678_s4 = inlined_call_operand.vmem [shape: bf16[32,32], index: 4, kind: output, shape index: {}]  }
   0x1   :  { %v502_v0 = vld [vmem:[%s674_s1 + $0x78] sm:$0xff]   ;;  %v504_v2 = vld [vmem:[%s674_s1 + $0x70] sm:$0xff]   ;;  %v507_v5 = vld [vmem:[%s674_s1 + $0x68] sm:$0xff]  }
   0x2   :  { %v503_v1 = vld [vmem:[%s674_s1 + $0x38] sm:$0xff]   ;;  %444 = vmatprep.subr.bf16.mxu0 %v502_v0  ;;  %v506_v4 = vld [vmem:[%s674_s1 + $0x30] sm:$0xff]   ;;  %v509_v7 = vld [vmem:[%s674_s1 + $0x28] sm:$0xff]  }
   0x3   :  { %445 = vmatpush3.bf16.msra.mxu0 %v503_v1  ;;  %v505_v3 = vld [vmem:[%s674_s1 + $0xb8] sm:$0xff]   ;;  %v508_v6 = vld [vmem:[%s674_s1 + $0xb0] sm:$0xff]   ;;  %v510_v8 = vld [vmem:[%s674_s1 + $0x60] sm:$0xff]  }
   0x4   :  { %446 = vmatprep.subr.bf16.mxu0 %v504_v2  ;;  %482 = vmatprep.subr.bf16.mxu1 %v505_v3  ;;  %v511_v9 = vld [vmem:[%s674_s1 + $0xa8] sm:$0xff]   ;;  %v512_v10 = vld [vmem:[%s674_s1 + $0x20] sm:$0xff]   ;;  %v513_v11 = vld [vmem:[%s674_s1 + $0x58] sm:$0xff]  }
   0x5   :  { %483 = vmatpush3.bf16.msra.mxu1 %v505_v3  ;;  %v514_v12 = vld [vmem:[%s674_s1 + $0xa0] sm:$0xff]   ;;  %v515_v13 = vld [vmem:[%s674_s1 + $0x18] sm:$0xff]   ;;  %v516_v15 = vld [vmem:[%s674_s1 + $0x50] sm:$0xff]  }
   0x6   :  { %484 = vmatprep.subr.bf16.mxu1 %v508_v6  ;;  %v517_v14 = vld [vmem:[%s674_s1 + $0x98] sm:$0xff]   ;;  %v518_v16 = vld [vmem:[%s674_s1 + $0x10] sm:$0xff]   ;;  %v519_v18 = vld [vmem:[%s674_s1 + $0x48] sm:$0xff]  }
   0x7   :  { %447 = vmatpush3.bf16.msra.mxu0 %v506_v4  ;;  %v520_v17 = vld [vmem:[%s674_s1 + $0x90] sm:$0xff]   ;;  %v521_v19 = vld [vmem:[%s674_s1 + $0x8] sm:$0xff]   ;;  %v522_v20 = vld [vmem:[%s674_s1 + $0x40] sm:$0xff]  }
   0x8   :  { %448 = vmatprep.subr.bf16.mxu0 %v507_v5  ;;  %v523_v21 = vld [vmem:[%s674_s1 + $0x88] sm:$0xff]   ;;  %v527_v22 = vld [vmem:[%s675_s0 + $0x4] ss:$12 sps:$4 sm:$0xff]   ;;  %v396_v32 = vld [vmem:[%s676_s2] ss:$0 sm:$0xff] }
   0x9   :  { %485 = vmatpush3.bf16.msra.mxu1 %v508_v6  ;;  %v524_v23 = vld [vmem:[%s674_s1] sm:$0xff]   ;;  %289 = vmatprep.mubr.bf16.mxu0 %v527_v22  ;;  %v529_v24 = vld [vmem:[%s675_s0 + $0x8] ss:$12 sps:$4 sm:$0xff]  }
   0xa   :  { %486 = vmatprep.subr.bf16.mxu1 %v511_v9  ;;  %v528_v25 = vld [vmem:[%s674_s1 + $0x80] sm:$0xff]   ;;  %498 = vmatprep.mubr.bf16.mxu1 %v529_v24  ;;  %v531_v27 = vld [vmem:[%s675_s0 + $0x1c] ss:$12 sps:$4 sm:$0xff]  }
   0xb   :  { %449 = vmatpush3.bf16.msra.mxu0 %v509_v7  ;;  %v525_v26 = vld [vmem:[%s675_s0] ss:$12 sps:$4 sm:$0xff]   ;;  %v533_v29 = vld [vmem:[%s675_s0 + $0x18] ss:$12 sps:$4 sm:$0xff]  }
   0xc   :  { %450 = vmatprep.subr.bf16.mxu0 %v510_v8  ;;  %v530_v28 = vld [vmem:[%s675_s0 + $0x20] ss:$12 sps:$4 sm:$0xff]  }
   0xd   :  { %487 = vmatpush3.bf16.msra.mxu1 %v511_v9  ;;  %v436_v33 = vld [vmem:[%s677_s3] sm:$0xff]   ;;  %v443_v49 = vld [vmem:[%s677_s3 + $0x8] sm:$0xff]  }
   0xe   :  { %488 = vmatprep.subr.bf16.mxu1 %v514_v12  ;;  %v437_v39 = vunpack.c.l.bf16 %v436_v33  ;;  %v438_v48 = vunpack.c.h.bf16 %v436_v33  ;;  %v441_v57 = vunpack.c.l.bf16 %v443_v49  ;;  %v442_v2 = vunpack.c.h.bf16 %v443_v49 }
   0xf   :  { %451 = vmatpush3.bf16.msra.mxu0 %v512_v10 }
  0x10   :  { %452 = vmatprep.subr.bf16.mxu0 %v513_v11 }
  0x11   :  { %489 = vmatpush3.bf16.msra.mxu1 %v514_v12 }
  0x12   :  { %490 = vmatprep.subr.bf16.mxu1 %v517_v14 }
  0x13   :  { %453 = vmatpush3.bf16.msra.mxu0 %v515_v13 }
  0x14   :  { %454 = vmatprep.subr.bf16.mxu0 %v516_v15 }
  0x15   :  { %491 = vmatpush3.bf16.msra.mxu1 %v517_v14 }
  0x16   :  { %492 = vmatprep.subr.bf16.mxu1 %v520_v17 }
  0x17   :  { %455 = vmatpush3.bf16.msra.mxu0 %v518_v16 }
  0x18   :  { %456 = vmatprep.subr.bf16.mxu0 %v519_v18 }
  0x19   :  { %493 = vmatpush3.bf16.msra.mxu1 %v520_v17 }
  0x1a   :  { %494 = vmatprep.subr.bf16.mxu1 %v523_v21 }
  0x1b   :  { %457 = vmatpush3.bf16.msra.mxu0 %v521_v19 }
  0x1c   :  { %458 = vmatprep.subr.bf16.mxu0 %v522_v20 }
  0x1d   :  { %495 = vmatpush3.bf16.msra.mxu1 %v523_v21 }
  0x1e   :  { %496 = vmatprep.subr.bf16.mxu1 %v528_v25 }
  0x1f   :  { %459 = vmatpush3.bf16.msra.mxu0 %v524_v23 }
  0x21   :  { %497 = vmatpush3.bf16.msra.mxu1 %v528_v25 }
  0x22   :  { %290 = vmatmul.mubr.bf16.vlgmr.msra.gmra.mxu0 %v525_v26 }
  0x23   :  { %297 = vmatprep.mubr.bf16.mxu0 %v531_v27 }
  0x24   :  { %499 = vmatmul.mubr.bf16.vlgmr.msra.gmra.mxu1 %v530_v28 }
  0x2a   :  { %298 = vmatmul.mubr.bf16.gmra.mxu0 %v533_v29 }
  0xe2   :  { %v460_v30 = vpop.f32.mrf.mxu0 }
  0xe4   :  { %v461_v31 = vpop.f32.mrf.mxu0  ;;  %v500_v35 = vpop.f32.mrf.mxu1 }
  0xe5   :  { %v462_v34 = vadd.f32 %v461_v31, %v460_v30 }
  0xe6   :  { %v463_v36 = vpop.f32.mrf.mxu0  ;;  %v340_v38 = vpop.f32.mrf.mxu1 }
  0xe7   :  { %v292_v37 = vadd.f32 %v462_v34, %v396_v32 }
  0xe8   :  { %v464_v40 = vpop.f32.mrf.mxu0  ;;  %v501_v43 = vpop.f32.mrf.mxu1 }
  0xe9   :  { %v465_v41 = vadd.f32 %v464_v40, %v463_v36  ;;  %v341_v42 = vadd.f32 %v340_v38, %v292_v37 }
  0xea   :  { %v466_v44 = vpop.f32.mrf.mxu0  ;;  %v343_v47 = vpop.f32.mrf.mxu1 }
  0xeb   :  { %v363_v45 = vadd.f32 %v437_v39, %v341_v42  ;;  %v295_v46 = vadd.f32 %v465_v41, %v396_v32 }
  0xec   :  { %v467_v50 = vpop.f32.mrf.mxu0 }
  0xed   :  { %v367_v51 = vmax.f32 %v363_v45, 0.0  ;;  %v468_v52 = vadd.f32 %v467_v50, %v466_v44  ;;  %v344_v53 = vadd.f32 %v343_v47, %v295_v46 }
  0xee   :  { %v469_v54 = vpop.f32.mrf.mxu0 }
  0xef   :  { %v431_v55 = vpack.c.bf16 %v367_v51, %v367_v51  ;;  %v300_v56 = vadd.f32 %v468_v52, %v396_v32  ;;  %v364_v58 = vadd.f32 %v438_v48, %v344_v53 }
  0xf0   :  { %v470_v59 = vpop.f32.mrf.mxu0 }
  0xf1   :  { %388 = vst.msk [vmem:[%s678_s4] sm:$0xf] %vm387_vm0, %v431_v55  ;;  %v349_v60 = vadd.f32 %v500_v35, %v300_v56  ;;  %v368_v61 = vmax.f32 %v364_v58, 0.0  ;;  %v471_v62 = vadd.f32 %v470_v59, %v469_v54 }
  0xf3   :  { %v365_v63 = vadd.f32 %v441_v57, %v349_v60  ;;  %v432_v0 = vpack.c.bf16 %v368_v61, %v368_v61  ;;  %v303_v1 = vadd.f32 %v471_v62, %v396_v32 }
  0xf5   :  { %v369_v3 = vmax.f32 %v365_v63, 0.0  ;;  %389 = vst.msk [vmem:[%s678_s4 + $0x4] sm:$0xf] %vm387_vm0, %v432_v0  ;;  %v352_v4 = vadd.f32 %v501_v43, %v303_v1 }
  0xf7   :  { %v433_v5 = vpack.c.bf16 %v369_v3, %v369_v3  ;;  %v366_v6 = vadd.f32 %v442_v2, %v352_v4 }
  0xf9   :  { %390 = vst.msk [vmem:[%s678_s4 + $0x8] sm:$0xf] %vm387_vm0, %v433_v5  ;;  %v370_v7 = vmax.f32 %v366_v6, 0.0 }
  0xfb   :  { %v434_v8 = vpack.c.bf16 %v370_v7, %v370_v7 }
  0xfd   :  { %391 = vst.msk [vmem:[%s678_s4 + $0xc] sm:$0xf] %vm387_vm0, %v434_v8 }

// kernel: net_forward.39
= control target key start
LH: loop header
LB: loop body
LE: loop exit
PB: predicated region body
PF: predicated region fallthrough
CT: control target
= control target key end

     0   :  { %v423_v1 = vmov 0.0   ;;  %vm424_vm0 = vmmov 0   ;;  %vm309_vm1 = vcmask 519168   ;;  %s529_s1 = inlined_call_operand.vmem [shape: bf16[384,64], index: 1, kind: input, shape index: {}]   ;;  %s530_s0 = inlined_call_operand.vmem [shape: bf16[8,384], index: 0, kind: input, shape index: {}]   ;;  %s531_s2 = inlined_call_operand.vmem [shape: f32[1,64], index: 2, kind: input, shape index: {}]   ;;  %s532_s3 = inlined_call_operand.vmem [shape: bf16[8,64], index: 3, kind: output, shape index: {}]  }
   0x1   :  { %v396_v0 = vld [vmem:[%s529_s1 + $0x78] sm:$0xff]   ;;  %374 = vmatprep.subr.bf16.mxu1 %v423_v1  ;;  %390 = vmatprep.mubr.msk.bf16.mxu1 %vm424_vm0, %v423_v1  ;;  %v399_v4 = vld [vmem:[%s529_s1 + $0x70] sm:$0xff]   ;;  %v402_v7 = vld [vmem:[%s529_s1 + $0x68] sm:$0xff]  }
   0x2   :  { %v397_v2 = vld [vmem:[%s529_s1 + $0x38] sm:$0xff]   ;;  %343 = vmatprep.subr.bf16.mxu0 %v396_v0  ;;  %v400_v5 = vld [vmem:[%s529_s1 + $0x30] sm:$0xff]   ;;  %v403_v8 = vld [vmem:[%s529_s1 + $0x28] sm:$0xff]  }
   0x3   :  { %v398_v3 = vld [vmem:[%s529_s1 + $0xb8] sm:$0xff]   ;;  %344 = vmatpush3.bf16.msra.mxu0 %v397_v2  ;;  %v401_v6 = vld [vmem:[%s529_s1 + $0xb0] sm:$0xff]   ;;  %v404_v9 = vld [vmem:[%s529_s1 + $0xa8] sm:$0xff]  }
   0x4   :  { %375 = vmatpush3.bf16.msra.mxu1 %v398_v3  ;;  %345 = vmatprep.subr.bf16.mxu0 %v399_v4  ;;  %v405_v10 = vld [vmem:[%s529_s1 + $0x60] sm:$0xff]   ;;  %v408_v13 = vld [vmem:[%s529_s1 + $0x58] sm:$0xff]   ;;  %v411_v16 = vld [vmem:[%s529_s1 + $0x50] sm:$0xff]  }
   0x5   :  { %376 = vmatprep.subr.bf16.mxu1 %v423_v1  ;;  %v406_v11 = vld [vmem:[%s529_s1 + $0x20] sm:$0xff]   ;;  %v409_v14 = vld [vmem:[%s529_s1 + $0x18] sm:$0xff]   ;;  %v412_v17 = vld [vmem:[%s529_s1 + $0x10] sm:$0xff]  }
   0x6   :  { %v407_v12 = vld [vmem:[%s529_s1 + $0xa0] sm:$0xff]   ;;  %v410_v15 = vld [vmem:[%s529_s1 + $0x98] sm:$0xff]   ;;  %v413_v18 = vld [vmem:[%s529_s1 + $0x90] sm:$0xff]  }
   0x7   :  { %346 = vmatpush3.bf16.msra.mxu0 %v400_v5  ;;  %v414_v19 = vld [vmem:[%s529_s1 + $0x48] sm:$0xff]   ;;  %v417_v22 = vld [vmem:[%s529_s1 + $0x40] sm:$0xff]  }
   0x8   :  { %377 = vmatpush3.bf16.msra.mxu1 %v401_v6  ;;  %347 = vmatprep.subr.bf16.mxu0 %v402_v7  ;;  %v415_v20 = vld [vmem:[%s529_s1 + $0x8] sm:$0xff]   ;;  %v15_v23 = vld [vmem:[%s530_s0] sm:$0xff] }
   0x9   :  { %378 = vmatprep.subr.bf16.mxu1 %v423_v1  ;;  %v416_v21 = vld [vmem:[%s529_s1 + $0x88] sm:$0xff]   ;;  %v317_v24 = vcombine.high %v15_v23, %v15_v23  ;;  %v418_v25 = vld [vmem:[%s529_s1] sm:$0xff]   ;;  %v316_v27 = vcombine.low %v15_v23, %v15_v23 }
   0xa   :  { %v419_v26 = vld [vmem:[%s529_s1 + $0x80] sm:$0xff]   ;;  %v422_v28 = vld [vmem:[%s530_s0 + $0x8] ss:$0 sps:$4 sm:$0xff]  }
   0xb   :  { %348 = vmatpush3.bf16.msra.mxu0 %v403_v8  ;;  %259 = vmatprep.mubr.bf16.mxu0 %v317_v24  ;;  %v315_v31 = vld [vmem:[%s531_s2] ss:$0 sm:$0xff] }
   0xc   :  { %379 = vmatpush3.bf16.msra.mxu1 %v404_v9  ;;  %349 = vmatprep.subr.bf16.mxu0 %v405_v10 }
   0xd   :  { %380 = vmatprep.subr.bf16.mxu1 %v423_v1 }
   0xf   :  { %350 = vmatpush3.bf16.msra.mxu0 %v406_v11 }
  0x10   :  { %381 = vmatpush3.bf16.msra.mxu1 %v407_v12  ;;  %351 = vmatprep.subr.bf16.mxu0 %v408_v13 }
  0x11   :  { %382 = vmatprep.subr.bf16.mxu1 %v423_v1 }
  0x13   :  { %352 = vmatpush3.bf16.msra.mxu0 %v409_v14 }
  0x14   :  { %383 = vmatpush3.bf16.msra.mxu1 %v410_v15  ;;  %353 = vmatprep.subr.bf16.mxu0 %v411_v16 }
  0x15   :  { %384 = vmatprep.subr.bf16.mxu1 %v423_v1 }
  0x17   :  { %354 = vmatpush3.bf16.msra.mxu0 %v412_v17 }
  0x18   :  { %385 = vmatpush3.bf16.msra.mxu1 %v413_v18  ;;  %355 = vmatprep.subr.bf16.mxu0 %v414_v19 }
  0x19   :  { %386 = vmatprep.subr.bf16.mxu1 %v423_v1 }
  0x1b   :  { %356 = vmatpush3.bf16.msra.mxu0 %v415_v20 }
  0x1c   :  { %387 = vmatpush3.bf16.msra.mxu1 %v416_v21  ;;  %357 = vmatprep.subr.bf16.mxu0 %v417_v22 }
  0x1d   :  { %388 = vmatprep.subr.bf16.mxu1 %v423_v1 }
  0x1f   :  { %358 = vmatpush3.bf16.msra.mxu0 %v418_v25 }
  0x20   :  { %389 = vmatpush3.bf16.msra.mxu1 %v419_v26 }
  0x22   :  { %260 = vmatmul.mubr.bf16.vlgmr.msra.gmra.mxu0 %v316_v27 }
  0x23   :  { %391 = vmatmul.mubr.bf16.vlgmr.msra.gmra.mxu1 %v422_v28 }
  0xe2   :  { %v359_v29 = vpop.f32.mrf.mxu0 }
  0xe3   :  { %v301_v30 = vpop.f32.mrf.mxu1 }
  0xe4   :  { %v360_v32 = vpop.f32.mrf.mxu0 }
  0xe5   :  { %v361_v33 = vadd.f32 %v360_v32, %v359_v29  ;;  %v392_v34 = vpop.f32.mrf.mxu1 }
  0xe6   :  { %v362_v35 = vpop.f32.mrf.mxu0 }
  0xe7   :  { %v262_v36 = vadd.f32 %v361_v33, %v315_v31  ;;  %v304_v37 = vpop.f32.mrf.mxu1 }
  0xe8   :  { %v363_v38 = vpop.f32.mrf.mxu0 }
  0xe9   :  { %v302_v39 = vadd.f32 %v301_v30, %v262_v36  ;;  %v393_v40 = vpop.f32.mrf.mxu1 }
  0xeb   :  { %v307_v41 = vmax.f32 %v302_v39, 0.0 }
  0xed   :  { %v308_v42 = vpack.c.bf16 %v307_v41, %v307_v41 }
  0xef   :  { %310 = vst.msk [vmem:[%s532_s3] sm:$0xf] %vm309_vm1, %v308_v42 }

// kernel: net_forward.38
= control target key start
LH: loop header
LB: loop body
LE: loop exit
PB: predicated region body
PF: predicated region fallthrough
CT: control target
= control target key end

     0   :  { %v182_v0 = vmov 0.0   ;;  %vm183_vm0 = vmmov 0   ;;  %vm128_vm1 = vcmask 519168   ;;  %s237_s1 = inlined_call_operand.vmem [shape: bf16[128,64], index: 1, kind: input, shape index: {}]   ;;  %s238_s0 = inlined_call_operand.vmem [shape: bf16[8,128], index: 0, kind: input, shape index: {}]   ;;  %s239_s2 = inlined_call_operand.vmem [shape: f32[1,64], index: 2, kind: input, shape index: {}]   ;;  %s240_s3 = inlined_call_operand.vmem [shape: bf16[8,64], index: 3, kind: output, shape index: {}]  }
   0x1   :  { %152 = vmatprep.subr.bf16.mxu0 %v182_v0  ;;  %v174_v1 = vld [vmem:[%s237_s1 + $0x38] sm:$0xff]   ;;  %168 = vmatprep.mubr.msk.bf16.mxu0 %vm183_vm0, %v182_v0  ;;  %v175_v2 = vld [vmem:[%s237_s1 + $0x30] sm:$0xff]   ;;  %v176_v3 = vld [vmem:[%s237_s1 + $0x28] sm:$0xff]  }
   0x2   :  { %153 = vmatpush3.bf16.msra.mxu0 %v174_v1  ;;  %v177_v4 = vld [vmem:[%s237_s1 + $0x20] sm:$0xff]   ;;  %v178_v5 = vld [vmem:[%s237_s1 + $0x18] sm:$0xff]   ;;  %v179_v6 = vld [vmem:[%s237_s1 + $0x10] sm:$0xff]  }
   0x3   :  { %154 = vmatprep.subr.bf16.mxu0 %v182_v0  ;;  %v180_v7 = vld [vmem:[%s237_s1 + $0x8] sm:$0xff]   ;;  %v181_v8 = vld [vmem:[%s237_s1] sm:$0xff]  }
   0x4   :  { %v15_v9 = vld [vmem:[%s238_s0] sm:$0xf] }
   0x5   :  { %v134_v10 = vld [vmem:[%s239_s2] ss:$0 sm:$0xff] }
   0x6   :  { %155 = vmatpush3.bf16.msra.mxu0 %v175_v2 }
   0x7   :  { %156 = vmatprep.subr.bf16.mxu0 %v182_v0 }
   0xa   :  { %157 = vmatpush3.bf16.msra.mxu0 %v176_v3 }
   0xb   :  { %158 = vmatprep.subr.bf16.mxu0 %v182_v0 }
   0xe   :  { %159 = vmatpush3.bf16.msra.mxu0 %v177_v4 }
   0xf   :  { %160 = vmatprep.subr.bf16.mxu0 %v182_v0 }
  0x12   :  { %161 = vmatpush3.bf16.msra.mxu0 %v178_v5 }
  0x13   :  { %162 = vmatprep.subr.bf16.mxu0 %v182_v0 }
  0x16   :  { %163 = vmatpush3.bf16.msra.mxu0 %v179_v6 }
  0x17   :  { %164 = vmatprep.subr.bf16.mxu0 %v182_v0 }
  0x1a   :  { %165 = vmatpush3.bf16.msra.mxu0 %v180_v7 }
  0x1b   :  { %166 = vmatprep.subr.bf16.mxu0 %v182_v0 }
  0x1e   :  { %167 = vmatpush3.bf16.msra.mxu0 %v181_v8 }
  0x21   :  { %169 = vmatmul.mubr.bf16.vlgmr.msra.gmra.mxu0 %v15_v9 }
  0xe1   :  { %v121_v11 = vpop.f32.mrf.mxu0 }
  0xe2   :  { %v122_v12 = vadd.f32 %v134_v10, %v121_v11 }
  0xe3   :  { %v170_v13 = vpop.f32.mrf.mxu0 }
  0xe4   :  { %v127_v14 = vpack.c.bf16 %v122_v12, %v122_v12 }
  0xe5   :  { %v124_v15 = vpop.f32.mrf.mxu0 }
  0xe6   :  { %129 = vst.msk [vmem:[%s240_s3] sm:$0xf] %vm128_vm1, %v127_v14 }
  0xe7   :  { %v171_v16 = vpop.f32.mrf.mxu0 }

// kernel: net_forward.43
= control target key start
LH: loop header
LB: loop body
LE: loop exit
PB: predicated region body
PF: predicated region fallthrough
CT: control target
= control target key end

     0   :  { %vm12_vm0 = vcmask 519168   ;;  %vm31_vm1 = vcmask 1041409   ;;  %vm34_vm2 = vcmask 517120   ;;  %s59_s0 = inlined_call_operand.vmem [shape: bf16[2,4,64], index: 0, kind: input, shape index: {}]   ;;  %s60_s1 = inlined_call_operand.vmem [shape: f32[2,64], index: 1, kind: output, shape index: {}]  }
   0x1   :  { %v8_v0 = vld [vmem:[%s59_s0] sm:$0x3]  ;;  %v9_v1 = vld [vmem:[%s59_s0 + $0x2] sm:$0x3] }
   0x2   :  { %v10_v2 = vunpack.c.l.bf16 %v8_v0  ;;  %v11_v3 = vunpack.c.l.bf16 %v9_v1 }
   0x4   :  { %v13_v4 = vsel %vm12_vm0, %v10_v2, 0.0  ;;  %v20_v5 = vsel %vm12_vm0, %v11_v3, 0.0 }
   0x5   :  { %v14_v6 = vrot.slane %v13_v4, 4  ;;  %v21_v7 = vrot.slane %v20_v5, 4 }
   0x7   :  { %v15_v8 = vadd.f32 %v14_v6, %v13_v4  ;;  %v22_v9 = vadd.f32 %v21_v7, %v20_v5 }
   0x9   :  { %v16_v10 = vrot.slane %v15_v8, 2  ;;  %v23_v11 = vrot.slane %v22_v9, 2 }
   0xb   :  { %v17_v12 = vadd.f32 %v16_v10, %v15_v8  ;;  %v24_v13 = vadd.f32 %v23_v11, %v22_v9 }
   0xd   :  { %v18_v14 = vrot.slane %v17_v12, 1  ;;  %v25_v15 = vrot.slane %v24_v13, 1 }
   0xf   :  { %v19_v16 = vadd.f32 %v18_v14, %v17_v12  ;;  %v26_v17 = vadd.f32 %v25_v15, %v24_v13 }
  0x11   :  { %v27_v18 = vmul.f32 0.25, %v19_v16  ;;  %v28_v19 = vmul.f32 0.25, %v26_v17 }
  0x13   :  { %v32_v20 = vsel %vm31_vm1, %v28_v19, %v27_v18 }
  0x14   :  { %35 = vst.msk [vmem:[%s60_s1] sm:$0x3] %vm34_vm2, %v32_v20 }

// kernel: net_forward.41
= control target key start
LH: loop header
LB: loop body
LE: loop exit
PB: predicated region body
PF: predicated region fallthrough
CT: control target
= control target key end

     0   :  { %v657_v35 = vmov 0.0   ;;  %vm658_vm0 = vmmov 0   ;;  %vm485_vm1 = vcmask 519168   ;;  %s814_s1 = inlined_call_operand.vmem [shape: bf16[640,64], index: 1, kind: input, shape index: {}]   ;;  %s815_s0 = inlined_call_operand.vmem [shape: bf16[8,640], index: 0, kind: input, shape index: {}]   ;;  %s816_s2 = inlined_call_operand.vmem [shape: f32[1,64], index: 2, kind: input, shape index: {}]   ;;  %s817_s3 = inlined_call_operand.vmem [shape: bf16[8,64], index: 3, kind: output, shape index: {}]  }
   0x1   :  { %v612_v0 = vld [vmem:[%s814_s1 + $0x78] sm:$0xff]   ;;  %v616_v4 = vld [vmem:[%s814_s1 + $0x70] sm:$0xff]   ;;  %v620_v8 = vld [vmem:[%s814_s1 + $0x68] sm:$0xff]  }
   0x2   :  { %v613_v1 = vld [vmem:[%s814_s1 + $0x38] sm:$0xff]   ;;  %537 = vmatprep.subr.bf16.mxu0 %v612_v0  ;;  %v617_v5 = vld [vmem:[%s814_s1 + $0x30] sm:$0xff]   ;;  %v621_v9 = vld [vmem:[%s814_s1 + $0x28] sm:$0xff]  }
   0x3   :  { %v614_v2 = vld [vmem:[%s814_s1 + $0xf8] sm:$0xff]   ;;  %538 = vmatpush3.bf16.msra.mxu0 %v613_v1  ;;  %v618_v6 = vld [vmem:[%s814_s1 + $0xf0] sm:$0xff]   ;;  %v622_v10 = vld [vmem:[%s814_s1 + $0xe8] sm:$0xff]  }
   0x4   :  { %v615_v3 = vld [vmem:[%s814_s1 + $0xb8] sm:$0xff]   ;;  %559 = vmatprep.subr.bf16.mxu1 %v614_v2  ;;  %539 = vmatprep.subr.bf16.mxu0 %v616_v4  ;;  %v619_v7 = vld [vmem:[%s814_s1 + $0xb0] sm:$0xff]   ;;  %v623_v11 = vld [vmem:[%s814_s1 + $0xa8] sm:$0xff]  }
   0x5   :  { %560 = vmatpush3.bf16.msra.mxu1 %v615_v3  ;;  %v624_v12 = vld [vmem:[%s814_s1 + $0x60] sm:$0xff]   ;;  %v628_v16 = vld [vmem:[%s814_s1 + $0x58] sm:$0xff]   ;;  %v632_v20 = vld [vmem:[%s814_s1 + $0x50] sm:$0xff]  }
   0x6   :  { %561 = vmatprep.subr.bf16.mxu1 %v618_v6  ;;  %v625_v13 = vld [vmem:[%s814_s1 + $0x20] sm:$0xff]   ;;  %v629_v17 = vld [vmem:[%s814_s1 + $0x18] sm:$0xff]   ;;  %v633_v21 = vld [vmem:[%s814_s1 + $0x10] sm:$0xff]  }
   0x7   :  { %540 = vmatpush3.bf16.msra.mxu0 %v617_v5  ;;  %v626_v14 = vld [vmem:[%s814_s1 + $0xe0] sm:$0xff]   ;;  %v630_v18 = vld [vmem:[%s814_s1 + $0xd8] sm:$0xff]   ;;  %v634_v22 = vld [vmem:[%s814_s1 + $0xd0] sm:$0xff]  }
   0x8   :  { %541 = vmatprep.subr.bf16.mxu0 %v620_v8  ;;  %v627_v15 = vld [vmem:[%s814_s1 + $0xa0] sm:$0xff]   ;;  %v631_v19 = vld [vmem:[%s814_s1 + $0x98] sm:$0xff]   ;;  %v635_v23 = vld [vmem:[%s814_s1 + $0x90] sm:$0xff]  }
   0x9   :  { %562 = vmatpush3.bf16.msra.mxu1 %v619_v7  ;;  %v636_v24 = vld [vmem:[%s814_s1 + $0x48] sm:$0xff]   ;;  %v640_v28 = vld [vmem:[%s814_s1 + $0x40] sm:$0xff]   ;;  %v649_v39 = vld [vmem:[%s814_s1 + $0x138] sm:$0xff]  }
   0xa   :  { %563 = vmatprep.subr.bf16.mxu1 %v622_v10  ;;  %v637_v25 = vld [vmem:[%s814_s1 + $0x8] sm:$0xff]   ;;  %v641_v29 = vld [vmem:[%s814_s1] sm:$0xff]   ;;  %v650_v40 = vld [vmem:[%s814_s1 + $0x130] sm:$0xff]  }
   0xb   :  { %542 = vmatpush3.bf16.msra.mxu0 %v621_v9  ;;  %v638_v26 = vld [vmem:[%s814_s1 + $0xc8] sm:$0xff]   ;;  %v642_v30 = vld [vmem:[%s814_s1 + $0xc0] sm:$0xff]   ;;  %v653_v43 = vld [vmem:[%s814_s1 + $0x118] sm:$0xff]  }
   0xc   :  { %543 = vmatprep.subr.bf16.mxu0 %v624_v12  ;;  %v639_v27 = vld [vmem:[%s814_s1 + $0x88] sm:$0xff]   ;;  %v15_v31 = vld [vmem:[%s815_s0] sm:$0xff]  ;;  %v654_v44 = vld [vmem:[%s814_s1 + $0x110] sm:$0xff]  }
   0xd   :  { %564 = vmatpush3.bf16.msra.mxu1 %v623_v11  ;;  %v492_v32 = vcombine.low %v15_v31, %v15_v31  ;;  %v493_v33 = vcombine.high %v15_v31, %v15_v31  ;;  %v646_v34 = vld [vmem:[%s814_s1 + $0x80] sm:$0xff]   ;;  %v16_v36 = vld [vmem:[%s815_s0 + $0x8] sm:$0xff]  ;;  %v645_v47 = vld [vmem:[%s815_s0 + $0x10] ss:$0 sps:$4 sm:$0xff]  }
   0xe   :  { %565 = vmatprep.subr.bf16.mxu1 %v626_v14  ;;  %v494_v37 = vcombine.low %v16_v36, %v16_v36  ;;  %v495_v38 = vcombine.high %v16_v36, %v16_v36  ;;  %v651_v41 = vld [vmem:[%s814_s1 + $0x128] sm:$0xff]   ;;  %v652_v42 = vld [vmem:[%s814_s1 + $0x120] sm:$0xff]  }
   0xf   :  { %544 = vmatpush3.bf16.msra.mxu0 %v625_v13  ;;  %395 = vmatprep.mubr.bf16.mxu0 %v493_v33  ;;  %v655_v45 = vld [vmem:[%s814_s1 + $0x108] sm:$0xff]   ;;  %v656_v46 = vld [vmem:[%s814_s1 + $0x100] sm:$0xff]  }
  0x10   :  { %545 = vmatprep.subr.bf16.mxu0 %v628_v16  ;;  %435 = vmatprep.mubr.bf16.mxu1 %v495_v38  ;;  %v491_v57 = vld [vmem:[%s816_s2] ss:$0 sm:$0xff] }
  0x11   :  { %566 = vmatpush3.bf16.msra.mxu1 %v627_v15 }
  0x12   :  { %567 = vmatprep.subr.bf16.mxu1 %v630_v18 }
  0x13   :  { %546 = vmatpush3.bf16.msra.mxu0 %v629_v17 }
  0x14   :  { %547 = vmatprep.subr.bf16.mxu0 %v632_v20 }
  0x15   :  { %568 = vmatpush3.bf16.msra.mxu1 %v631_v19 }
  0x16   :  { %569 = vmatprep.subr.bf16.mxu1 %v634_v22 }
  0x17   :  { %548 = vmatpush3.bf16.msra.mxu0 %v633_v21 }
  0x18   :  { %549 = vmatprep.subr.bf16.mxu0 %v636_v24 }
  0x19   :  { %570 = vmatpush3.bf16.msra.mxu1 %v635_v23 }
  0x1a   :  { %571 = vmatprep.subr.bf16.mxu1 %v638_v26 }
  0x1b   :  { %550 = vmatpush3.bf16.msra.mxu0 %v637_v25 }
  0x1c   :  { %551 = vmatprep.subr.bf16.mxu0 %v640_v28 }
  0x1d   :  { %572 = vmatpush3.bf16.msra.mxu1 %v639_v27 }
  0x1e   :  { %573 = vmatprep.subr.bf16.mxu1 %v642_v30 }
  0x1f   :  { %552 = vmatpush3.bf16.msra.mxu0 %v641_v29 }
  0x20   :  { %590 = vmatprep.subr.bf16.mxu0 %v657_v35 }
  0x21   :  { %574 = vmatpush3.bf16.msra.mxu1 %v646_v34 }
  0x22   :  { %396 = vmatmul.mubr.bf16.vlgmr.msra.gmra.mxu0 %v492_v32 }
  0x23   :  { %591 = vmatpush3.bf16.msra.mxu0 %v649_v39  ;;  %606 = vmatprep.mubr.msk.bf16.mxu0 %vm658_vm0, %v657_v35 }
  0x24   :  { %436 = vmatmul.mubr.bf16.vlgmr.msra.gmra.mxu1 %v494_v37  ;;  %592 = vmatprep.subr.bf16.mxu0 %v657_v35 }
  0x27   :  { %593 = vmatpush3.bf16.msra.mxu0 %v650_v40 }
  0x28   :  { %594 = vmatprep.subr.bf16.mxu0 %v657_v35 }
  0x2b   :  { %595 = vmatpush3.bf16.msra.mxu0 %v651_v41 }
  0x2c   :  { %596 = vmatprep.subr.bf16.mxu0 %v657_v35 }
  0x2f   :  { %597 = vmatpush3.bf16.msra.mxu0 %v652_v42 }
  0x30   :  { %598 = vmatprep.subr.bf16.mxu0 %v657_v35 }
  0x33   :  { %599 = vmatpush3.bf16.msra.mxu0 %v653_v43 }
  0x34   :  { %600 = vmatprep.subr.bf16.mxu0 %v657_v35 }
  0x37   :  { %601 = vmatpush3.bf16.msra.mxu0 %v654_v44 }
  0x38   :  { %602 = vmatprep.subr.bf16.mxu0 %v657_v35 }
  0x3b   :  { %603 = vmatpush3.bf16.msra.mxu0 %v655_v45 }
  0x3c   :  { %604 = vmatprep.subr.bf16.mxu0 %v657_v35 }
  0x3f   :  { %605 = vmatpush3.bf16.msra.mxu0 %v656_v46 }
  0x42   :  { %607 = vmatmul.mubr.bf16.vlgmr.msra.gmra.mxu0 %v645_v47 }
  0xe2   :  { %v553_v48 = vpop.f32.mrf.mxu0 }
  0xe4   :  { %v554_v49 = vpop.f32.mrf.mxu0  ;;  %v575_v50 = vpop.f32.mrf.mxu1 }
  0xe5   :  { %v555_v56 = vadd.f32 %v554_v49, %v553_v48 }
  0xe6   :  { %v556_v51 = vpop.f32.mrf.mxu0  ;;  %v576_v52 = vpop.f32.mrf.mxu1 }
  0xe7   :  { %v398_v58 = vadd.f32 %v555_v56, %v491_v57  ;;  %v577_v59 = vadd.f32 %v576_v52, %v575_v50 }
  0xe8   :  { %v557_v53 = vpop.f32.mrf.mxu0  ;;  %v578_v54 = vpop.f32.mrf.mxu1 }
  0xe9   :  { %v438_v60 = vadd.f32 %v577_v59, %v398_v58 }
  0xea   :  { %v579_v55 = vpop.f32.mrf.mxu1 }
 0x102   :  { %v477_v61 = vpop.f32.mrf.mxu0 }
 0x103   :  { %v478_v62 = vadd.f32 %v477_v61, %v438_v60 }
 0x104   :  { %v608_v63 = vpop.f32.mrf.mxu0 }
 0x105   :  { %v483_v0 = vmax.f32 %v478_v62, 0.0 }
 0x106   :  { %v480_v1 = vpop.f32.mrf.mxu0 }
 0x107   :  { %v484_v2 = vpack.c.bf16 %v483_v0, %v483_v0 }
 0x108   :  { %v609_v3 = vpop.f32.mrf.mxu0 }
 0x109   :  { %486 = vst.msk [vmem:[%s817_s3] sm:$0xf] %vm485_vm1, %v484_v2 }

// kernel: net_forward.40
= control target key start
LH: loop header
LB: loop body
LE: loop exit
PB: predicated region body
PF: predicated region fallthrough
CT: control target
= control target key end

     0   :  { %v663_v35 = vmov 0.0   ;;  %vm664_vm0 = vmmov 0   ;;  %vm491_vm1 = vcmask 519168   ;;  %s828_s1 = inlined_call_operand.vmem [shape: bf16[640,64], index: 1, kind: input, shape index: {}]   ;;  %s829_s0 = inlined_call_operand.vmem [shape: bf16[8,640], index: 0, kind: input, shape index: {}]   ;;  %s830_s2 = inlined_call_operand.vmem [shape: f32[1,64], index: 2, kind: input, shape index: {}]   ;;  %s831_s3 = inlined_call_operand.vmem [shape: bf16[8,64], index: 3, kind: input, shape index: {}]   ;;  %s832_s4 = inlined_call_operand.vmem [shape: bf16[8,64], index: 4, kind: output, shape index: {}]  }
   0x1   :  { %v618_v0 = vld [vmem:[%s828_s1 + $0x78] sm:$0xff]   ;;  %v622_v4 = vld [vmem:[%s828_s1 + $0x70] sm:$0xff]   ;;  %v626_v8 = vld [vmem:[%s828_s1 + $0x68] sm:$0xff]  }
   0x2   :  { %v619_v1 = vld [vmem:[%s828_s1 + $0x38] sm:$0xff]   ;;  %543 = vmatprep.subr.bf16.mxu0 %v618_v0  ;;  %v623_v5 = vld [vmem:[%s828_s1 + $0x30] sm:$0xff]   ;;  %v627_v9 = vld [vmem:[%s828_s1 + $0x28] sm:$0xff]  }
   0x3   :  { %v620_v2 = vld [vmem:[%s828_s1 + $0xf8] sm:$0xff]   ;;  %544 = vmatpush3.bf16.msra.mxu0 %v619_v1  ;;  %v624_v6 = vld [vmem:[%s828_s1 + $0xf0] sm:$0xff]   ;;  %v628_v10 = vld [vmem:[%s828_s1 + $0xe8] sm:$0xff]  }
   0x4   :  { %v621_v3 = vld [vmem:[%s828_s1 + $0xb8] sm:$0xff]   ;;  %565 = vmatprep.subr.bf16.mxu1 %v620_v2  ;;  %545 = vmatprep.subr.bf16.mxu0 %v622_v4  ;;  %v625_v7 = vld [vmem:[%s828_s1 + $0xb0] sm:$0xff]   ;;  %v629_v11 = vld [vmem:[%s828_s1 + $0xa8] sm:$0xff]  }
   0x5   :  { %566 = vmatpush3.bf16.msra.mxu1 %v621_v3  ;;  %v630_v12 = vld [vmem:[%s828_s1 + $0x60] sm:$0xff]   ;;  %v634_v16 = vld [vmem:[%s828_s1 + $0x58] sm:$0xff]   ;;  %v638_v20 = vld [vmem:[%s828_s1 + $0x50] sm:$0xff]  }
   0x6   :  { %567 = vmatprep.subr.bf16.mxu1 %v624_v6  ;;  %v631_v13 = vld [vmem:[%s828_s1 + $0x20] sm:$0xff]   ;;  %v635_v17 = vld [vmem:[%s828_s1 + $0x18] sm:$0xff]   ;;  %v639_v21 = vld [vmem:[%s828_s1 + $0x10] sm:$0xff]  }
   0x7   :  { %546 = vmatpush3.bf16.msra.mxu0 %v623_v5  ;;  %v632_v14 = vld [vmem:[%s828_s1 + $0xe0] sm:$0xff]   ;;  %v636_v18 = vld [vmem:[%s828_s1 + $0xd8] sm:$0xff]   ;;  %v640_v22 = vld [vmem:[%s828_s1 + $0xd0] sm:$0xff]  }
   0x8   :  { %547 = vmatprep.subr.bf16.mxu0 %v626_v8  ;;  %v633_v15 = vld [vmem:[%s828_s1 + $0xa0] sm:$0xff]   ;;  %v637_v19 = vld [vmem:[%s828_s1 + $0x98] sm:$0xff]   ;;  %v641_v23 = vld [vmem:[%s828_s1 + $0x90] sm:$0xff]  }
   0x9   :  { %568 = vmatpush3.bf16.msra.mxu1 %v625_v7  ;;  %v642_v24 = vld [vmem:[%s828_s1 + $0x48] sm:$0xff]   ;;  %v646_v28 = vld [vmem:[%s828_s1 + $0x40] sm:$0xff]   ;;  %v655_v39 = vld [vmem:[%s828_s1 + $0x138] sm:$0xff]  }
   0xa   :  { %569 = vmatprep.subr.bf16.mxu1 %v628_v10  ;;  %v643_v25 = vld [vmem:[%s828_s1 + $0x8] sm:$0xff]   ;;  %v647_v29 = vld [vmem:[%s828_s1] sm:$0xff]   ;;  %v656_v40 = vld [vmem:[%s828_s1 + $0x130] sm:$0xff]  }
   0xb   :  { %548 = vmatpush3.bf16.msra.mxu0 %v627_v9  ;;  %v644_v26 = vld [vmem:[%s828_s1 + $0xc8] sm:$0xff]   ;;  %v648_v30 = vld [vmem:[%s828_s1 + $0xc0] sm:$0xff]   ;;  %v659_v43 = vld [vmem:[%s828_s1 + $0x118] sm:$0xff]  }
   0xc   :  { %549 = vmatprep.subr.bf16.mxu0 %v630_v12  ;;  %v645_v27 = vld [vmem:[%s828_s1 + $0x88] sm:$0xff]   ;;  %v18_v31 = vld [vmem:[%s829_s0] sm:$0xff]  ;;  %v660_v44 = vld [vmem:[%s828_s1 + $0x110] sm:$0xff]  }
   0xd   :  { %570 = vmatpush3.bf16.msra.mxu1 %v629_v11  ;;  %v498_v32 = vcombine.low %v18_v31, %v18_v31  ;;  %v499_v33 = vcombine.high %v18_v31, %v18_v31  ;;  %v652_v34 = vld [vmem:[%s828_s1 + $0x80] sm:$0xff]   ;;  %v19_v36 = vld [vmem:[%s829_s0 + $0x8] sm:$0xff]  ;;  %v651_v47 = vld [vmem:[%s829_s0 + $0x10] ss:$0 sps:$4 sm:$0xff]  }
   0xe   :  { %571 = vmatprep.subr.bf16.mxu1 %v632_v14  ;;  %v500_v37 = vcombine.low %v19_v36, %v19_v36  ;;  %v501_v38 = vcombine.high %v19_v36, %v19_v36  ;;  %v657_v41 = vld [vmem:[%s828_s1 + $0x128] sm:$0xff]   ;;  %v658_v42 = vld [vmem:[%s828_s1 + $0x120] sm:$0xff]  }
   0xf   :  { %550 = vmatpush3.bf16.msra.mxu0 %v631_v13  ;;  %398 = vmatprep.mubr.bf16.mxu0 %v499_v33  ;;  %v661_v45 = vld [vmem:[%s828_s1 + $0x108] sm:$0xff]   ;;  %v662_v46 = vld [vmem:[%s828_s1 + $0x100] sm:$0xff]  }
  0x10   :  { %551 = vmatprep.subr.bf16.mxu0 %v634_v16  ;;  %438 = vmatprep.mubr.bf16.mxu1 %v501_v38  ;;  %v497_v57 = vld [vmem:[%s830_s2] ss:$0 sm:$0xff] }
  0x11   :  { %572 = vmatpush3.bf16.msra.mxu1 %v633_v15  ;;  %v486_v60 = vld [vmem:[%s831_s3] sm:$0xf] }
  0x12   :  { %573 = vmatprep.subr.bf16.mxu1 %v636_v18  ;;  %v487_v62 = vunpack.c.l.bf16 %v486_v60 }
  0x13   :  { %552 = vmatpush3.bf16.msra.mxu0 %v635_v17 }
  0x14   :  { %553 = vmatprep.subr.bf16.mxu0 %v638_v20 }
  0x15   :  { %574 = vmatpush3.bf16.msra.mxu1 %v637_v19 }
  0x16   :  { %575 = vmatprep.subr.bf16.mxu1 %v640_v22 }
  0x17   :  { %554 = vmatpush3.bf16.msra.mxu0 %v639_v21 }
  0x18   :  { %555 = vmatprep.subr.bf16.mxu0 %v642_v24 }
  0x19   :  { %576 = vmatpush3.bf16.msra.mxu1 %v641_v23 }
  0x1a   :  { %577 = vmatprep.subr.bf16.mxu1 %v644_v26 }
  0x1b   :  { %556 = vmatpush3.bf16.msra.mxu0 %v643_v25 }
  0x1c   :  { %557 = vmatprep.subr.bf16.mxu0 %v646_v28 }
  0x1d   :  { %578 = vmatpush3.bf16.msra.mxu1 %v645_v27 }
  0x1e   :  { %579 = vmatprep.subr.bf16.mxu1 %v648_v30 }
  0x1f   :  { %558 = vmatpush3.bf16.msra.mxu0 %v647_v29 }
  0x20   :  { %596 = vmatprep.subr.bf16.mxu0 %v663_v35 }
  0x21   :  { %580 = vmatpush3.bf16.msra.mxu1 %v652_v34 }
  0x22   :  { %399 = vmatmul.mubr.bf16.vlgmr.msra.gmra.mxu0 %v498_v32 }
  0x23   :  { %597 = vmatpush3.bf16.msra.mxu0 %v655_v39  ;;  %612 = vmatprep.mubr.msk.bf16.mxu0 %vm664_vm0, %v663_v35 }
  0x24   :  { %439 = vmatmul.mubr.bf16.vlgmr.msra.gmra.mxu1 %v500_v37  ;;  %598 = vmatprep.subr.bf16.mxu0 %v663_v35 }
  0x27   :  { %599 = vmatpush3.bf16.msra.mxu0 %v656_v40 }
  0x28   :  { %600 = vmatprep.subr.bf16.mxu0 %v663_v35 }
  0x2b   :  { %601 = vmatpush3.bf16.msra.mxu0 %v657_v41 }
  0x2c   :  { %602 = vmatprep.subr.bf16.mxu0 %v663_v35 }
  0x2f   :  { %603 = vmatpush3.bf16.msra.mxu0 %v658_v42 }
  0x30   :  { %604 = vmatprep.subr.bf16.mxu0 %v663_v35 }
  0x33   :  { %605 = vmatpush3.bf16.msra.mxu0 %v659_v43 }
  0x34   :  { %606 = vmatprep.subr.bf16.mxu0 %v663_v35 }
  0x37   :  { %607 = vmatpush3.bf16.msra.mxu0 %v660_v44 }
  0x38   :  { %608 = vmatprep.subr.bf16.mxu0 %v663_v35 }
  0x3b   :  { %609 = vmatpush3.bf16.msra.mxu0 %v661_v45 }
  0x3c   :  { %610 = vmatprep.subr.bf16.mxu0 %v663_v35 }
  0x3f   :  { %611 = vmatpush3.bf16.msra.mxu0 %v662_v46 }
  0x42   :  { %613 = vmatmul.mubr.bf16.vlgmr.msra.gmra.mxu0 %v651_v47 }
  0xe2   :  { %v559_v48 = vpop.f32.mrf.mxu0 }
  0xe4   :  { %v560_v49 = vpop.f32.mrf.mxu0  ;;  %v581_v50 = vpop.f32.mrf.mxu1 }
  0xe5   :  { %v561_v56 = vadd.f32 %v560_v49, %v559_v48 }
  0xe6   :  { %v562_v51 = vpop.f32.mrf.mxu0  ;;  %v582_v52 = vpop.f32.mrf.mxu1 }
  0xe7   :  { %v401_v58 = vadd.f32 %v561_v56, %v497_v57  ;;  %v583_v59 = vadd.f32 %v582_v52, %v581_v50 }
  0xe8   :  { %v563_v53 = vpop.f32.mrf.mxu0  ;;  %v584_v54 = vpop.f32.mrf.mxu1 }
  0xe9   :  { %v441_v61 = vadd.f32 %v583_v59, %v401_v58 }
  0xea   :  { %v585_v55 = vpop.f32.mrf.mxu1 }
 0x102   :  { %v480_v63 = vpop.f32.mrf.mxu0 }
 0x103   :  { %v481_v0 = vadd.f32 %v480_v63, %v441_v61 }
 0x104   :  { %v614_v1 = vpop.f32.mrf.mxu0 }
 0x105   :  { %v488_v2 = vadd.f32 %v487_v62, %v481_v0 }
 0x106   :  { %v483_v3 = vpop.f32.mrf.mxu0 }
 0x107   :  { %v489_v4 = vmax.f32 %v488_v2, 0.0 }
 0x108   :  { %v615_v5 = vpop.f32.mrf.mxu0 }
 0x109   :  { %v490_v6 = vpack.c.bf16 %v489_v4, %v489_v4 }
 0x10b   :  { %492 = vst.msk [vmem:[%s832_s4] sm:$0xf] %vm491_vm1, %v490_v6 }

</bundles_post_ra>
